<compile_context>
chip_gen: v7x
topology: tpu7x:2x2x1
jax: 0.10.0
libtpu: 0.0.40
codegen_flags: <defaults>
</compile_context>

<pallas_src>
import jax
import jax.numpy as jnp
from jax.experimental import pallas as pl
from jax.experimental.pallas import tpu as pltpu

HIDDEN = 128   # QawaliLSTM.HiddenDim
OUT = 2        # QawaliLSTM.OutDim
LANES = 128    # lane-dense padding for the (HIDDEN -> OUT) linear output


def _gate_math(gates, c):
    """Elementwise LSTM cell update.  `gates` is packed [i, f, o, g] so the
    three sigmoids are one contiguous (B, 3H) EUP launch, tanh one (B, H)."""
    sig = jax.nn.sigmoid(gates[:, :3 * HIDDEN])
    i = sig[:, 0 * HIDDEN:1 * HIDDEN]
    f = sig[:, 1 * HIDDEN:2 * HIDDEN]
    o = sig[:, 2 * HIDDEN:3 * HIDDEN]
    g = jnp.tanh(gates[:, 3 * HIDDEN:4 * HIDDEN])
    c_new = f * c + i * g
    h_new = o * jnp.tanh(c_new)
    return h_new, c_new


def qawali_kernel(x_ref, wih0_ref, whh0_ref, b0_ref, wih1_ref, whh1_ref,
                  b1_ref, wlin_ref, blin_ref, out_ref, proj0_ref):
    seq_len, batch, _ = x_ref.shape

    # Loop-invariant weights: load once (streamed from VMEM by the compiler).
    wih0 = wih0_ref[...]          # (F_pad, 4H) bf16
    whh0 = whh0_ref[...]          # (H, 4H)     bf16
    b0 = b0_ref[...]              # (1, 4H)     f32  (b_ih0 + b_hh0)
    wih1 = wih1_ref[...]          # (H, 4H)     bf16
    whh1 = whh1_ref[...]          # (H, 4H)     bf16
    b1 = b1_ref[...]              # (1, 4H)     f32  (b_ih1 + b_hh1)

    # ---- Hoisted, time-independent layer-0 input projection -----------------
    # No dependence on the recurrent state, so it runs once for all timesteps,
    # off the serial critical path, into VMEM scratch.
    for t in range(seq_len):      # static loop; tiny (B,F_pad)@(F_pad,4H) dots
        proj0_ref[t] = (
            jnp.dot(x_ref[t].astype(jnp.bfloat16), wih0,
                    preferred_element_type=jnp.float32) + b0)

    # ---- Serial recurrence: only K=128 recurrent dots per step --------------
    zeros = jnp.zeros((batch, HIDDEN), jnp.float32)
    init = (zeros, zeros, zeros, zeros)                      # h0, c0, h1, c1

    def step(t, carry):
        h0, c0, h1, c1 = carry
        # Layer 0: recurrent half only (the x-projection was hoisted).
        g0 = proj0_ref[t] + jnp.dot(h0.astype(jnp.bfloat16), whh0,
                                    preferred_element_type=jnp.float32)
        h0, c0 = _gate_math(g0, c0)
        # Layer 1: two dots summed -- no lane concat / (B, 2H) temporary.
        g1 = (jnp.dot(h0.astype(jnp.bfloat16), wih1,
                      preferred_element_type=jnp.float32)
              + jnp.dot(h1.astype(jnp.bfloat16), whh1,
                        preferred_element_type=jnp.float32)
              + b1)
        h1, c1 = _gate_math(g1, c1)
        return (h0, c0, h1, c1)

    # Full unroll at small T; cap the unroll for long sequences.
    unroll = seq_len if seq_len <= 8 else 4
    _, _, h1, _ = jax.lax.fori_loop(0, seq_len, step, init, unroll=unroll)

    # ---- Final affine + log_softmax on lstmOut[-1] ---------------------------
    # W_lin / b_lin were zero-padded to 128 output lanes (lane-dense store);
    # only the first OUT columns are real, so mask them for the reductions.
    aff = jnp.dot(h1.astype(jnp.bfloat16), wlin_ref[...],
                  preferred_element_type=jnp.float32) + blin_ref[...]  # (B,128)
    col = jax.lax.broadcasted_iota(jnp.int32, aff.shape, 1)
    valid = col < OUT
    aff = jnp.where(valid, aff, jnp.float32(-1e30))
    m = jnp.max(aff, axis=1, keepdims=True)
    p = jnp.where(valid, jnp.exp(aff - m), jnp.float32(0.0))
    lse = jnp.log(jnp.sum(p, axis=1, keepdims=True)) + m
    out_ref[...] = aff - lse      # columns >= OUT are junk; wrapper slices them


def _reorder_gates(w):
    """Permute packed gate columns from PyTorch order [i, f, g, o] to
    [i, f, o, g] along the last (4H) axis."""
    i, f, g, o = jnp.split(w, 4, axis=-1)
    return jnp.concatenate([i, f, o, g], axis=-1)


def qawali_forward(x, params):
    """x: (T, B, F) float32. Returns (B, OUT) log-probabilities."""
    T, B, F = x.shape
    wih0, whh0, b0, wih1, whh1, b1, wlin, blin = params
    # NOTE: weight layout here is (in_features, 4H) with PyTorch gate order
    # [i, f, g, o]; importing real torch nn.LSTM weights ((4H, in_features))
    # requires a transpose first.

    # Pad x features to a lane multiple so the hoisted projection matmul is
    # lane-aligned; matching zero rows in W_ih0 make it a mathematical no-op.
    # (Off the recurrence critical path, so the padded-zero MACs are one-time.)
    F_pad = ((F + LANES - 1) // LANES) * LANES
    x_p = jnp.pad(x, ((0, 0), (0, 0), (0, F_pad - F)))
    wih0_p = jnp.pad(wih0, ((0, F_pad - F), (0, 0)))

    # Gate reorder + bf16 weights (f32 accumulation stays in-kernel).
    wih0_k = _reorder_gates(wih0_p).astype(jnp.bfloat16)
    whh0_k = _reorder_gates(whh0).astype(jnp.bfloat16)
    b0_k = _reorder_gates(b0)
    wih1_k = _reorder_gates(wih1).astype(jnp.bfloat16)
    whh1_k = _reorder_gates(whh1).astype(jnp.bfloat16)
    b1_k = _reorder_gates(b1)

    # Lane-dense output: pad Linear(H -> OUT) to 128 output lanes.
    wlin_k = jnp.pad(wlin, ((0, 0), (0, LANES - OUT))).astype(jnp.bfloat16)
    blin_k = jnp.pad(blin, ((0, 0), (0, LANES - OUT)))

    def full_spec(shape):
        return pl.BlockSpec(shape, lambda i: (0,) * len(shape))

    out = pl.pallas_call(
        qawali_kernel,
        out_shape=jax.ShapeDtypeStruct((B, LANES), jnp.float32),
        grid_spec=pltpu.PrefetchScalarGridSpec(
            num_scalar_prefetch=0,
            grid=(1,),                                        # single invocation
            in_specs=[
                full_spec((T, B, F_pad)),                     # whole x in VMEM
                full_spec((F_pad, 4 * HIDDEN)),
                full_spec((HIDDEN, 4 * HIDDEN)),
                full_spec((1, 4 * HIDDEN)),
                full_spec((HIDDEN, 4 * HIDDEN)),
                full_spec((HIDDEN, 4 * HIDDEN)),
                full_spec((1, 4 * HIDDEN)),
                full_spec((HIDDEN, LANES)),
                full_spec((1, LANES)),
            ],
            out_specs=pl.BlockSpec((B, LANES), lambda i: (0, 0)),
            scratch_shapes=[
                pltpu.VMEM((T, B, 4 * HIDDEN), jnp.float32),  # hoisted proj0
            ],
        ),
        compiler_params=pltpu.CompilerParams(
            dimension_semantics=("arbitrary",),
        ),
    )(x_p, wih0_k, whh0_k, b0_k, wih1_k, whh1_k, b1_k, wlin_k, blin_k)
    return out[:, :OUT]


# ----------------------------- references -----------------------------------
def _lstm_cell_ref(x, h, c, w_ih, w_hh, b, matmul_dtype):
    gates = (jnp.dot(x.astype(matmul_dtype), w_ih.astype(matmul_dtype),
                     preferred_element_type=jnp.float32)
             + jnp.dot(h.astype(matmul_dtype), w_hh.astype(matmul_dtype),
                       preferred_element_type=jnp.float32)
             + b)
    i = jax.nn.sigmoid(gates[:, 0 * HIDDEN:1 * HIDDEN])
    f = jax.nn.sigmoid(gates[:, 1 * HIDDEN:2 * HIDDEN])
    g = jnp.tanh(gates[:, 2 * HIDDEN:3 * HIDDEN])
    o = jax.nn.sigmoid(gates[:, 3 * HIDDEN:4 * HIDDEN])
    c_new = f * c + i * g
    h_new = o * jnp.tanh(c_new)
    return h_new, c_new


def qawali_forward_ref(x, params, matmul_dtype=jnp.bfloat16):
    """Pure-JAX reference (lax.scan, unfused weights, PyTorch gate order)."""
    wih0, whh0, b0, wih1, whh1, b1, wlin, blin = params
    T, B, F = x.shape
    h0 = jnp.zeros((B, HIDDEN), jnp.float32)
    c0 = jnp.zeros((B, HIDDEN), jnp.float32)
    h1 = jnp.zeros((B, HIDDEN), jnp.float32)
    c1 = jnp.zeros((B, HIDDEN), jnp.float32)

    def step(carry, x_t):
        h0, c0, h1, c1 = carry
        h0, c0 = _lstm_cell_ref(x_t, h0, c0, wih0, whh0, b0, matmul_dtype)
        h1, c1 = _lstm_cell_ref(h0, h1, c1, wih1, whh1, b1, matmul_dtype)
        return (h0, c0, h1, c1), None

    (h0, c0, h1, c1), _ = jax.lax.scan(step, (h0, c0, h1, c1), x)
    aff = jnp.dot(h1.astype(matmul_dtype), wlin.astype(matmul_dtype),
                  preferred_element_type=jnp.float32) + blin
    return jax.nn.log_softmax(aff, axis=1)


def init_params(key, num_features):
    """Deterministic params mimicking PyTorch nn.LSTM / nn.Linear uniform init.

    Layout: (in_features, 4H), gate order [i, f, g, o]; biases pre-summed."""
    k = 1.0 / jnp.sqrt(jnp.float32(HIDDEN))
    keys = jax.random.split(key, 12)
    u = lambda kk, shape, bound: jax.random.uniform(
        kk, shape, jnp.float32, minval=-bound, maxval=bound)

    wih0 = u(keys[0], (num_features, 4 * HIDDEN), k)
    whh0 = u(keys[1], (HIDDEN, 4 * HIDDEN), k)
    b0 = u(keys[2], (1, 4 * HIDDEN), k) + u(keys[3], (1, 4 * HIDDEN), k)
    wih1 = u(keys[4], (HIDDEN, 4 * HIDDEN), k)
    whh1 = u(keys[5], (HIDDEN, 4 * HIDDEN), k)
    b1 = u(keys[6], (1, 4 * HIDDEN), k) + u(keys[7], (1, 4 * HIDDEN), k)
    wlin = u(keys[8], (HIDDEN, OUT), k)
    blin = u(keys[9], (1, OUT), k)
    return (wih0, whh0, b0, wih1, whh1, b1, wlin, blin)


if __name__ == "__main__":
    SEQ, BATCH, FEAT = 8, 2, 16   # (T, B, numFeatures)

    key = jax.random.PRNGKey(0)
    k_x, k_p = jax.random.split(key)
    x = jax.random.normal(k_x, (SEQ, BATCH, FEAT), jnp.float32)
    params = init_params(k_p, FEAT)

    out = jax.block_until_ready(qawali_forward(x, params))
    assert out.shape == (BATCH, OUT)

    # Numerics-matched reference (bf16 matmul operands, f32 accumulation --
    # the same regime the kernel runs in).
    ref = jax.block_until_ready(qawali_forward_ref(x, params, jnp.bfloat16))
    assert jnp.allclose(out, ref, atol=1e-3, rtol=1e-3), (out, ref)

    # Loose sanity check against a full-f32 reference (PyTorch-style math).
    ref32 = jax.block_until_ready(qawali_forward_ref(x, params, jnp.float32))
    assert jnp.allclose(out, ref32, atol=5e-2, rtol=5e-2), (out, ref32)

    print("KERNEL_OK")
</pallas_src>

<mosaic_0001>
module attributes {stable_mosaic.version = 11 : i64} {
  func.func @qawali_kernel(%arg0: i32, %arg1: memref<8x2x128xf32, #tpu.memory_space<vmem>>, %arg2: memref<128x512xbf16, #tpu.memory_space<vmem>>, %arg3: memref<128x512xbf16, #tpu.memory_space<vmem>>, %arg4: memref<1x512xf32, #tpu.memory_space<vmem>>, %arg5: memref<128x512xbf16, #tpu.memory_space<vmem>>, %arg6: memref<128x512xbf16, #tpu.memory_space<vmem>>, %arg7: memref<1x512xf32, #tpu.memory_space<vmem>>, %arg8: memref<128x128xbf16, #tpu.memory_space<vmem>>, %arg9: memref<1x128xf32, #tpu.memory_space<vmem>>, %arg10: memref<2x128xf32, #tpu.memory_space<vmem>>, %arg11: memref<8x2x512xf32, #tpu.memory_space<vmem>>) attributes {dimension_semantics = [#tpu.dimension_semantics<arbitrary>], iteration_bounds = array<i64: 1>, scalar_prefetch = 0 : i64, scratch_operands = 1 : i64, tpu.core_type = #tpu.core_type<tc>, window_params = [{pipeline_mode = #tpu.pipeline_mode<synchronous>, transform_indices = @transform_0, window_bounds = array<i64: 8, 2, 128>}, {pipeline_mode = #tpu.pipeline_mode<synchronous>, transform_indices = @transform_1, window_bounds = array<i64: 128, 512>}, {pipeline_mode = #tpu.pipeline_mode<synchronous>, transform_indices = @transform_2, window_bounds = array<i64: 128, 512>}, {pipeline_mode = #tpu.pipeline_mode<synchronous>, transform_indices = @transform_3, window_bounds = array<i64: 1, 512>}, {pipeline_mode = #tpu.pipeline_mode<synchronous>, transform_indices = @transform_4, window_bounds = array<i64: 128, 512>}, {pipeline_mode = #tpu.pipeline_mode<synchronous>, transform_indices = @transform_5, window_bounds = array<i64: 128, 512>}, {pipeline_mode = #tpu.pipeline_mode<synchronous>, transform_indices = @transform_6, window_bounds = array<i64: 1, 512>}, {pipeline_mode = #tpu.pipeline_mode<synchronous>, transform_indices = @transform_7, window_bounds = array<i64: 128, 128>}, {pipeline_mode = #tpu.pipeline_mode<synchronous>, transform_indices = @transform_8, window_bounds = array<i64: 1, 128>}, {pipeline_mode = #tpu.pipeline_mode<synchronous>, transform_indices = @transform_9, window_bounds = array<i64: 2, 128>}]} {
    %c0 = arith.constant 0 : index
    %c0_0 = arith.constant 0 : index
    %0 = vector.load %arg2[%c0, %c0_0] : memref<128x512xbf16, #tpu.memory_space<vmem>>, vector<128x512xbf16>
    %c0_1 = arith.constant 0 : index
    %c0_2 = arith.constant 0 : index
    %1 = vector.load %arg3[%c0_1, %c0_2] : memref<128x512xbf16, #tpu.memory_space<vmem>>, vector<128x512xbf16>
    %c0_3 = arith.constant 0 : index
    %c0_4 = arith.constant 0 : index
    %2 = vector.load %arg4[%c0_3, %c0_4] : memref<1x512xf32, #tpu.memory_space<vmem>>, vector<1x512xf32>
    %c0_5 = arith.constant 0 : index
    %c0_6 = arith.constant 0 : index
    %3 = vector.load %arg5[%c0_5, %c0_6] : memref<128x512xbf16, #tpu.memory_space<vmem>>, vector<128x512xbf16>
    %c0_7 = arith.constant 0 : index
    %c0_8 = arith.constant 0 : index
    %4 = vector.load %arg6[%c0_7, %c0_8] : memref<128x512xbf16, #tpu.memory_space<vmem>>, vector<128x512xbf16>
    %c0_9 = arith.constant 0 : index
    %c0_10 = arith.constant 0 : index
    %5 = vector.load %arg7[%c0_9, %c0_10] : memref<1x512xf32, #tpu.memory_space<vmem>>, vector<1x512xf32>
    %c0_11 = arith.constant 0 : index
    %c0_12 = arith.constant 0 : index
    %c0_13 = arith.constant 0 : index
    %6 = vector.load %arg1[%c0_11, %c0_12, %c0_13] : memref<8x2x128xf32, #tpu.memory_space<vmem>>, vector<1x2x128xf32>
    %7 = vector.shape_cast %6 : vector<1x2x128xf32> to vector<2x128xf32>
    %8 = arith.truncf %7 : vector<2x128xf32> to vector<2x128xbf16>
    %cst = arith.constant dense<0.000000e+00> : vector<2x512xf32>
    %9 = tpu.matmul %8, %0, %cst {dimension_numbers = #tpu.dot_dimension_numbers<[1], [0], [0], [1], [0, 0, 1, 1], [], []>} : vector<2x128xbf16>, vector<128x512xbf16>, vector<2x512xf32> -> vector<2x512xf32>
    %10 = vector.broadcast %2 : vector<1x512xf32> to vector<2x512xf32>
    %11 = arith.addf %9, %10 : vector<2x512xf32>
    %c0_14 = arith.constant 0 : index
    %c0_15 = arith.constant 0 : index
    %c0_16 = arith.constant 0 : index
    %12 = vector.load %arg11[%c0_14, %c0_15, %c0_16] : memref<8x2x512xf32, #tpu.memory_space<vmem>>, vector<1x2x512xf32>
    %13 = vector.shape_cast %12 : vector<1x2x512xf32> to vector<2x512xf32>
    %14 = vector.shape_cast %11 : vector<2x512xf32> to vector<1x2x512xf32>
    tpu.vector_store %arg11[%c0_14, %c0_15, %c0_16], %14 {strides = array<i32>} : memref<8x2x512xf32, #tpu.memory_space<vmem>>, vector<1x2x512xf32>,
    %c1 = arith.constant 1 : index
    %c0_17 = arith.constant 0 : index
    %c0_18 = arith.constant 0 : index
    %15 = vector.load %arg1[%c1, %c0_17, %c0_18] : memref<8x2x128xf32, #tpu.memory_space<vmem>>, vector<1x2x128xf32>
    %16 = vector.shape_cast %15 : vector<1x2x128xf32> to vector<2x128xf32>
    %17 = arith.truncf %16 : vector<2x128xf32> to vector<2x128xbf16>
    %cst_19 = arith.constant dense<0.000000e+00> : vector<2x512xf32>
    %18 = tpu.matmul %17, %0, %cst_19 {dimension_numbers = #tpu.dot_dimension_numbers<[1], [0], [0], [1], [0, 0, 1, 1], [], []>} : vector<2x128xbf16>, vector<128x512xbf16>, vector<2x512xf32> -> vector<2x512xf32>
    %19 = vector.broadcast %2 : vector<1x512xf32> to vector<2x512xf32>
    %20 = arith.addf %18, %19 : vector<2x512xf32>
    %c1_20 = arith.constant 1 : index
    %c0_21 = arith.constant 0 : index
    %c0_22 = arith.constant 0 : index
    %21 = vector.load %arg11[%c1_20, %c0_21, %c0_22] : memref<8x2x512xf32, #tpu.memory_space<vmem>>, vector<1x2x512xf32>
    %22 = vector.shape_cast %21 : vector<1x2x512xf32> to vector<2x512xf32>
    %23 = vector.shape_cast %20 : vector<2x512xf32> to vector<1x2x512xf32>
    tpu.vector_store %arg11[%c1_20, %c0_21, %c0_22], %23 {strides = array<i32>} : memref<8x2x512xf32, #tpu.memory_space<vmem>>, vector<1x2x512xf32>,
    %c2 = arith.constant 2 : index
    %c0_23 = arith.constant 0 : index
    %c0_24 = arith.constant 0 : index
    %24 = vector.load %arg1[%c2, %c0_23, %c0_24] : memref<8x2x128xf32, #tpu.memory_space<vmem>>, vector<1x2x128xf32>
    %25 = vector.shape_cast %24 : vector<1x2x128xf32> to vector<2x128xf32>
    %26 = arith.truncf %25 : vector<2x128xf32> to vector<2x128xbf16>
    %cst_25 = arith.constant dense<0.000000e+00> : vector<2x512xf32>
    %27 = tpu.matmul %26, %0, %cst_25 {dimension_numbers = #tpu.dot_dimension_numbers<[1], [0], [0], [1], [0, 0, 1, 1], [], []>} : vector<2x128xbf16>, vector<128x512xbf16>, vector<2x512xf32> -> vector<2x512xf32>
    %28 = vector.broadcast %2 : vector<1x512xf32> to vector<2x512xf32>
    %29 = arith.addf %27, %28 : vector<2x512xf32>
    %c2_26 = arith.constant 2 : index
    %c0_27 = arith.constant 0 : index
    %c0_28 = arith.constant 0 : index
    %30 = vector.load %arg11[%c2_26, %c0_27, %c0_28] : memref<8x2x512xf32, #tpu.memory_space<vmem>>, vector<1x2x512xf32>
    %31 = vector.shape_cast %30 : vector<1x2x512xf32> to vector<2x512xf32>
    %32 = vector.shape_cast %29 : vector<2x512xf32> to vector<1x2x512xf32>
    tpu.vector_store %arg11[%c2_26, %c0_27, %c0_28], %32 {strides = array<i32>} : memref<8x2x512xf32, #tpu.memory_space<vmem>>, vector<1x2x512xf32>,
    %c3 = arith.constant 3 : index
    %c0_29 = arith.constant 0 : index
    %c0_30 = arith.constant 0 : index
    %33 = vector.load %arg1[%c3, %c0_29, %c0_30] : memref<8x2x128xf32, #tpu.memory_space<vmem>>, vector<1x2x128xf32>
    %34 = vector.shape_cast %33 : vector<1x2x128xf32> to vector<2x128xf32>
    %35 = arith.truncf %34 : vector<2x128xf32> to vector<2x128xbf16>
    %cst_31 = arith.constant dense<0.000000e+00> : vector<2x512xf32>
    %36 = tpu.matmul %35, %0, %cst_31 {dimension_numbers = #tpu.dot_dimension_numbers<[1], [0], [0], [1], [0, 0, 1, 1], [], []>} : vector<2x128xbf16>, vector<128x512xbf16>, vector<2x512xf32> -> vector<2x512xf32>
    %37 = vector.broadcast %2 : vector<1x512xf32> to vector<2x512xf32>
    %38 = arith.addf %36, %37 : vector<2x512xf32>
    %c3_32 = arith.constant 3 : index
    %c0_33 = arith.constant 0 : index
    %c0_34 = arith.constant 0 : index
    %39 = vector.load %arg11[%c3_32, %c0_33, %c0_34] : memref<8x2x512xf32, #tpu.memory_space<vmem>>, vector<1x2x512xf32>
    %40 = vector.shape_cast %39 : vector<1x2x512xf32> to vector<2x512xf32>
    %41 = vector.shape_cast %38 : vector<2x512xf32> to vector<1x2x512xf32>
    tpu.vector_store %arg11[%c3_32, %c0_33, %c0_34], %41 {strides = array<i32>} : memref<8x2x512xf32, #tpu.memory_space<vmem>>, vector<1x2x512xf32>,
    %c4 = arith.constant 4 : index
    %c0_35 = arith.constant 0 : index
    %c0_36 = arith.constant 0 : index
    %42 = vector.load %arg1[%c4, %c0_35, %c0_36] : memref<8x2x128xf32, #tpu.memory_space<vmem>>, vector<1x2x128xf32>
    %43 = vector.shape_cast %42 : vector<1x2x128xf32> to vector<2x128xf32>
    %44 = arith.truncf %43 : vector<2x128xf32> to vector<2x128xbf16>
    %cst_37 = arith.constant dense<0.000000e+00> : vector<2x512xf32>
    %45 = tpu.matmul %44, %0, %cst_37 {dimension_numbers = #tpu.dot_dimension_numbers<[1], [0], [0], [1], [0, 0, 1, 1], [], []>} : vector<2x128xbf16>, vector<128x512xbf16>, vector<2x512xf32> -> vector<2x512xf32>
    %46 = vector.broadcast %2 : vector<1x512xf32> to vector<2x512xf32>
    %47 = arith.addf %45, %46 : vector<2x512xf32>
    %c4_38 = arith.constant 4 : index
    %c0_39 = arith.constant 0 : index
    %c0_40 = arith.constant 0 : index
    %48 = vector.load %arg11[%c4_38, %c0_39, %c0_40] : memref<8x2x512xf32, #tpu.memory_space<vmem>>, vector<1x2x512xf32>
    %49 = vector.shape_cast %48 : vector<1x2x512xf32> to vector<2x512xf32>
    %50 = vector.shape_cast %47 : vector<2x512xf32> to vector<1x2x512xf32>
    tpu.vector_store %arg11[%c4_38, %c0_39, %c0_40], %50 {strides = array<i32>} : memref<8x2x512xf32, #tpu.memory_space<vmem>>, vector<1x2x512xf32>,
    %c5 = arith.constant 5 : index
    %c0_41 = arith.constant 0 : index
    %c0_42 = arith.constant 0 : index
    %51 = vector.load %arg1[%c5, %c0_41, %c0_42] : memref<8x2x128xf32, #tpu.memory_space<vmem>>, vector<1x2x128xf32>
    %52 = vector.shape_cast %51 : vector<1x2x128xf32> to vector<2x128xf32>
    %53 = arith.truncf %52 : vector<2x128xf32> to vector<2x128xbf16>
    %cst_43 = arith.constant dense<0.000000e+00> : vector<2x512xf32>
    %54 = tpu.matmul %53, %0, %cst_43 {dimension_numbers = #tpu.dot_dimension_numbers<[1], [0], [0], [1], [0, 0, 1, 1], [], []>} : vector<2x128xbf16>, vector<128x512xbf16>, vector<2x512xf32> -> vector<2x512xf32>
    %55 = vector.broadcast %2 : vector<1x512xf32> to vector<2x512xf32>
    %56 = arith.addf %54, %55 : vector<2x512xf32>
    %c5_44 = arith.constant 5 : index
    %c0_45 = arith.constant 0 : index
    %c0_46 = arith.constant 0 : index
    %57 = vector.load %arg11[%c5_44, %c0_45, %c0_46] : memref<8x2x512xf32, #tpu.memory_space<vmem>>, vector<1x2x512xf32>
    %58 = vector.shape_cast %57 : vector<1x2x512xf32> to vector<2x512xf32>
    %59 = vector.shape_cast %56 : vector<2x512xf32> to vector<1x2x512xf32>
    tpu.vector_store %arg11[%c5_44, %c0_45, %c0_46], %59 {strides = array<i32>} : memref<8x2x512xf32, #tpu.memory_space<vmem>>, vector<1x2x512xf32>,
    %c6 = arith.constant 6 : index
    %c0_47 = arith.constant 0 : index
    %c0_48 = arith.constant 0 : index
    %60 = vector.load %arg1[%c6, %c0_47, %c0_48] : memref<8x2x128xf32, #tpu.memory_space<vmem>>, vector<1x2x128xf32>
    %61 = vector.shape_cast %60 : vector<1x2x128xf32> to vector<2x128xf32>
    %62 = arith.truncf %61 : vector<2x128xf32> to vector<2x128xbf16>
    %cst_49 = arith.constant dense<0.000000e+00> : vector<2x512xf32>
    %63 = tpu.matmul %62, %0, %cst_49 {dimension_numbers = #tpu.dot_dimension_numbers<[1], [0], [0], [1], [0, 0, 1, 1], [], []>} : vector<2x128xbf16>, vector<128x512xbf16>, vector<2x512xf32> -> vector<2x512xf32>
    %64 = vector.broadcast %2 : vector<1x512xf32> to vector<2x512xf32>
    %65 = arith.addf %63, %64 : vector<2x512xf32>
    %c6_50 = arith.constant 6 : index
    %c0_51 = arith.constant 0 : index
    %c0_52 = arith.constant 0 : index
    %66 = vector.load %arg11[%c6_50, %c0_51, %c0_52] : memref<8x2x512xf32, #tpu.memory_space<vmem>>, vector<1x2x512xf32>
    %67 = vector.shape_cast %66 : vector<1x2x512xf32> to vector<2x512xf32>
    %68 = vector.shape_cast %65 : vector<2x512xf32> to vector<1x2x512xf32>
    tpu.vector_store %arg11[%c6_50, %c0_51, %c0_52], %68 {strides = array<i32>} : memref<8x2x512xf32, #tpu.memory_space<vmem>>, vector<1x2x512xf32>,
    %c7 = arith.constant 7 : index
    %c0_53 = arith.constant 0 : index
    %c0_54 = arith.constant 0 : index
    %69 = vector.load %arg1[%c7, %c0_53, %c0_54] : memref<8x2x128xf32, #tpu.memory_space<vmem>>, vector<1x2x128xf32>
    %70 = vector.shape_cast %69 : vector<1x2x128xf32> to vector<2x128xf32>
    %71 = arith.truncf %70 : vector<2x128xf32> to vector<2x128xbf16>
    %cst_55 = arith.constant dense<0.000000e+00> : vector<2x512xf32>
    %72 = tpu.matmul %71, %0, %cst_55 {dimension_numbers = #tpu.dot_dimension_numbers<[1], [0], [0], [1], [0, 0, 1, 1], [], []>} : vector<2x128xbf16>, vector<128x512xbf16>, vector<2x512xf32> -> vector<2x512xf32>
    %73 = vector.broadcast %2 : vector<1x512xf32> to vector<2x512xf32>
    %74 = arith.addf %72, %73 : vector<2x512xf32>
    %c7_56 = arith.constant 7 : index
    %c0_57 = arith.constant 0 : index
    %c0_58 = arith.constant 0 : index
    %75 = vector.load %arg11[%c7_56, %c0_57, %c0_58] : memref<8x2x512xf32, #tpu.memory_space<vmem>>, vector<1x2x512xf32>
    %76 = vector.shape_cast %75 : vector<1x2x512xf32> to vector<2x512xf32>
    %77 = vector.shape_cast %74 : vector<2x512xf32> to vector<1x2x512xf32>
    tpu.vector_store %arg11[%c7_56, %c0_57, %c0_58], %77 {strides = array<i32>} : memref<8x2x512xf32, #tpu.memory_space<vmem>>, vector<1x2x512xf32>,
    %cst_59 = arith.constant 0.000000e+00 : f32
    %78 = vector.broadcast %cst_59 : f32 to vector<2x128xf32>
    %c0_i32 = arith.constant 0 : i32
    %79 = arith.index_cast %c0_i32 : i32 to index
    %c0_60 = arith.constant 0 : index
    %c0_61 = arith.constant 0 : index
    %80 = vector.load %arg11[%79, %c0_60, %c0_61] : memref<8x2x512xf32, #tpu.memory_space<vmem>>, vector<1x2x512xf32>
    %81 = vector.shape_cast %80 : vector<1x2x512xf32> to vector<2x512xf32>
    %82 = arith.truncf %78 : vector<2x128xf32> to vector<2x128xbf16>
    %cst_62 = arith.constant dense<0.000000e+00> : vector<2x512xf32>
    %83 = tpu.matmul %82, %1, %cst_62 {dimension_numbers = #tpu.dot_dimension_numbers<[1], [0], [0], [1], [0, 0, 1, 1], [], []>} : vector<2x128xbf16>, vector<128x512xbf16>, vector<2x512xf32> -> vector<2x512xf32>
    %84 = arith.addf %81, %83 : vector<2x512xf32>
    %85 = vector.extract_strided_slice %84 {offsets = [0, 0], sizes = [2, 384], strides = [1, 1]} : vector<2x512xf32> to vector<2x384xf32>
    %86 = arith.negf %85 : vector<2x384xf32>
    %87 = math.exp %86 : vector<2x384xf32>
    %cst_63 = arith.constant 1.000000e+00 : f32
    %88 = vector.broadcast %cst_63 : f32 to vector<2x384xf32>
    %89 = arith.addf %88, %87 : vector<2x384xf32>
    %90 = arith.divf %88, %89 : vector<2x384xf32>
    %91 = vector.extract_strided_slice %90 {offsets = [0, 0], sizes = [2, 128], strides = [1, 1]} : vector<2x384xf32> to vector<2x128xf32>
    %92 = vector.extract_strided_slice %90 {offsets = [0, 128], sizes = [2, 128], strides = [1, 1]} : vector<2x384xf32> to vector<2x128xf32>
    %93 = vector.extract_strided_slice %90 {offsets = [0, 256], sizes = [2, 128], strides = [1, 1]} : vector<2x384xf32> to vector<2x128xf32>
    %94 = vector.extract_strided_slice %84 {offsets = [0, 384], sizes = [2, 128], strides = [1, 1]} : vector<2x512xf32> to vector<2x128xf32>
    %95 = math.tanh %94 : vector<2x128xf32>
    %96 = arith.mulf %92, %78 : vector<2x128xf32>
    %97 = arith.mulf %91, %95 : vector<2x128xf32>
    %98 = arith.addf %96, %97 : vector<2x128xf32>
    %99 = math.tanh %98 : vector<2x128xf32>
    %100 = arith.mulf %93, %99 : vector<2x128xf32>
    %101 = arith.truncf %100 : vector<2x128xf32> to vector<2x128xbf16>
    %cst_64 = arith.constant dense<0.000000e+00> : vector<2x512xf32>
    %102 = tpu.matmul %101, %3, %cst_64 {dimension_numbers = #tpu.dot_dimension_numbers<[1], [0], [0], [1], [0, 0, 1, 1], [], []>} : vector<2x128xbf16>, vector<128x512xbf16>, vector<2x512xf32> -> vector<2x512xf32>
    %103 = arith.truncf %78 : vector<2x128xf32> to vector<2x128xbf16>
    %cst_65 = arith.constant dense<0.000000e+00> : vector<2x512xf32>
    %104 = tpu.matmul %103, %4, %cst_65 {dimension_numbers = #tpu.dot_dimension_numbers<[1], [0], [0], [1], [0, 0, 1, 1], [], []>} : vector<2x128xbf16>, vector<128x512xbf16>, vector<2x512xf32> -> vector<2x512xf32>
    %105 = arith.addf %102, %104 : vector<2x512xf32>
    %106 = vector.broadcast %5 : vector<1x512xf32> to vector<2x512xf32>
    %107 = arith.addf %105, %106 : vector<2x512xf32>
    %108 = vector.extract_strided_slice %107 {offsets = [0, 0], sizes = [2, 384], strides = [1, 1]} : vector<2x512xf32> to vector<2x384xf32>
    %109 = arith.negf %108 : vector<2x384xf32>
    %110 = math.exp %109 : vector<2x384xf32>
    %cst_66 = arith.constant 1.000000e+00 : f32
    %111 = vector.broadcast %cst_66 : f32 to vector<2x384xf32>
    %112 = arith.addf %111, %110 : vector<2x384xf32>
    %113 = arith.divf %111, %112 : vector<2x384xf32>
    %114 = vector.extract_strided_slice %113 {offsets = [0, 0], sizes = [2, 128], strides = [1, 1]} : vector<2x384xf32> to vector<2x128xf32>
    %115 = vector.extract_strided_slice %113 {offsets = [0, 128], sizes = [2, 128], strides = [1, 1]} : vector<2x384xf32> to vector<2x128xf32>
    %116 = vector.extract_strided_slice %113 {offsets = [0, 256], sizes = [2, 128], strides = [1, 1]} : vector<2x384xf32> to vector<2x128xf32>
    %117 = vector.extract_strided_slice %107 {offsets = [0, 384], sizes = [2, 128], strides = [1, 1]} : vector<2x512xf32> to vector<2x128xf32>
    %118 = math.tanh %117 : vector<2x128xf32>
    %119 = arith.mulf %115, %78 : vector<2x128xf32>
    %120 = arith.mulf %114, %118 : vector<2x128xf32>
    %121 = arith.addf %119, %120 : vector<2x128xf32>
    %122 = math.tanh %121 : vector<2x128xf32>
    %123 = arith.mulf %116, %122 : vector<2x128xf32>
    %c1_i32 = arith.constant 1 : i32
    %124 = arith.index_cast %c1_i32 : i32 to index
    %c0_67 = arith.constant 0 : index
    %c0_68 = arith.constant 0 : index
    %125 = vector.load %arg11[%124, %c0_67, %c0_68] : memref<8x2x512xf32, #tpu.memory_space<vmem>>, vector<1x2x512xf32>
    %126 = vector.shape_cast %125 : vector<1x2x512xf32> to vector<2x512xf32>
    %127 = arith.truncf %100 : vector<2x128xf32> to vector<2x128xbf16>
    %cst_69 = arith.constant dense<0.000000e+00> : vector<2x512xf32>
    %128 = tpu.matmul %127, %1, %cst_69 {dimension_numbers = #tpu.dot_dimension_numbers<[1], [0], [0], [1], [0, 0, 1, 1], [], []>} : vector<2x128xbf16>, vector<128x512xbf16>, vector<2x512xf32> -> vector<2x512xf32>
    %129 = arith.addf %126, %128 : vector<2x512xf32>
    %130 = vector.extract_strided_slice %129 {offsets = [0, 0], sizes = [2, 384], strides = [1, 1]} : vector<2x512xf32> to vector<2x384xf32>
    %131 = arith.negf %130 : vector<2x384xf32>
    %132 = math.exp %131 : vector<2x384xf32>
    %cst_70 = arith.constant 1.000000e+00 : f32
    %133 = vector.broadcast %cst_70 : f32 to vector<2x384xf32>
    %134 = arith.addf %133, %132 : vector<2x384xf32>
    %135 = arith.divf %133, %134 : vector<2x384xf32>
    %136 = vector.extract_strided_slice %135 {offsets = [0, 0], sizes = [2, 128], strides = [1, 1]} : vector<2x384xf32> to vector<2x128xf32>
    %137 = vector.extract_strided_slice %135 {offsets = [0, 128], sizes = [2, 128], strides = [1, 1]} : vector<2x384xf32> to vector<2x128xf32>
    %138 = vector.extract_strided_slice %135 {offsets = [0, 256], sizes = [2, 128], strides = [1, 1]} : vector<2x384xf32> to vector<2x128xf32>
    %139 = vector.extract_strided_slice %129 {offsets = [0, 384], sizes = [2, 128], strides = [1, 1]} : vector<2x512xf32> to vector<2x128xf32>
    %140 = math.tanh %139 : vector<2x128xf32>
    %141 = arith.mulf %137, %98 : vector<2x128xf32>
    %142 = arith.mulf %136, %140 : vector<2x128xf32>
    %143 = arith.addf %141, %142 : vector<2x128xf32>
    %144 = math.tanh %143 : vector<2x128xf32>
    %145 = arith.mulf %138, %144 : vector<2x128xf32>
    %146 = arith.truncf %145 : vector<2x128xf32> to vector<2x128xbf16>
    %cst_71 = arith.constant dense<0.000000e+00> : vector<2x512xf32>
    %147 = tpu.matmul %146, %3, %cst_71 {dimension_numbers = #tpu.dot_dimension_numbers<[1], [0], [0], [1], [0, 0, 1, 1], [], []>} : vector<2x128xbf16>, vector<128x512xbf16>, vector<2x512xf32> -> vector<2x512xf32>
    %148 = arith.truncf %123 : vector<2x128xf32> to vector<2x128xbf16>
    %cst_72 = arith.constant dense<0.000000e+00> : vector<2x512xf32>
    %149 = tpu.matmul %148, %4, %cst_72 {dimension_numbers = #tpu.dot_dimension_numbers<[1], [0], [0], [1], [0, 0, 1, 1], [], []>} : vector<2x128xbf16>, vector<128x512xbf16>, vector<2x512xf32> -> vector<2x512xf32>
    %150 = arith.addf %147, %149 : vector<2x512xf32>
    %151 = vector.broadcast %5 : vector<1x512xf32> to vector<2x512xf32>
    %152 = arith.addf %150, %151 : vector<2x512xf32>
    %153 = vector.extract_strided_slice %152 {offsets = [0, 0], sizes = [2, 384], strides = [1, 1]} : vector<2x512xf32> to vector<2x384xf32>
    %154 = arith.negf %153 : vector<2x384xf32>
    %155 = math.exp %154 : vector<2x384xf32>
    %cst_73 = arith.constant 1.000000e+00 : f32
    %156 = vector.broadcast %cst_73 : f32 to vector<2x384xf32>
    %157 = arith.addf %156, %155 : vector<2x384xf32>
    %158 = arith.divf %156, %157 : vector<2x384xf32>
    %159 = vector.extract_strided_slice %158 {offsets = [0, 0], sizes = [2, 128], strides = [1, 1]} : vector<2x384xf32> to vector<2x128xf32>
    %160 = vector.extract_strided_slice %158 {offsets = [0, 128], sizes = [2, 128], strides = [1, 1]} : vector<2x384xf32> to vector<2x128xf32>
    %161 = vector.extract_strided_slice %158 {offsets = [0, 256], sizes = [2, 128], strides = [1, 1]} : vector<2x384xf32> to vector<2x128xf32>
    %162 = vector.extract_strided_slice %152 {offsets = [0, 384], sizes = [2, 128], strides = [1, 1]} : vector<2x512xf32> to vector<2x128xf32>
    %163 = math.tanh %162 : vector<2x128xf32>
    %164 = arith.mulf %160, %121 : vector<2x128xf32>
    %165 = arith.mulf %159, %163 : vector<2x128xf32>
    %166 = arith.addf %164, %165 : vector<2x128xf32>
    %167 = math.tanh %166 : vector<2x128xf32>
    %168 = arith.mulf %161, %167 : vector<2x128xf32>
    %c2_i32 = arith.constant 2 : i32
    %169 = arith.index_cast %c2_i32 : i32 to index
    %c0_74 = arith.constant 0 : index
    %c0_75 = arith.constant 0 : index
    %170 = vector.load %arg11[%169, %c0_74, %c0_75] : memref<8x2x512xf32, #tpu.memory_space<vmem>>, vector<1x2x512xf32>
    %171 = vector.shape_cast %170 : vector<1x2x512xf32> to vector<2x512xf32>
    %172 = arith.truncf %145 : vector<2x128xf32> to vector<2x128xbf16>
    %cst_76 = arith.constant dense<0.000000e+00> : vector<2x512xf32>
    %173 = tpu.matmul %172, %1, %cst_76 {dimension_numbers = #tpu.dot_dimension_numbers<[1], [0], [0], [1], [0, 0, 1, 1], [], []>} : vector<2x128xbf16>, vector<128x512xbf16>, vector<2x512xf32> -> vector<2x512xf32>
    %174 = arith.addf %171, %173 : vector<2x512xf32>
    %175 = vector.extract_strided_slice %174 {offsets = [0, 0], sizes = [2, 384], strides = [1, 1]} : vector<2x512xf32> to vector<2x384xf32>
    %176 = arith.negf %175 : vector<2x384xf32>
    %177 = math.exp %176 : vector<2x384xf32>
    %cst_77 = arith.constant 1.000000e+00 : f32
    %178 = vector.broadcast %cst_77 : f32 to vector<2x384xf32>
    %179 = arith.addf %178, %177 : vector<2x384xf32>
    %180 = arith.divf %178, %179 : vector<2x384xf32>
    %181 = vector.extract_strided_slice %180 {offsets = [0, 0], sizes = [2, 128], strides = [1, 1]} : vector<2x384xf32> to vector<2x128xf32>
    %182 = vector.extract_strided_slice %180 {offsets = [0, 128], sizes = [2, 128], strides = [1, 1]} : vector<2x384xf32> to vector<2x128xf32>
    %183 = vector.extract_strided_slice %180 {offsets = [0, 256], sizes = [2, 128], strides = [1, 1]} : vector<2x384xf32> to vector<2x128xf32>
    %184 = vector.extract_strided_slice %174 {offsets = [0, 384], sizes = [2, 128], strides = [1, 1]} : vector<2x512xf32> to vector<2x128xf32>
    %185 = math.tanh %184 : vector<2x128xf32>
    %186 = arith.mulf %182, %143 : vector<2x128xf32>
    %187 = arith.mulf %181, %185 : vector<2x128xf32>
    %188 = arith.addf %186, %187 : vector<2x128xf32>
    %189 = math.tanh %188 : vector<2x128xf32>
    %190 = arith.mulf %183, %189 : vector<2x128xf32>
    %191 = arith.truncf %190 : vector<2x128xf32> to vector<2x128xbf16>
    %cst_78 = arith.constant dense<0.000000e+00> : vector<2x512xf32>
    %192 = tpu.matmul %191, %3, %cst_78 {dimension_numbers = #tpu.dot_dimension_numbers<[1], [0], [0], [1], [0, 0, 1, 1], [], []>} : vector<2x128xbf16>, vector<128x512xbf16>, vector<2x512xf32> -> vector<2x512xf32>
    %193 = arith.truncf %168 : vector<2x128xf32> to vector<2x128xbf16>
    %cst_79 = arith.constant dense<0.000000e+00> : vector<2x512xf32>
    %194 = tpu.matmul %193, %4, %cst_79 {dimension_numbers = #tpu.dot_dimension_numbers<[1], [0], [0], [1], [0, 0, 1, 1], [], []>} : vector<2x128xbf16>, vector<128x512xbf16>, vector<2x512xf32> -> vector<2x512xf32>
    %195 = arith.addf %192, %194 : vector<2x512xf32>
    %196 = vector.broadcast %5 : vector<1x512xf32> to vector<2x512xf32>
    %197 = arith.addf %195, %196 : vector<2x512xf32>
    %198 = vector.extract_strided_slice %197 {offsets = [0, 0], sizes = [2, 384], strides = [1, 1]} : vector<2x512xf32> to vector<2x384xf32>
    %199 = arith.negf %198 : vector<2x384xf32>
    %200 = math.exp %199 : vector<2x384xf32>
    %cst_80 = arith.constant 1.000000e+00 : f32
    %201 = vector.broadcast %cst_80 : f32 to vector<2x384xf32>
    %202 = arith.addf %201, %200 : vector<2x384xf32>
    %203 = arith.divf %201, %202 : vector<2x384xf32>
    %204 = vector.extract_strided_slice %203 {offsets = [0, 0], sizes = [2, 128], strides = [1, 1]} : vector<2x384xf32> to vector<2x128xf32>
    %205 = vector.extract_strided_slice %203 {offsets = [0, 128], sizes = [2, 128], strides = [1, 1]} : vector<2x384xf32> to vector<2x128xf32>
    %206 = vector.extract_strided_slice %203 {offsets = [0, 256], sizes = [2, 128], strides = [1, 1]} : vector<2x384xf32> to vector<2x128xf32>
    %207 = vector.extract_strided_slice %197 {offsets = [0, 384], sizes = [2, 128], strides = [1, 1]} : vector<2x512xf32> to vector<2x128xf32>
    %208 = math.tanh %207 : vector<2x128xf32>
    %209 = arith.mulf %205, %166 : vector<2x128xf32>
    %210 = arith.mulf %204, %208 : vector<2x128xf32>
    %211 = arith.addf %209, %210 : vector<2x128xf32>
    %212 = math.tanh %211 : vector<2x128xf32>
    %213 = arith.mulf %206, %212 : vector<2x128xf32>
    %c3_i32 = arith.constant 3 : i32
    %214 = arith.index_cast %c3_i32 : i32 to index
    %c0_81 = arith.constant 0 : index
    %c0_82 = arith.constant 0 : index
    %215 = vector.load %arg11[%214, %c0_81, %c0_82] : memref<8x2x512xf32, #tpu.memory_space<vmem>>, vector<1x2x512xf32>
    %216 = vector.shape_cast %215 : vector<1x2x512xf32> to vector<2x512xf32>
    %217 = arith.truncf %190 : vector<2x128xf32> to vector<2x128xbf16>
    %cst_83 = arith.constant dense<0.000000e+00> : vector<2x512xf32>
    %218 = tpu.matmul %217, %1, %cst_83 {dimension_numbers = #tpu.dot_dimension_numbers<[1], [0], [0], [1], [0, 0, 1, 1], [], []>} : vector<2x128xbf16>, vector<128x512xbf16>, vector<2x512xf32> -> vector<2x512xf32>
    %219 = arith.addf %216, %218 : vector<2x512xf32>
    %220 = vector.extract_strided_slice %219 {offsets = [0, 0], sizes = [2, 384], strides = [1, 1]} : vector<2x512xf32> to vector<2x384xf32>
    %221 = arith.negf %220 : vector<2x384xf32>
    %222 = math.exp %221 : vector<2x384xf32>
    %cst_84 = arith.constant 1.000000e+00 : f32
    %223 = vector.broadcast %cst_84 : f32 to vector<2x384xf32>
    %224 = arith.addf %223, %222 : vector<2x384xf32>
    %225 = arith.divf %223, %224 : vector<2x384xf32>
    %226 = vector.extract_strided_slice %225 {offsets = [0, 0], sizes = [2, 128], strides = [1, 1]} : vector<2x384xf32> to vector<2x128xf32>
    %227 = vector.extract_strided_slice %225 {offsets = [0, 128], sizes = [2, 128], strides = [1, 1]} : vector<2x384xf32> to vector<2x128xf32>
    %228 = vector.extract_strided_slice %225 {offsets = [0, 256], sizes = [2, 128], strides = [1, 1]} : vector<2x384xf32> to vector<2x128xf32>
    %229 = vector.extract_strided_slice %219 {offsets = [0, 384], sizes = [2, 128], strides = [1, 1]} : vector<2x512xf32> to vector<2x128xf32>
    %230 = math.tanh %229 : vector<2x128xf32>
    %231 = arith.mulf %227, %188 : vector<2x128xf32>
    %232 = arith.mulf %226, %230 : vector<2x128xf32>
    %233 = arith.addf %231, %232 : vector<2x128xf32>
    %234 = math.tanh %233 : vector<2x128xf32>
    %235 = arith.mulf %228, %234 : vector<2x128xf32>
    %236 = arith.truncf %235 : vector<2x128xf32> to vector<2x128xbf16>
    %cst_85 = arith.constant dense<0.000000e+00> : vector<2x512xf32>
    %237 = tpu.matmul %236, %3, %cst_85 {dimension_numbers = #tpu.dot_dimension_numbers<[1], [0], [0], [1], [0, 0, 1, 1], [], []>} : vector<2x128xbf16>, vector<128x512xbf16>, vector<2x512xf32> -> vector<2x512xf32>
    %238 = arith.truncf %213 : vector<2x128xf32> to vector<2x128xbf16>
    %cst_86 = arith.constant dense<0.000000e+00> : vector<2x512xf32>
    %239 = tpu.matmul %238, %4, %cst_86 {dimension_numbers = #tpu.dot_dimension_numbers<[1], [0], [0], [1], [0, 0, 1, 1], [], []>} : vector<2x128xbf16>, vector<128x512xbf16>, vector<2x512xf32> -> vector<2x512xf32>
    %240 = arith.addf %237, %239 : vector<2x512xf32>
    %241 = vector.broadcast %5 : vector<1x512xf32> to vector<2x512xf32>
    %242 = arith.addf %240, %241 : vector<2x512xf32>
    %243 = vector.extract_strided_slice %242 {offsets = [0, 0], sizes = [2, 384], strides = [1, 1]} : vector<2x512xf32> to vector<2x384xf32>
    %244 = arith.negf %243 : vector<2x384xf32>
    %245 = math.exp %244 : vector<2x384xf32>
    %cst_87 = arith.constant 1.000000e+00 : f32
    %246 = vector.broadcast %cst_87 : f32 to vector<2x384xf32>
    %247 = arith.addf %246, %245 : vector<2x384xf32>
    %248 = arith.divf %246, %247 : vector<2x384xf32>
    %249 = vector.extract_strided_slice %248 {offsets = [0, 0], sizes = [2, 128], strides = [1, 1]} : vector<2x384xf32> to vector<2x128xf32>
    %250 = vector.extract_strided_slice %248 {offsets = [0, 128], sizes = [2, 128], strides = [1, 1]} : vector<2x384xf32> to vector<2x128xf32>
    %251 = vector.extract_strided_slice %248 {offsets = [0, 256], sizes = [2, 128], strides = [1, 1]} : vector<2x384xf32> to vector<2x128xf32>
    %252 = vector.extract_strided_slice %242 {offsets = [0, 384], sizes = [2, 128], strides = [1, 1]} : vector<2x512xf32> to vector<2x128xf32>
    %253 = math.tanh %252 : vector<2x128xf32>
    %254 = arith.mulf %250, %211 : vector<2x128xf32>
    %255 = arith.mulf %249, %253 : vector<2x128xf32>
    %256 = arith.addf %254, %255 : vector<2x128xf32>
    %257 = math.tanh %256 : vector<2x128xf32>
    %258 = arith.mulf %251, %257 : vector<2x128xf32>
    %c4_i32 = arith.constant 4 : i32
    %259 = arith.index_cast %c4_i32 : i32 to index
    %c0_88 = arith.constant 0 : index
    %c0_89 = arith.constant 0 : index
    %260 = vector.load %arg11[%259, %c0_88, %c0_89] : memref<8x2x512xf32, #tpu.memory_space<vmem>>, vector<1x2x512xf32>
    %261 = vector.shape_cast %260 : vector<1x2x512xf32> to vector<2x512xf32>
    %262 = arith.truncf %235 : vector<2x128xf32> to vector<2x128xbf16>
    %cst_90 = arith.constant dense<0.000000e+00> : vector<2x512xf32>
    %263 = tpu.matmul %262, %1, %cst_90 {dimension_numbers = #tpu.dot_dimension_numbers<[1], [0], [0], [1], [0, 0, 1, 1], [], []>} : vector<2x128xbf16>, vector<128x512xbf16>, vector<2x512xf32> -> vector<2x512xf32>
    %264 = arith.addf %261, %263 : vector<2x512xf32>
    %265 = vector.extract_strided_slice %264 {offsets = [0, 0], sizes = [2, 384], strides = [1, 1]} : vector<2x512xf32> to vector<2x384xf32>
    %266 = arith.negf %265 : vector<2x384xf32>
    %267 = math.exp %266 : vector<2x384xf32>
    %cst_91 = arith.constant 1.000000e+00 : f32
    %268 = vector.broadcast %cst_91 : f32 to vector<2x384xf32>
    %269 = arith.addf %268, %267 : vector<2x384xf32>
    %270 = arith.divf %268, %269 : vector<2x384xf32>
    %271 = vector.extract_strided_slice %270 {offsets = [0, 0], sizes = [2, 128], strides = [1, 1]} : vector<2x384xf32> to vector<2x128xf32>
    %272 = vector.extract_strided_slice %270 {offsets = [0, 128], sizes = [2, 128], strides = [1, 1]} : vector<2x384xf32> to vector<2x128xf32>
    %273 = vector.extract_strided_slice %270 {offsets = [0, 256], sizes = [2, 128], strides = [1, 1]} : vector<2x384xf32> to vector<2x128xf32>
    %274 = vector.extract_strided_slice %264 {offsets = [0, 384], sizes = [2, 128], strides = [1, 1]} : vector<2x512xf32> to vector<2x128xf32>
    %275 = math.tanh %274 : vector<2x128xf32>
    %276 = arith.mulf %272, %233 : vector<2x128xf32>
    %277 = arith.mulf %271, %275 : vector<2x128xf32>
    %278 = arith.addf %276, %277 : vector<2x128xf32>
    %279 = math.tanh %278 : vector<2x128xf32>
    %280 = arith.mulf %273, %279 : vector<2x128xf32>
    %281 = arith.truncf %280 : vector<2x128xf32> to vector<2x128xbf16>
    %cst_92 = arith.constant dense<0.000000e+00> : vector<2x512xf32>
    %282 = tpu.matmul %281, %3, %cst_92 {dimension_numbers = #tpu.dot_dimension_numbers<[1], [0], [0], [1], [0, 0, 1, 1], [], []>} : vector<2x128xbf16>, vector<128x512xbf16>, vector<2x512xf32> -> vector<2x512xf32>
    %283 = arith.truncf %258 : vector<2x128xf32> to vector<2x128xbf16>
    %cst_93 = arith.constant dense<0.000000e+00> : vector<2x512xf32>
    %284 = tpu.matmul %283, %4, %cst_93 {dimension_numbers = #tpu.dot_dimension_numbers<[1], [0], [0], [1], [0, 0, 1, 1], [], []>} : vector<2x128xbf16>, vector<128x512xbf16>, vector<2x512xf32> -> vector<2x512xf32>
    %285 = arith.addf %282, %284 : vector<2x512xf32>
    %286 = vector.broadcast %5 : vector<1x512xf32> to vector<2x512xf32>
    %287 = arith.addf %285, %286 : vector<2x512xf32>
    %288 = vector.extract_strided_slice %287 {offsets = [0, 0], sizes = [2, 384], strides = [1, 1]} : vector<2x512xf32> to vector<2x384xf32>
    %289 = arith.negf %288 : vector<2x384xf32>
    %290 = math.exp %289 : vector<2x384xf32>
    %cst_94 = arith.constant 1.000000e+00 : f32
    %291 = vector.broadcast %cst_94 : f32 to vector<2x384xf32>
    %292 = arith.addf %291, %290 : vector<2x384xf32>
    %293 = arith.divf %291, %292 : vector<2x384xf32>
    %294 = vector.extract_strided_slice %293 {offsets = [0, 0], sizes = [2, 128], strides = [1, 1]} : vector<2x384xf32> to vector<2x128xf32>
    %295 = vector.extract_strided_slice %293 {offsets = [0, 128], sizes = [2, 128], strides = [1, 1]} : vector<2x384xf32> to vector<2x128xf32>
    %296 = vector.extract_strided_slice %293 {offsets = [0, 256], sizes = [2, 128], strides = [1, 1]} : vector<2x384xf32> to vector<2x128xf32>
    %297 = vector.extract_strided_slice %287 {offsets = [0, 384], sizes = [2, 128], strides = [1, 1]} : vector<2x512xf32> to vector<2x128xf32>
    %298 = math.tanh %297 : vector<2x128xf32>
    %299 = arith.mulf %295, %256 : vector<2x128xf32>
    %300 = arith.mulf %294, %298 : vector<2x128xf32>
    %301 = arith.addf %299, %300 : vector<2x128xf32>
    %302 = math.tanh %301 : vector<2x128xf32>
    %303 = arith.mulf %296, %302 : vector<2x128xf32>
    %c5_i32 = arith.constant 5 : i32
    %304 = arith.index_cast %c5_i32 : i32 to index
    %c0_95 = arith.constant 0 : index
    %c0_96 = arith.constant 0 : index
    %305 = vector.load %arg11[%304, %c0_95, %c0_96] : memref<8x2x512xf32, #tpu.memory_space<vmem>>, vector<1x2x512xf32>
    %306 = vector.shape_cast %305 : vector<1x2x512xf32> to vector<2x512xf32>
    %307 = arith.truncf %280 : vector<2x128xf32> to vector<2x128xbf16>
    %cst_97 = arith.constant dense<0.000000e+00> : vector<2x512xf32>
    %308 = tpu.matmul %307, %1, %cst_97 {dimension_numbers = #tpu.dot_dimension_numbers<[1], [0], [0], [1], [0, 0, 1, 1], [], []>} : vector<2x128xbf16>, vector<128x512xbf16>, vector<2x512xf32> -> vector<2x512xf32>
    %309 = arith.addf %306, %308 : vector<2x512xf32>
    %310 = vector.extract_strided_slice %309 {offsets = [0, 0], sizes = [2, 384], strides = [1, 1]} : vector<2x512xf32> to vector<2x384xf32>
    %311 = arith.negf %310 : vector<2x384xf32>
    %312 = math.exp %311 : vector<2x384xf32>
    %cst_98 = arith.constant 1.000000e+00 : f32
    %313 = vector.broadcast %cst_98 : f32 to vector<2x384xf32>
    %314 = arith.addf %313, %312 : vector<2x384xf32>
    %315 = arith.divf %313, %314 : vector<2x384xf32>
    %316 = vector.extract_strided_slice %315 {offsets = [0, 0], sizes = [2, 128], strides = [1, 1]} : vector<2x384xf32> to vector<2x128xf32>
    %317 = vector.extract_strided_slice %315 {offsets = [0, 128], sizes = [2, 128], strides = [1, 1]} : vector<2x384xf32> to vector<2x128xf32>
    %318 = vector.extract_strided_slice %315 {offsets = [0, 256], sizes = [2, 128], strides = [1, 1]} : vector<2x384xf32> to vector<2x128xf32>
    %319 = vector.extract_strided_slice %309 {offsets = [0, 384], sizes = [2, 128], strides = [1, 1]} : vector<2x512xf32> to vector<2x128xf32>
    %320 = math.tanh %319 : vector<2x128xf32>
    %321 = arith.mulf %317, %278 : vector<2x128xf32>
    %322 = arith.mulf %316, %320 : vector<2x128xf32>
    %323 = arith.addf %321, %322 : vector<2x128xf32>
    %324 = math.tanh %323 : vector<2x128xf32>
    %325 = arith.mulf %318, %324 : vector<2x128xf32>
    %326 = arith.truncf %325 : vector<2x128xf32> to vector<2x128xbf16>
    %cst_99 = arith.constant dense<0.000000e+00> : vector<2x512xf32>
    %327 = tpu.matmul %326, %3, %cst_99 {dimension_numbers = #tpu.dot_dimension_numbers<[1], [0], [0], [1], [0, 0, 1, 1], [], []>} : vector<2x128xbf16>, vector<128x512xbf16>, vector<2x512xf32> -> vector<2x512xf32>
    %328 = arith.truncf %303 : vector<2x128xf32> to vector<2x128xbf16>
    %cst_100 = arith.constant dense<0.000000e+00> : vector<2x512xf32>
    %329 = tpu.matmul %328, %4, %cst_100 {dimension_numbers = #tpu.dot_dimension_numbers<[1], [0], [0], [1], [0, 0, 1, 1], [], []>} : vector<2x128xbf16>, vector<128x512xbf16>, vector<2x512xf32> -> vector<2x512xf32>
    %330 = arith.addf %327, %329 : vector<2x512xf32>
    %331 = vector.broadcast %5 : vector<1x512xf32> to vector<2x512xf32>
    %332 = arith.addf %330, %331 : vector<2x512xf32>
    %333 = vector.extract_strided_slice %332 {offsets = [0, 0], sizes = [2, 384], strides = [1, 1]} : vector<2x512xf32> to vector<2x384xf32>
    %334 = arith.negf %333 : vector<2x384xf32>
    %335 = math.exp %334 : vector<2x384xf32>
    %cst_101 = arith.constant 1.000000e+00 : f32
    %336 = vector.broadcast %cst_101 : f32 to vector<2x384xf32>
    %337 = arith.addf %336, %335 : vector<2x384xf32>
    %338 = arith.divf %336, %337 : vector<2x384xf32>
    %339 = vector.extract_strided_slice %338 {offsets = [0, 0], sizes = [2, 128], strides = [1, 1]} : vector<2x384xf32> to vector<2x128xf32>
    %340 = vector.extract_strided_slice %338 {offsets = [0, 128], sizes = [2, 128], strides = [1, 1]} : vector<2x384xf32> to vector<2x128xf32>
    %341 = vector.extract_strided_slice %338 {offsets = [0, 256], sizes = [2, 128], strides = [1, 1]} : vector<2x384xf32> to vector<2x128xf32>
    %342 = vector.extract_strided_slice %332 {offsets = [0, 384], sizes = [2, 128], strides = [1, 1]} : vector<2x512xf32> to vector<2x128xf32>
    %343 = math.tanh %342 : vector<2x128xf32>
    %344 = arith.mulf %340, %301 : vector<2x128xf32>
    %345 = arith.mulf %339, %343 : vector<2x128xf32>
    %346 = arith.addf %344, %345 : vector<2x128xf32>
    %347 = math.tanh %346 : vector<2x128xf32>
    %348 = arith.mulf %341, %347 : vector<2x128xf32>
    %c6_i32 = arith.constant 6 : i32
    %349 = arith.index_cast %c6_i32 : i32 to index
    %c0_102 = arith.constant 0 : index
    %c0_103 = arith.constant 0 : index
    %350 = vector.load %arg11[%349, %c0_102, %c0_103] : memref<8x2x512xf32, #tpu.memory_space<vmem>>, vector<1x2x512xf32>
    %351 = vector.shape_cast %350 : vector<1x2x512xf32> to vector<2x512xf32>
    %352 = arith.truncf %325 : vector<2x128xf32> to vector<2x128xbf16>
    %cst_104 = arith.constant dense<0.000000e+00> : vector<2x512xf32>
    %353 = tpu.matmul %352, %1, %cst_104 {dimension_numbers = #tpu.dot_dimension_numbers<[1], [0], [0], [1], [0, 0, 1, 1], [], []>} : vector<2x128xbf16>, vector<128x512xbf16>, vector<2x512xf32> -> vector<2x512xf32>
    %354 = arith.addf %351, %353 : vector<2x512xf32>
    %355 = vector.extract_strided_slice %354 {offsets = [0, 0], sizes = [2, 384], strides = [1, 1]} : vector<2x512xf32> to vector<2x384xf32>
    %356 = arith.negf %355 : vector<2x384xf32>
    %357 = math.exp %356 : vector<2x384xf32>
    %cst_105 = arith.constant 1.000000e+00 : f32
    %358 = vector.broadcast %cst_105 : f32 to vector<2x384xf32>
    %359 = arith.addf %358, %357 : vector<2x384xf32>
    %360 = arith.divf %358, %359 : vector<2x384xf32>
    %361 = vector.extract_strided_slice %360 {offsets = [0, 0], sizes = [2, 128], strides = [1, 1]} : vector<2x384xf32> to vector<2x128xf32>
    %362 = vector.extract_strided_slice %360 {offsets = [0, 128], sizes = [2, 128], strides = [1, 1]} : vector<2x384xf32> to vector<2x128xf32>
    %363 = vector.extract_strided_slice %360 {offsets = [0, 256], sizes = [2, 128], strides = [1, 1]} : vector<2x384xf32> to vector<2x128xf32>
    %364 = vector.extract_strided_slice %354 {offsets = [0, 384], sizes = [2, 128], strides = [1, 1]} : vector<2x512xf32> to vector<2x128xf32>
    %365 = math.tanh %364 : vector<2x128xf32>
    %366 = arith.mulf %362, %323 : vector<2x128xf32>
    %367 = arith.mulf %361, %365 : vector<2x128xf32>
    %368 = arith.addf %366, %367 : vector<2x128xf32>
    %369 = math.tanh %368 : vector<2x128xf32>
    %370 = arith.mulf %363, %369 : vector<2x128xf32>
    %371 = arith.truncf %370 : vector<2x128xf32> to vector<2x128xbf16>
    %cst_106 = arith.constant dense<0.000000e+00> : vector<2x512xf32>
    %372 = tpu.matmul %371, %3, %cst_106 {dimension_numbers = #tpu.dot_dimension_numbers<[1], [0], [0], [1], [0, 0, 1, 1], [], []>} : vector<2x128xbf16>, vector<128x512xbf16>, vector<2x512xf32> -> vector<2x512xf32>
    %373 = arith.truncf %348 : vector<2x128xf32> to vector<2x128xbf16>
    %cst_107 = arith.constant dense<0.000000e+00> : vector<2x512xf32>
    %374 = tpu.matmul %373, %4, %cst_107 {dimension_numbers = #tpu.dot_dimension_numbers<[1], [0], [0], [1], [0, 0, 1, 1], [], []>} : vector<2x128xbf16>, vector<128x512xbf16>, vector<2x512xf32> -> vector<2x512xf32>
    %375 = arith.addf %372, %374 : vector<2x512xf32>
    %376 = vector.broadcast %5 : vector<1x512xf32> to vector<2x512xf32>
    %377 = arith.addf %375, %376 : vector<2x512xf32>
    %378 = vector.extract_strided_slice %377 {offsets = [0, 0], sizes = [2, 384], strides = [1, 1]} : vector<2x512xf32> to vector<2x384xf32>
    %379 = arith.negf %378 : vector<2x384xf32>
    %380 = math.exp %379 : vector<2x384xf32>
    %cst_108 = arith.constant 1.000000e+00 : f32
    %381 = vector.broadcast %cst_108 : f32 to vector<2x384xf32>
    %382 = arith.addf %381, %380 : vector<2x384xf32>
    %383 = arith.divf %381, %382 : vector<2x384xf32>
    %384 = vector.extract_strided_slice %383 {offsets = [0, 0], sizes = [2, 128], strides = [1, 1]} : vector<2x384xf32> to vector<2x128xf32>
    %385 = vector.extract_strided_slice %383 {offsets = [0, 128], sizes = [2, 128], strides = [1, 1]} : vector<2x384xf32> to vector<2x128xf32>
    %386 = vector.extract_strided_slice %383 {offsets = [0, 256], sizes = [2, 128], strides = [1, 1]} : vector<2x384xf32> to vector<2x128xf32>
    %387 = vector.extract_strided_slice %377 {offsets = [0, 384], sizes = [2, 128], strides = [1, 1]} : vector<2x512xf32> to vector<2x128xf32>
    %388 = math.tanh %387 : vector<2x128xf32>
    %389 = arith.mulf %385, %346 : vector<2x128xf32>
    %390 = arith.mulf %384, %388 : vector<2x128xf32>
    %391 = arith.addf %389, %390 : vector<2x128xf32>
    %392 = math.tanh %391 : vector<2x128xf32>
    %393 = arith.mulf %386, %392 : vector<2x128xf32>
    %c7_i32 = arith.constant 7 : i32
    %394 = arith.index_cast %c7_i32 : i32 to index
    %c0_109 = arith.constant 0 : index
    %c0_110 = arith.constant 0 : index
    %395 = vector.load %arg11[%394, %c0_109, %c0_110] : memref<8x2x512xf32, #tpu.memory_space<vmem>>, vector<1x2x512xf32>
    %396 = vector.shape_cast %395 : vector<1x2x512xf32> to vector<2x512xf32>
    %397 = arith.truncf %370 : vector<2x128xf32> to vector<2x128xbf16>
    %cst_111 = arith.constant dense<0.000000e+00> : vector<2x512xf32>
    %398 = tpu.matmul %397, %1, %cst_111 {dimension_numbers = #tpu.dot_dimension_numbers<[1], [0], [0], [1], [0, 0, 1, 1], [], []>} : vector<2x128xbf16>, vector<128x512xbf16>, vector<2x512xf32> -> vector<2x512xf32>
    %399 = arith.addf %396, %398 : vector<2x512xf32>
    %400 = vector.extract_strided_slice %399 {offsets = [0, 0], sizes = [2, 384], strides = [1, 1]} : vector<2x512xf32> to vector<2x384xf32>
    %401 = arith.negf %400 : vector<2x384xf32>
    %402 = math.exp %401 : vector<2x384xf32>
    %cst_112 = arith.constant 1.000000e+00 : f32
    %403 = vector.broadcast %cst_112 : f32 to vector<2x384xf32>
    %404 = arith.addf %403, %402 : vector<2x384xf32>
    %405 = arith.divf %403, %404 : vector<2x384xf32>
    %406 = vector.extract_strided_slice %405 {offsets = [0, 0], sizes = [2, 128], strides = [1, 1]} : vector<2x384xf32> to vector<2x128xf32>
    %407 = vector.extract_strided_slice %405 {offsets = [0, 128], sizes = [2, 128], strides = [1, 1]} : vector<2x384xf32> to vector<2x128xf32>
    %408 = vector.extract_strided_slice %405 {offsets = [0, 256], sizes = [2, 128], strides = [1, 1]} : vector<2x384xf32> to vector<2x128xf32>
    %409 = vector.extract_strided_slice %399 {offsets = [0, 384], sizes = [2, 128], strides = [1, 1]} : vector<2x512xf32> to vector<2x128xf32>
    %410 = math.tanh %409 : vector<2x128xf32>
    %411 = arith.mulf %407, %368 : vector<2x128xf32>
    %412 = arith.mulf %406, %410 : vector<2x128xf32>
    %413 = arith.addf %411, %412 : vector<2x128xf32>
    %414 = math.tanh %413 : vector<2x128xf32>
    %415 = arith.mulf %408, %414 : vector<2x128xf32>
    %416 = arith.truncf %415 : vector<2x128xf32> to vector<2x128xbf16>
    %cst_113 = arith.constant dense<0.000000e+00> : vector<2x512xf32>
    %417 = tpu.matmul %416, %3, %cst_113 {dimension_numbers = #tpu.dot_dimension_numbers<[1], [0], [0], [1], [0, 0, 1, 1], [], []>} : vector<2x128xbf16>, vector<128x512xbf16>, vector<2x512xf32> -> vector<2x512xf32>
    %418 = arith.truncf %393 : vector<2x128xf32> to vector<2x128xbf16>
    %cst_114 = arith.constant dense<0.000000e+00> : vector<2x512xf32>
    %419 = tpu.matmul %418, %4, %cst_114 {dimension_numbers = #tpu.dot_dimension_numbers<[1], [0], [0], [1], [0, 0, 1, 1], [], []>} : vector<2x128xbf16>, vector<128x512xbf16>, vector<2x512xf32> -> vector<2x512xf32>
    %420 = arith.addf %417, %419 : vector<2x512xf32>
    %421 = vector.broadcast %5 : vector<1x512xf32> to vector<2x512xf32>
    %422 = arith.addf %420, %421 : vector<2x512xf32>
    %423 = vector.extract_strided_slice %422 {offsets = [0, 0], sizes = [2, 384], strides = [1, 1]} : vector<2x512xf32> to vector<2x384xf32>
    %424 = arith.negf %423 : vector<2x384xf32>
    %425 = math.exp %424 : vector<2x384xf32>
    %cst_115 = arith.constant 1.000000e+00 : f32
    %426 = vector.broadcast %cst_115 : f32 to vector<2x384xf32>
    %427 = arith.addf %426, %425 : vector<2x384xf32>
    %428 = arith.divf %426, %427 : vector<2x384xf32>
    %429 = vector.extract_strided_slice %428 {offsets = [0, 0], sizes = [2, 128], strides = [1, 1]} : vector<2x384xf32> to vector<2x128xf32>
    %430 = vector.extract_strided_slice %428 {offsets = [0, 128], sizes = [2, 128], strides = [1, 1]} : vector<2x384xf32> to vector<2x128xf32>
    %431 = vector.extract_strided_slice %428 {offsets = [0, 256], sizes = [2, 128], strides = [1, 1]} : vector<2x384xf32> to vector<2x128xf32>
    %432 = vector.extract_strided_slice %422 {offsets = [0, 384], sizes = [2, 128], strides = [1, 1]} : vector<2x512xf32> to vector<2x128xf32>
    %433 = math.tanh %432 : vector<2x128xf32>
    %434 = arith.mulf %430, %391 : vector<2x128xf32>
    %435 = arith.mulf %429, %433 : vector<2x128xf32>
    %436 = arith.addf %434, %435 : vector<2x128xf32>
    %437 = math.tanh %436 : vector<2x128xf32>
    %438 = arith.mulf %431, %437 : vector<2x128xf32>
    %c8_i32 = arith.constant 8 : i32
    %439 = arith.truncf %438 : vector<2x128xf32> to vector<2x128xbf16>
    %c0_116 = arith.constant 0 : index
    %c0_117 = arith.constant 0 : index
    %440 = vector.load %arg8[%c0_116, %c0_117] : memref<128x128xbf16, #tpu.memory_space<vmem>>, vector<128x128xbf16>
    %cst_118 = arith.constant dense<0.000000e+00> : vector<2x128xf32>
    %441 = tpu.matmul %439, %440, %cst_118 {dimension_numbers = #tpu.dot_dimension_numbers<[1], [0], [0], [1], [0, 0, 1, 1], [], []>} : vector<2x128xbf16>, vector<128x128xbf16>, vector<2x128xf32> -> vector<2x128xf32>
    %c0_119 = arith.constant 0 : index
    %c0_120 = arith.constant 0 : index
    %442 = vector.load %arg9[%c0_119, %c0_120] : memref<1x128xf32, #tpu.memory_space<vmem>>, vector<1x128xf32>
    %443 = vector.broadcast %442 : vector<1x128xf32> to vector<2x128xf32>
    %444 = arith.addf %441, %443 : vector<2x128xf32>
    %445 = tpu.iota {dimensions = array<i32: 1>} : vector<2x128xi32>
    %c2_i32_121 = arith.constant 2 : i32
    %446 = vector.broadcast %c2_i32_121 : i32 to vector<2x128xi32>
    %447 = arith.cmpi slt, %445, %446 : vector<2x128xi32>
    %cst_122 = arith.constant -1.000000e+30 : f32
    %448 = vector.broadcast %cst_122 : f32 to vector<2x128xf32>
    %449 = arith.select %447, %444, %448 : vector<2x128xi1>, vector<2x128xf32>
    %cst_123 = arith.constant dense<0xFF800000> : vector<2xf32>
    %450 = vector.multi_reduction <maximumf>, %449, %cst_123 [1] : vector<2x128xf32> to vector<2xf32>
    %451 = vector.shape_cast %450 : vector<2xf32> to vector<2x1xf32>
    %452 = vector.broadcast %451 : vector<2x1xf32> to vector<2x128xf32>
    %453 = arith.subf %449, %452 : vector<2x128xf32>
    %454 = math.exp %453 : vector<2x128xf32>
    %cst_124 = arith.constant 0.000000e+00 : f32
    %455 = vector.broadcast %cst_124 : f32 to vector<2x128xf32>
    %456 = arith.select %447, %454, %455 : vector<2x128xi1>, vector<2x128xf32>
    %cst_125 = arith.constant dense<0.000000e+00> : vector<2xf32>
    %457 = vector.multi_reduction <add>, %456, %cst_125 [1] : vector<2x128xf32> to vector<2xf32>
    %458 = vector.shape_cast %457 : vector<2xf32> to vector<2x1xf32>
    %459 = math.log %458 : vector<2x1xf32>
    %460 = arith.addf %459, %451 : vector<2x1xf32>
    %461 = vector.broadcast %460 : vector<2x1xf32> to vector<2x128xf32>
    %462 = arith.subf %449, %461 : vector<2x128xf32>
    %c0_126 = arith.constant 0 : index
    %c0_127 = arith.constant 0 : index
    %463 = vector.load %arg10[%c0_126, %c0_127] : memref<2x128xf32, #tpu.memory_space<vmem>>, vector<2x128xf32>
    tpu.vector_store %arg10[%c0_126, %c0_127], %462 {strides = array<i32>} : memref<2x128xf32, #tpu.memory_space<vmem>>, vector<2x128xf32>,
    return
  }
  func.func @transform_0(%arg0: i32) -> (i32, i32, i32) {
    %c0_i32 = arith.constant 0 : i32
    %c0_i32_0 = arith.constant 0 : i32
    %c0_i32_1 = arith.constant 0 : i32
    %c0_i32_2 = arith.constant 0 : i32
    return %c0_i32, %c0_i32_0, %c0_i32_1 : i32, i32, i32
  }
  func.func @transform_1(%arg0: i32) -> (i32, i32) {
    %c0_i32 = arith.constant 0 : i32
    %c0_i32_0 = arith.constant 0 : i32
    %c0_i32_1 = arith.constant 0 : i32
    return %c0_i32, %c0_i32_0 : i32, i32
  }
  func.func @transform_2(%arg0: i32) -> (i32, i32) {
    %c0_i32 = arith.constant 0 : i32
    %c0_i32_0 = arith.constant 0 : i32
    %c0_i32_1 = arith.constant 0 : i32
    return %c0_i32, %c0_i32_0 : i32, i32
  }
  func.func @transform_3(%arg0: i32) -> (i32, i32) {
    %c0_i32 = arith.constant 0 : i32
    %c0_i32_0 = arith.constant 0 : i32
    %c0_i32_1 = arith.constant 0 : i32
    return %c0_i32, %c0_i32_0 : i32, i32
  }
  func.func @transform_4(%arg0: i32) -> (i32, i32) {
    %c0_i32 = arith.constant 0 : i32
    %c0_i32_0 = arith.constant 0 : i32
    %c0_i32_1 = arith.constant 0 : i32
    return %c0_i32, %c0_i32_0 : i32, i32
  }
  func.func @transform_5(%arg0: i32) -> (i32, i32) {
    %c0_i32 = arith.constant 0 : i32
    %c0_i32_0 = arith.constant 0 : i32
    %c0_i32_1 = arith.constant 0 : i32
    return %c0_i32, %c0_i32_0 : i32, i32
  }
  func.func @transform_6(%arg0: i32) -> (i32, i32) {
    %c0_i32 = arith.constant 0 : i32
    %c0_i32_0 = arith.constant 0 : i32
    %c0_i32_1 = arith.constant 0 : i32
    return %c0_i32, %c0_i32_0 : i32, i32
  }
  func.func @transform_7(%arg0: i32) -> (i32, i32) {
    %c0_i32 = arith.constant 0 : i32
    %c0_i32_0 = arith.constant 0 : i32
    %c0_i32_1 = arith.constant 0 : i32
    return %c0_i32, %c0_i32_0 : i32, i32
  }
  func.func @transform_8(%arg0: i32) -> (i32, i32) {
    %c0_i32 = arith.constant 0 : i32
    %c0_i32_0 = arith.constant 0 : i32
    %c0_i32_1 = arith.constant 0 : i32
    return %c0_i32, %c0_i32_0 : i32, i32
  }
  func.func @transform_9(%arg0: i32) -> (i32, i32) {
    %c0_i32 = arith.constant 0 : i32
    %c0_i32_0 = arith.constant 0 : i32
    %c0_i32_1 = arith.constant 0 : i32
    return %c0_i32, %c0_i32_0 : i32, i32
  }
}

</mosaic_0001>

<bundles_post_ra>
// kernel: tpu_custom_call.1
= control target key start
LH: loop header
LB: loop body
LE: loop exit
PB: predicated region body
PF: predicated region fallthrough
CT: control target
= control target key end

     0   :  { %14 = vsyncpa [#allocation4], 0  ;;  %s7657_s0 = inlined_call_operand.hbm [shape: f32[8,2,128], index: 0, kind: input, shape index: {}]   ;;  %s7658_s1 = inlined_call_operand.hbm [shape: bf16[128,512], index: 1, kind: input, shape index: {}]   ;;  %s7659_s2 = inlined_call_operand.hbm [shape: bf16[128,512], index: 2, kind: input, shape index: {}]   ;;  %s7660_s3 = inlined_call_operand.vmem [shape: f32[1,512], index: 3, kind: input, shape index: {}]   ;;  %s7661_s4 = inlined_call_operand.hbm [shape: bf16[128,512], index: 4, kind: input, shape index: {}]   ;;  %s7662_s5 = inlined_call_operand.hbm [shape: bf16[128,512], index: 5, kind: input, shape index: {}]   ;;  %s7663_s6 = inlined_call_operand.vmem [shape: f32[1,512], index: 6, kind: input, shape index: {}]   ;;  %s7664_s7 = inlined_call_operand.hbm [shape: bf16[128,128], index: 7, kind: input, shape index: {}]   ;;  %s7665_s8 = inlined_call_operand.vmem [shape: f32[1,128], index: 8, kind: input, shape index: {}]   ;;  %s7666_s9 = inlined_call_operand.hbm [shape: f32[2,128], index: 9, kind: output, shape index: {}]  }
   0x1   :  { %15 = vsyncpa [#allocation7], 0 }
   0x2   :  { %16 = vsyncpa [#allocation10], 0 }
   0x3   :  { %17 = vsyncpa [#allocation13], 0 }
   0x4   :  { %18 = vsyncpa [#allocation5], 0  ;;  %s5474_s30 = smov [#allocation6]   ;;  %s5310_s13 = scalar_lea.hbm %s7658_s1, 4096 }
   0x5   :  { %s36_s10 = sshll.u32 %s5474_s30, 4  ;;  %p5311_p0 = scmp.ne.s32.totalorder %s7658_s1, %s5310_s13  ;;  %s37_s10 = int_to_ptr.vmem [resolvable:$true] %s36_s10 }
   0x6   :  { %p5314_p1 = scmp.lt.u32.totalorder %s5310_s13, %s7658_s1 }
   0x8   :  { %p5316_p2 = pnand %p5314_p1, %p5311_p0 }
   0xa   :  { %5319 = shalt.err (!%p5316_p2)
}
   0xb   :  { %s5320_s18 = scalar_lea.vmem %s37_s10, 4096  ;;  %p5325_p4 = scmp.lt.s32.totalorder %s37_s10, %s37_s10 }
   0xc   :  { %p5321_p3 = scmp.ne.s32.totalorder %s37_s10, %s5320_s18  ;;  %p5326_p5 = scmp.lt.s32.totalorder %s5320_s18, %s5320_s18 }
   0xe   :  { %p5327_p6 = por %p5326_p5, %p5325_p4 }
  0x10   :  { %p5328_p7 = pnand %p5327_p6, %p5321_p3 }
  0x12   :  { %5331 = shalt.err (!%p5328_p7)
}
  0x13   :  { %s5475_s19 = smov 256   ;;  %s5476_s20 = smov 16  }
  0x14   :  { %42 = dma.hbm_to_vmem [thread:$0]  %s7658_s1, 4096, %s37_s10, [#allocation7], %s5475_s19, %s5475_s19, %s5476_s20  }
  0x15   :  { %s5477_s23 = smov [#allocation9]   ;;  %s5478_s25 = smov [#allocation3]  }
  0x16   :  { %s62_s24 = sshll.u32 %s5477_s23, 4  ;;  %s24_s26 = sshll.u32 %s5478_s25, 4  ;;  %s63_s24 = int_to_ptr.vmem [resolvable:$true] %s62_s24  ;;  %s25_s26 = int_to_ptr.vmem [resolvable:$true] %s24_s26 }
  0x17   :  { %s5332_s29 = scalar_lea.hbm %s7661_s4, 4096 }
  0x18   :  { %p5333_p8 = scmp.ne.s32.totalorder %s7661_s4, %s5332_s29  ;;  %p5336_p9 = scmp.lt.u32.totalorder %s5332_s29, %s7661_s4 }
  0x1a   :  { %p5338_p10 = pnand %p5336_p9, %p5333_p8 }
  0x1c   :  { %5341 = shalt.err (!%p5338_p10)
}
  0x1d   :  { %s5342_s1 = scalar_lea.vmem %s63_s24, 4096  ;;  %p5347_p12 = scmp.lt.s32.totalorder %s63_s24, %s63_s24 }
  0x1e   :  { %p5343_p11 = scmp.ne.s32.totalorder %s63_s24, %s5342_s1  ;;  %p5348_p13 = scmp.lt.s32.totalorder %s5342_s1, %s5342_s1 }
  0x20   :  { %p5349_p0 = por %p5348_p13, %p5347_p12 }
  0x22   :  { %p5350_p1 = pnand %p5349_p0, %p5343_p11 }
  0x24   :  { %5353 = shalt.err (!%p5350_p1)
}
  0x25   :  { %68 = dma.hbm_to_vmem [thread:$0]  %s7661_s4, 4096, %s63_s24, [#allocation10], %s5475_s19, %s5475_s19, %s5476_s20  }
  0x26   :  { %s5354_s17 = scalar_lea.hbm %s7657_s0, 256 }
  0x27   :  { %p5355_p2 = scmp.ne.s32.totalorder %s7657_s0, %s5354_s17  ;;  %p5358_p3 = scmp.lt.u32.totalorder %s5354_s17, %s7657_s0 }
  0x29   :  { %p5360_p4 = pnand %p5358_p3, %p5355_p2 }
  0x2b   :  { %5363 = shalt.err (!%p5360_p4)
}
  0x2c   :  { %s5364_s25 = scalar_lea.vmem %s25_s26, 256  ;;  %p5369_p6 = scmp.lt.s32.totalorder %s25_s26, %s25_s26 }
  0x2d   :  { %p5365_p5 = scmp.ne.s32.totalorder %s25_s26, %s5364_s25  ;;  %p5370_p7 = scmp.lt.s32.totalorder %s5364_s25, %s5364_s25 }
  0x2f   :  { %p5371_p8 = por %p5370_p7, %p5369_p6 }
  0x31   :  { %p5372_p9 = pnand %p5371_p8, %p5365_p5 }
  0x33   :  { %5375 = shalt.err (!%p5372_p9)
}
  0x34   :  { %s5479_s4 = smov 32   ;;  %s5480_s24 = smov 2  }
  0x35   :  { %30 = dma.hbm_to_vmem [thread:$0]  %s7657_s0, 256, %s25_s26, [#allocation4], %s5479_s4, %s5479_s4, %s5480_s24  }
  0x36   :  { %s5481_s29 = smov [#allocation8]   ;;  %s5482_s11 = smov [#allocation11]  }
  0x37   :  { %s48_s30 = sshll.u32 %s5481_s29, 4  ;;  %s74_s12 = sshll.u32 %s5482_s11, 4  ;;  %s49_s30 = int_to_ptr.vmem [resolvable:$true] %s48_s30  ;;  %s75_s12 = int_to_ptr.vmem [resolvable:$true] %s74_s12 }
  0x38   :  { %s5376_s10 = scalar_lea.hbm %s7659_s2, 4096 }
  0x39   :  { %p5377_p10 = scmp.ne.s32.totalorder %s7659_s2, %s5376_s10  ;;  %p5380_p11 = scmp.lt.u32.totalorder %s5376_s10, %s7659_s2 }
  0x3b   :  { %p5382_p12 = pnand %p5380_p11, %p5377_p10 }
  0x3d   :  { %5385 = shalt.err (!%p5382_p12)
}
  0x3e   :  { %s5386_s0 = scalar_lea.vmem %s49_s30, 4096  ;;  %p5391_p0 = scmp.lt.s32.totalorder %s49_s30, %s49_s30 }
  0x3f   :  { %p5387_p13 = scmp.ne.s32.totalorder %s49_s30, %s5386_s0  ;;  %p5392_p1 = scmp.lt.s32.totalorder %s5386_s0, %s5386_s0 }
  0x41   :  { %p5393_p2 = por %p5392_p1, %p5391_p0 }
  0x43   :  { %p5394_p3 = pnand %p5393_p2, %p5387_p13 }
  0x45   :  { %5397 = shalt.err (!%p5394_p3)
}
  0x46   :  { %54 = dma.hbm_to_vmem [thread:$0]  %s7659_s2, 4096, %s49_s30, [#allocation7], %s5475_s19, %s5475_s19, %s5476_s20  }
  0x47   :  { %s5398_s23 = scalar_lea.hbm %s7662_s5, 4096 }
  0x48   :  { %p5399_p4 = scmp.ne.s32.totalorder %s7662_s5, %s5398_s23  ;;  %p5402_p5 = scmp.lt.u32.totalorder %s5398_s23, %s7662_s5 }
  0x4a   :  { %p5404_p6 = pnand %p5402_p5, %p5399_p4 }
  0x4c   :  { %5407 = shalt.err (!%p5404_p6)
}
  0x4d   :  { %s5408_s28 = scalar_lea.vmem %s75_s12, 4096  ;;  %p5413_p8 = scmp.lt.s32.totalorder %s75_s12, %s75_s12 }
  0x4e   :  { %p5409_p7 = scmp.ne.s32.totalorder %s75_s12, %s5408_s28  ;;  %p5414_p9 = scmp.lt.s32.totalorder %s5408_s28, %s5408_s28 }
  0x50   :  { %p5415_p10 = por %p5414_p9, %p5413_p8 }
  0x52   :  { %p5416_p11 = pnand %p5415_p10, %p5409_p7 }
  0x54   :  { %5419 = shalt.err (!%p5416_p11)
}
  0x55   :  { %80 = dma.hbm_to_vmem [thread:$0]  %s7662_s5, 4096, %s75_s12, [#allocation10], %s5475_s19, %s5475_s19, %s5476_s20  }
  0x56   :  { %s5483_s30 = smov [#allocation12]   ;;  %s5420_s10 = scalar_lea.hbm %s7664_s7, 1024 }
  0x57   :  { %s88_s11 = sshll.u32 %s5483_s30, 4  ;;  %p5421_p12 = scmp.ne.s32.totalorder %s7664_s7, %s5420_s10  ;;  %s89_s11 = int_to_ptr.vmem [resolvable:$true] %s88_s11 }
  0x58   :  { %p5424_p13 = scmp.lt.u32.totalorder %s5420_s10, %s7664_s7 }
  0x5a   :  { %p5426_p0 = pnand %p5424_p13, %p5421_p12 }
  0x5c   :  { %5429 = shalt.err (!%p5426_p0)
}
  0x5d   :  { %s5430_s0 = scalar_lea.vmem %s89_s11, 1024  ;;  %p5435_p2 = scmp.lt.s32.totalorder %s89_s11, %s89_s11 }
  0x5e   :  { %p5431_p1 = scmp.ne.s32.totalorder %s89_s11, %s5430_s0  ;;  %p5436_p3 = scmp.lt.s32.totalorder %s5430_s0, %s5430_s0 }
  0x60   :  { %p5437_p4 = por %p5436_p3, %p5435_p2 }
  0x62   :  { %p5438_p5 = pnand %p5437_p4, %p5431_p1 }
  0x64   :  { %5441 = shalt.err (!%p5438_p5)
}
  0x65   :  { %s5484_s5 = smov 64   ;;  %s5485_s19 = smov 4  }
  0x66   :  { %94 = dma.hbm_to_vmem [thread:$0]  %s7664_s7, 1024, %s89_s11, [#allocation13], %s5484_s5, %s5484_s5, %s5485_s19  }
  0x67   :  { %5464 = dma.done.wait [#allocation4], 256  }
  0x68   :  { %5465 = vsyncadd [#allocation4], 4294967040 }
  0x69   :  { %5466 = dma.done.wait [#allocation7], 8192  }
  0x6a   :  { %5467 = vsyncadd [#allocation7], 4294959104 }
  0x6b   :  { %5468 = dma.done.wait [#allocation10], 8192  }
  0x6c   :  { %5469 = vsyncadd [#allocation10], 4294959104 }
  0x6d   :  { %5470 = dma.done.wait [#allocation13], 1024  }
  0x6e   :  { %5471 = vsyncadd [#allocation13], 4294966272  ;;  %v7672_v0 = vmov 0   ;;  %v5627_v1 = vld [vmem:[#allocation6 + $0x4] ss:$16 sps:$4 sm:$0xff]   ;;  %v7667_v47 = vlaneseq  ;;  %vm5489_vm0 = vmmov 0  }
  0x6f   :  { %461 = vmatprep.mubr.bf16.mxu0 %v7672_v0  ;;  %502 = vmatprep.mubr.bf16.mxu1 %v7672_v0  ;;  %v5629_v2 = vld [vmem:[#allocation6 + $0xc] ss:$16 sps:$4 sm:$0xff]   ;;  %v5632_v3 = vld [vmem:[#allocation6] ss:$16 sps:$4 sm:$0xff]   ;;  %v5634_v4 = vld [vmem:[#allocation6 + $0x8] ss:$16 sps:$4 sm:$0xff]  }
  0x70   :  { %429 = vmatprep.subr.bf16.mxu0 %v5627_v1  ;;  %470 = vmatprep.subr.bf16.mxu1 %v5629_v2  ;;  %v5637_v5 = vld [vmem:[#allocation6 + $0x24] ss:$16 sps:$4 sm:$0xff]   ;;  %v5641_v6 = vld [vmem:[#allocation6 + $0x2c] ss:$16 sps:$4 sm:$0xff]   ;;  %v5643_v7 = vld [vmem:[#allocation6 + $0x20] ss:$16 sps:$4 sm:$0xff]  }
  0x71   :  { %430 = vmatpush1.bf16.msra.mxu0 %v5632_v3  ;;  %471 = vmatpush1.bf16.msra.mxu1 %v5634_v4  ;;  %v5646_v8 = vld [vmem:[#allocation6 + $0x28] ss:$16 sps:$4 sm:$0xff]   ;;  %v5649_v9 = vld [vmem:[#allocation6 + $0x44] ss:$16 sps:$4 sm:$0xff]   ;;  %v5651_v10 = vld [vmem:[#allocation6 + $0x4c] ss:$16 sps:$4 sm:$0xff]  }
  0x72   :  { %431 = vmatprep.subr.bf16.mxu0 %v5637_v5  ;;  %472 = vmatprep.subr.bf16.mxu1 %v5641_v6  ;;  %v5653_v11 = vld [vmem:[#allocation6 + $0x40] ss:$16 sps:$4 sm:$0xff]   ;;  %v5655_v12 = vld [vmem:[#allocation6 + $0x48] ss:$16 sps:$4 sm:$0xff]   ;;  %v5659_v13 = vld [vmem:[#allocation6 + $0x64] ss:$16 sps:$4 sm:$0xff]  }
  0x73   :  { %v5663_v14 = vld [vmem:[#allocation6 + $0x6c] ss:$16 sps:$4 sm:$0xff]   ;;  %v5665_v15 = vld [vmem:[#allocation6 + $0x60] ss:$16 sps:$4 sm:$0xff]   ;;  %v5669_v16 = vld [vmem:[#allocation6 + $0x68] ss:$16 sps:$4 sm:$0xff]  }
  0x74   :  { %v5671_v17 = vld [vmem:[#allocation6 + $0x84] ss:$16 sps:$4 sm:$0xff]   ;;  %v5675_v18 = vld [vmem:[#allocation6 + $0x8c] ss:$16 sps:$4 sm:$0xff]   ;;  %v5677_v19 = vld [vmem:[#allocation6 + $0x80] ss:$16 sps:$4 sm:$0xff]  }
  0x75   :  { %432 = vmatpush1.bf16.msra.mxu0 %v5643_v7  ;;  %473 = vmatpush1.bf16.msra.mxu1 %v5646_v8  ;;  %v5679_v20 = vld [vmem:[#allocation6 + $0x88] ss:$16 sps:$4 sm:$0xff]   ;;  %v5683_v21 = vld [vmem:[#allocation6 + $0xa4] ss:$16 sps:$4 sm:$0xff]   ;;  %v5687_v22 = vld [vmem:[#allocation6 + $0xac] ss:$16 sps:$4 sm:$0xff]  }
  0x76   :  { %433 = vmatprep.subr.bf16.mxu0 %v5649_v9  ;;  %474 = vmatprep.subr.bf16.mxu1 %v5651_v10  ;;  %v5691_v23 = vld [vmem:[#allocation6 + $0xa0] ss:$16 sps:$4 sm:$0xff]   ;;  %v5693_v24 = vld [vmem:[#allocation6 + $0xa8] ss:$16 sps:$4 sm:$0xff]   ;;  %v5697_v25 = vld [vmem:[#allocation6 + $0xc4] ss:$16 sps:$4 sm:$0xff]  }
  0x77   :  { %v5699_v26 = vld [vmem:[#allocation6 + $0xcc] ss:$16 sps:$4 sm:$0xff]   ;;  %v5701_v27 = vld [vmem:[#allocation6 + $0xc0] ss:$16 sps:$4 sm:$0xff]   ;;  %v5703_v28 = vld [vmem:[#allocation6 + $0xc8] ss:$16 sps:$4 sm:$0xff]  }
  0x78   :  { %v5705_v29 = vld [vmem:[#allocation6 + $0xe4] ss:$16 sps:$4 sm:$0xff]   ;;  %v5707_v30 = vld [vmem:[#allocation6 + $0xec] ss:$16 sps:$4 sm:$0xff]   ;;  %v5713_v31 = vld [vmem:[#allocation6 + $0xe0] ss:$16 sps:$4 sm:$0xff]  }
  0x79   :  { %434 = vmatpush1.bf16.msra.mxu0 %v5653_v11  ;;  %475 = vmatpush1.bf16.msra.mxu1 %v5655_v12  ;;  %v5715_v32 = vld [vmem:[#allocation6 + $0xe8] ss:$16 sps:$4 sm:$0xff]   ;;  %v246_v33 = vld [vmem:[#allocation3] sm:$0x3]  ;;  %v535_v35 = vld [vmem:[#allocation3 + $0x2] sm:$0x3] }
  0x7a   :  { %435 = vmatprep.subr.bf16.mxu0 %v5659_v13  ;;  %476 = vmatprep.subr.bf16.mxu1 %v5663_v14  ;;  %v247_v34 = vpack.c.bf16 %v246_v33, %v246_v33  ;;  %v536_v36 = vpack.c.bf16 %v535_v35, %v535_v35  ;;  %v644_v37 = vld [vmem:[#allocation3 + $0x4] sm:$0x3]  ;;  %v753_v39 = vld [vmem:[#allocation3 + $0x6] sm:$0x3]  ;;  %v862_v41 = vld [vmem:[#allocation3 + $0x8] sm:$0x3] }
  0x7b   :  { %v645_v38 = vpack.c.bf16 %v644_v37, %v644_v37  ;;  %v754_v40 = vpack.c.bf16 %v753_v39, %v753_v39  ;;  %v863_v42 = vpack.c.bf16 %v862_v41, %v862_v41  ;;  %v971_v43 = vld [vmem:[#allocation3 + $0xa] sm:$0x3]  ;;  %v1080_v45 = vld [vmem:[#allocation3 + $0xc] sm:$0x3]  ;;  %v5940_v48 = vshrl.u32 %v7667_v47, 7 }
  0x7c   :  { %v972_v44 = vpack.c.bf16 %v971_v43, %v971_v43  ;;  %v1081_v46 = vpack.c.bf16 %v1080_v45, %v1080_v45  ;;  %v180_v51 = vld [vmem:[%s7660_s3] sm:$0xf]  ;;  %v5487_v53 = vmov 1983009808   ;;  %v6046_v33 = vld [vmem:[#allocation8 + $0x68] ss:$16 sps:$4 sm:$0xff]  }
  0x7d   :  { %436 = vmatpush1.bf16.msra.mxu0 %v5665_v15  ;;  %477 = vmatpush1.bf16.msra.mxu1 %v5669_v16  ;;  %8032 = vst [vmem:[#allocation20_spill] sm:$0xff] %v5940_v48  ;;  %v7671_v49 = vsub.s32 0, %v5940_v48  ;;  %v7669_v50 = vsub.s32 2, %v5940_v48  ;;  %v7670_v52 = vsub.s32 1, %v5940_v48  ;;  %v518_v54 = vunpack.c.l.s4 %v5487_v53  ;;  %v6052_v35 = vld [vmem:[#allocation8 + $0x8c] ss:$16 sps:$4 sm:$0xff]  }
  0x7e   :  { %437 = vmatprep.subr.bf16.mxu0 %v5671_v17  ;;  %478 = vmatprep.subr.bf16.mxu1 %v5675_v18  ;;  %v7668_v55 = vsub.s32 3, %v5940_v48  ;;  %v6058_v37 = vld [vmem:[#allocation8 + $0x88] ss:$16 sps:$4 sm:$0xff]   ;;  %v6064_v39 = vld [vmem:[#allocation8 + $0xac] ss:$16 sps:$4 sm:$0xff]   ;;  %vm4473_vm2 = vcmask 1041408  }
  0x7f   :  { %v5959_v56 = vrot.slane %v180_v51, %v7671_v49  ;;  %v5963_v57 = vrot.slane %v180_v51, %v7669_v50  ;;  %v5969_v58 = vrot.slane %v180_v51, %v7670_v52  ;;  %v519_v59 = vunpack.c.0.s8 %v518_v54  ;;  %v6070_v41 = vld [vmem:[#allocation8 + $0xa8] ss:$16 sps:$4 sm:$0xff]   ;;  %v6076_v43 = vld [vmem:[#allocation8 + $0xcc] ss:$16 sps:$4 sm:$0xff]  }
  0x80   :  { %v5973_v60 = vrot.slane %v180_v51, %v7668_v55 }
  0x81   :  { %438 = vmatpush1.bf16.msra.mxu0 %v5677_v19  ;;  %479 = vmatpush1.bf16.msra.mxu1 %v5679_v20 }
  0x82   :  { %439 = vmatprep.subr.bf16.mxu0 %v5683_v21  ;;  %480 = vmatprep.subr.bf16.mxu1 %v5687_v22 }
  0x85   :  { %440 = vmatpush1.bf16.msra.mxu0 %v5691_v23  ;;  %481 = vmatpush1.bf16.msra.mxu1 %v5693_v24 }
  0x86   :  { %441 = vmatprep.subr.bf16.mxu0 %v5697_v25  ;;  %482 = vmatprep.subr.bf16.mxu1 %v5699_v26 }
  0x89   :  { %442 = vmatpush1.bf16.msra.mxu0 %v5701_v27  ;;  %483 = vmatpush1.bf16.msra.mxu1 %v5703_v28 }
  0x8a   :  { %443 = vmatprep.subr.bf16.mxu0 %v5705_v29  ;;  %484 = vmatprep.subr.bf16.mxu1 %v5707_v30 }
  0x8d   :  { %444 = vmatpush1.bf16.msra.mxu0 %v5713_v31  ;;  %485 = vmatpush1.bf16.msra.mxu1 %v5715_v32 }
  0x8e   :  { %537 = vmatprep.subr.bf16.mxu0 %v5627_v1  ;;  %578 = vmatprep.subr.bf16.mxu1 %v5629_v2 }
  0x90   :  { %462 = vmatmul.mubr.bf16.vlgmr.msra.gmra.mrb[0].mxu0 %v247_v34  ;;  %503 = vmatmul.mubr.bf16.vlgmr.msra.gmra.mrb[0].mxu1 %v247_v34  ;;  %v6050_v34 = vld [vmem:[#allocation8 + $0x84] ss:$16 sps:$4 sm:$0xff]  }
  0x91   :  { %538 = vmatpush1.bf16.msra.mxu0 %v5632_v3  ;;  %579 = vmatpush1.bf16.msra.mxu1 %v5634_v4 }
  0x92   :  { %539 = vmatprep.subr.bf16.mxu0 %v5637_v5  ;;  %580 = vmatprep.subr.bf16.mxu1 %v5641_v6 }
  0x93   :  { %569 = vmatprep.mubr.bf16.mxu0 %v7672_v0  ;;  %610 = vmatprep.mubr.bf16.mxu1 %v7672_v0 }
  0x95   :  { %540 = vmatpush1.bf16.msra.mxu0 %v5643_v7  ;;  %581 = vmatpush1.bf16.msra.mxu1 %v5646_v8 }
  0x96   :  { %541 = vmatprep.subr.bf16.mxu0 %v5649_v9  ;;  %582 = vmatprep.subr.bf16.mxu1 %v5651_v10 }
  0x99   :  { %542 = vmatpush1.bf16.msra.mxu0 %v5653_v11  ;;  %583 = vmatpush1.bf16.msra.mxu1 %v5655_v12 }
  0x9a   :  { %543 = vmatprep.subr.bf16.mxu0 %v5659_v13  ;;  %584 = vmatprep.subr.bf16.mxu1 %v5663_v14 }
  0x9d   :  { %544 = vmatpush1.bf16.msra.mxu0 %v5665_v15  ;;  %585 = vmatpush1.bf16.msra.mxu1 %v5669_v16 }
  0x9e   :  { %545 = vmatprep.subr.bf16.mxu0 %v5671_v17  ;;  %586 = vmatprep.subr.bf16.mxu1 %v5675_v18 }
  0xa1   :  { %546 = vmatpush1.bf16.msra.mxu0 %v5677_v19  ;;  %587 = vmatpush1.bf16.msra.mxu1 %v5679_v20 }
  0xa2   :  { %547 = vmatprep.subr.bf16.mxu0 %v5683_v21  ;;  %588 = vmatprep.subr.bf16.mxu1 %v5687_v22 }
  0xa5   :  { %548 = vmatpush1.bf16.msra.mxu0 %v5691_v23  ;;  %589 = vmatpush1.bf16.msra.mxu1 %v5693_v24 }
  0xa6   :  { %549 = vmatprep.subr.bf16.mxu0 %v5697_v25  ;;  %590 = vmatprep.subr.bf16.mxu1 %v5699_v26 }
  0xa9   :  { %550 = vmatpush1.bf16.msra.mxu0 %v5701_v27  ;;  %591 = vmatpush1.bf16.msra.mxu1 %v5703_v28 }
  0xaa   :  { %551 = vmatprep.subr.bf16.mxu0 %v5705_v29  ;;  %592 = vmatprep.subr.bf16.mxu1 %v5707_v30 }
  0xad   :  { %552 = vmatpush1.bf16.msra.mxu0 %v5713_v31  ;;  %593 = vmatpush1.bf16.msra.mxu1 %v5715_v32 }
  0xae   :  { %646 = vmatprep.subr.bf16.mxu0 %v5627_v1  ;;  %687 = vmatprep.subr.bf16.mxu1 %v5629_v2 }
  0xb0   :  { %570 = vmatmul.mubr.bf16.vlgmr.msra.gmra.mrb[4].mxu0 %v536_v36  ;;  %611 = vmatmul.mubr.bf16.vlgmr.msra.gmra.mrb[4].mxu1 %v536_v36  ;;  %v6056_v36 = vld [vmem:[#allocation8 + $0x80] ss:$16 sps:$4 sm:$0xff]  }
  0xb1   :  { %647 = vmatpush1.bf16.msra.mxu0 %v5632_v3  ;;  %688 = vmatpush1.bf16.msra.mxu1 %v5634_v4 }
  0xb2   :  { %648 = vmatprep.subr.bf16.mxu0 %v5637_v5  ;;  %689 = vmatprep.subr.bf16.mxu1 %v5641_v6 }
  0xb3   :  { %678 = vmatprep.mubr.bf16.mxu0 %v7672_v0  ;;  %719 = vmatprep.mubr.bf16.mxu1 %v7672_v0 }
  0xb5   :  { %649 = vmatpush1.bf16.msra.mxu0 %v5643_v7  ;;  %690 = vmatpush1.bf16.msra.mxu1 %v5646_v8 }
  0xb6   :  { %650 = vmatprep.subr.bf16.mxu0 %v5649_v9  ;;  %691 = vmatprep.subr.bf16.mxu1 %v5651_v10 }
  0xb9   :  { %651 = vmatpush1.bf16.msra.mxu0 %v5653_v11  ;;  %692 = vmatpush1.bf16.msra.mxu1 %v5655_v12 }
  0xba   :  { %652 = vmatprep.subr.bf16.mxu0 %v5659_v13  ;;  %693 = vmatprep.subr.bf16.mxu1 %v5663_v14 }
  0xbd   :  { %653 = vmatpush1.bf16.msra.mxu0 %v5665_v15  ;;  %694 = vmatpush1.bf16.msra.mxu1 %v5669_v16 }
  0xbe   :  { %654 = vmatprep.subr.bf16.mxu0 %v5671_v17  ;;  %695 = vmatprep.subr.bf16.mxu1 %v5675_v18 }
  0xc1   :  { %655 = vmatpush1.bf16.msra.mxu0 %v5677_v19  ;;  %696 = vmatpush1.bf16.msra.mxu1 %v5679_v20 }
  0xc2   :  { %656 = vmatprep.subr.bf16.mxu0 %v5683_v21  ;;  %697 = vmatprep.subr.bf16.mxu1 %v5687_v22 }
  0xc5   :  { %657 = vmatpush1.bf16.msra.mxu0 %v5691_v23  ;;  %698 = vmatpush1.bf16.msra.mxu1 %v5693_v24 }
  0xc6   :  { %658 = vmatprep.subr.bf16.mxu0 %v5697_v25  ;;  %699 = vmatprep.subr.bf16.mxu1 %v5699_v26 }
  0xc9   :  { %659 = vmatpush1.bf16.msra.mxu0 %v5701_v27  ;;  %700 = vmatpush1.bf16.msra.mxu1 %v5703_v28 }
  0xca   :  { %660 = vmatprep.subr.bf16.mxu0 %v5705_v29  ;;  %701 = vmatprep.subr.bf16.mxu1 %v5707_v30 }
  0xcd   :  { %661 = vmatpush1.bf16.msra.mxu0 %v5713_v31  ;;  %702 = vmatpush1.bf16.msra.mxu1 %v5715_v32 }
  0xce   :  { %755 = vmatprep.subr.bf16.mxu0 %v5627_v1  ;;  %796 = vmatprep.subr.bf16.mxu1 %v5629_v2 }
  0xd0   :  { %679 = vmatmul.mubr.bf16.vlgmr.msra.gmra.mrb[8].mxu0 %v645_v38  ;;  %720 = vmatmul.mubr.bf16.vlgmr.msra.gmra.mrb[8].mxu1 %v645_v38  ;;  %v6062_v38 = vld [vmem:[#allocation8 + $0xa4] ss:$16 sps:$4 sm:$0xff]  }
  0xd1   :  { %756 = vmatpush1.bf16.msra.mxu0 %v5632_v3  ;;  %797 = vmatpush1.bf16.msra.mxu1 %v5634_v4 }
  0xd2   :  { %757 = vmatprep.subr.bf16.mxu0 %v5637_v5  ;;  %798 = vmatprep.subr.bf16.mxu1 %v5641_v6 }
  0xd3   :  { %787 = vmatprep.mubr.bf16.mxu0 %v7672_v0  ;;  %828 = vmatprep.mubr.bf16.mxu1 %v7672_v0 }
  0xd5   :  { %758 = vmatpush1.bf16.msra.mxu0 %v5643_v7  ;;  %799 = vmatpush1.bf16.msra.mxu1 %v5646_v8 }
  0xd6   :  { %759 = vmatprep.subr.bf16.mxu0 %v5649_v9  ;;  %800 = vmatprep.subr.bf16.mxu1 %v5651_v10 }
  0xd9   :  { %760 = vmatpush1.bf16.msra.mxu0 %v5653_v11  ;;  %801 = vmatpush1.bf16.msra.mxu1 %v5655_v12 }
  0xda   :  { %761 = vmatprep.subr.bf16.mxu0 %v5659_v13  ;;  %802 = vmatprep.subr.bf16.mxu1 %v5663_v14 }
  0xdd   :  { %762 = vmatpush1.bf16.msra.mxu0 %v5665_v15  ;;  %803 = vmatpush1.bf16.msra.mxu1 %v5669_v16 }
  0xde   :  { %763 = vmatprep.subr.bf16.mxu0 %v5671_v17  ;;  %804 = vmatprep.subr.bf16.mxu1 %v5675_v18 }
  0xe1   :  { %764 = vmatpush1.bf16.msra.mxu0 %v5677_v19  ;;  %805 = vmatpush1.bf16.msra.mxu1 %v5679_v20 }
  0xe2   :  { %765 = vmatprep.subr.bf16.mxu0 %v5683_v21  ;;  %806 = vmatprep.subr.bf16.mxu1 %v5687_v22 }
  0xe5   :  { %766 = vmatpush1.bf16.msra.mxu0 %v5691_v23  ;;  %807 = vmatpush1.bf16.msra.mxu1 %v5693_v24 }
  0xe6   :  { %767 = vmatprep.subr.bf16.mxu0 %v5697_v25  ;;  %808 = vmatprep.subr.bf16.mxu1 %v5699_v26 }
  0xe9   :  { %768 = vmatpush1.bf16.msra.mxu0 %v5701_v27  ;;  %809 = vmatpush1.bf16.msra.mxu1 %v5703_v28 }
  0xea   :  { %769 = vmatprep.subr.bf16.mxu0 %v5705_v29  ;;  %810 = vmatprep.subr.bf16.mxu1 %v5707_v30 }
  0xed   :  { %770 = vmatpush1.bf16.msra.mxu0 %v5713_v31  ;;  %811 = vmatpush1.bf16.msra.mxu1 %v5715_v32 }
  0xee   :  { %864 = vmatprep.subr.bf16.mxu0 %v5627_v1  ;;  %905 = vmatprep.subr.bf16.mxu1 %v5629_v2 }
  0xf0   :  { %788 = vmatmul.mubr.bf16.vlgmr.msra.gmra.mrb[12].mxu0 %v754_v40  ;;  %829 = vmatmul.mubr.bf16.vlgmr.msra.gmra.mrb[12].mxu1 %v754_v40  ;;  %v6068_v40 = vld [vmem:[#allocation8 + $0xa0] ss:$16 sps:$4 sm:$0xff]  }
  0xf1   :  { %865 = vmatpush1.bf16.msra.mxu0 %v5632_v3  ;;  %906 = vmatpush1.bf16.msra.mxu1 %v5634_v4 }
  0xf2   :  { %866 = vmatprep.subr.bf16.mxu0 %v5637_v5  ;;  %907 = vmatprep.subr.bf16.mxu1 %v5641_v6 }
  0xf3   :  { %896 = vmatprep.mubr.bf16.mxu0 %v7672_v0  ;;  %937 = vmatprep.mubr.bf16.mxu1 %v7672_v0 }
  0xf5   :  { %867 = vmatpush1.bf16.msra.mxu0 %v5643_v7  ;;  %908 = vmatpush1.bf16.msra.mxu1 %v5646_v8 }
  0xf6   :  { %868 = vmatprep.subr.bf16.mxu0 %v5649_v9  ;;  %909 = vmatprep.subr.bf16.mxu1 %v5651_v10 }
  0xf9   :  { %869 = vmatpush1.bf16.msra.mxu0 %v5653_v11  ;;  %910 = vmatpush1.bf16.msra.mxu1 %v5655_v12 }
  0xfa   :  { %870 = vmatprep.subr.bf16.mxu0 %v5659_v13  ;;  %911 = vmatprep.subr.bf16.mxu1 %v5663_v14 }
  0xfd   :  { %871 = vmatpush1.bf16.msra.mxu0 %v5665_v15  ;;  %912 = vmatpush1.bf16.msra.mxu1 %v5669_v16 }
  0xfe   :  { %872 = vmatprep.subr.bf16.mxu0 %v5671_v17  ;;  %913 = vmatprep.subr.bf16.mxu1 %v5675_v18 }
 0x101   :  { %873 = vmatpush1.bf16.msra.mxu0 %v5677_v19  ;;  %914 = vmatpush1.bf16.msra.mxu1 %v5679_v20 }
 0x102   :  { %874 = vmatprep.subr.bf16.mxu0 %v5683_v21  ;;  %915 = vmatprep.subr.bf16.mxu1 %v5687_v22 }
 0x105   :  { %875 = vmatpush1.bf16.msra.mxu0 %v5691_v23  ;;  %916 = vmatpush1.bf16.msra.mxu1 %v5693_v24 }
 0x106   :  { %876 = vmatprep.subr.bf16.mxu0 %v5697_v25  ;;  %917 = vmatprep.subr.bf16.mxu1 %v5699_v26 }
 0x109   :  { %877 = vmatpush1.bf16.msra.mxu0 %v5701_v27  ;;  %918 = vmatpush1.bf16.msra.mxu1 %v5703_v28 }
 0x10a   :  { %878 = vmatprep.subr.bf16.mxu0 %v5705_v29  ;;  %919 = vmatprep.subr.bf16.mxu1 %v5707_v30 }
 0x10d   :  { %879 = vmatpush1.bf16.msra.mxu0 %v5713_v31  ;;  %920 = vmatpush1.bf16.msra.mxu1 %v5715_v32 }
 0x10e   :  { %973 = vmatprep.subr.bf16.mxu0 %v5627_v1  ;;  %1014 = vmatprep.subr.bf16.mxu1 %v5629_v2 }
 0x110   :  { %897 = vmatmul.mubr.bf16.vlgmr.msra.gmra.mrb[16].mxu0 %v863_v42  ;;  %938 = vmatmul.mubr.bf16.vlgmr.msra.gmra.mrb[16].mxu1 %v863_v42  ;;  %v6074_v42 = vld [vmem:[#allocation8 + $0xc4] ss:$16 sps:$4 sm:$0xff]  }
 0x111   :  { %974 = vmatpush1.bf16.msra.mxu0 %v5632_v3  ;;  %1015 = vmatpush1.bf16.msra.mxu1 %v5634_v4 }
 0x112   :  { %975 = vmatprep.subr.bf16.mxu0 %v5637_v5  ;;  %1016 = vmatprep.subr.bf16.mxu1 %v5641_v6 }
 0x113   :  { %1005 = vmatprep.mubr.bf16.mxu0 %v7672_v0  ;;  %1046 = vmatprep.mubr.bf16.mxu1 %v7672_v0 }
 0x115   :  { %976 = vmatpush1.bf16.msra.mxu0 %v5643_v7  ;;  %1017 = vmatpush1.bf16.msra.mxu1 %v5646_v8 }
 0x116   :  { %977 = vmatprep.subr.bf16.mxu0 %v5649_v9  ;;  %1018 = vmatprep.subr.bf16.mxu1 %v5651_v10 }
 0x119   :  { %978 = vmatpush1.bf16.msra.mxu0 %v5653_v11  ;;  %1019 = vmatpush1.bf16.msra.mxu1 %v5655_v12 }
 0x11a   :  { %979 = vmatprep.subr.bf16.mxu0 %v5659_v13  ;;  %1020 = vmatprep.subr.bf16.mxu1 %v5663_v14 }
 0x11d   :  { %980 = vmatpush1.bf16.msra.mxu0 %v5665_v15  ;;  %1021 = vmatpush1.bf16.msra.mxu1 %v5669_v16 }
 0x11e   :  { %981 = vmatprep.subr.bf16.mxu0 %v5671_v17  ;;  %1022 = vmatprep.subr.bf16.mxu1 %v5675_v18 }
 0x121   :  { %982 = vmatpush1.bf16.msra.mxu0 %v5677_v19  ;;  %1023 = vmatpush1.bf16.msra.mxu1 %v5679_v20 }
 0x122   :  { %983 = vmatprep.subr.bf16.mxu0 %v5683_v21  ;;  %1024 = vmatprep.subr.bf16.mxu1 %v5687_v22 }
 0x125   :  { %984 = vmatpush1.bf16.msra.mxu0 %v5691_v23  ;;  %1025 = vmatpush1.bf16.msra.mxu1 %v5693_v24 }
 0x126   :  { %985 = vmatprep.subr.bf16.mxu0 %v5697_v25  ;;  %1026 = vmatprep.subr.bf16.mxu1 %v5699_v26 }
 0x129   :  { %986 = vmatpush1.bf16.msra.mxu0 %v5701_v27  ;;  %1027 = vmatpush1.bf16.msra.mxu1 %v5703_v28 }
 0x12a   :  { %987 = vmatprep.subr.bf16.mxu0 %v5705_v29  ;;  %1028 = vmatprep.subr.bf16.mxu1 %v5707_v30 }
 0x12d   :  { %988 = vmatpush1.bf16.msra.mxu0 %v5713_v31  ;;  %1029 = vmatpush1.bf16.msra.mxu1 %v5715_v32 }
 0x12e   :  { %1082 = vmatprep.subr.bf16.mxu0 %v5627_v1  ;;  %1123 = vmatprep.subr.bf16.mxu1 %v5629_v2 }
 0x130   :  { %1006 = vmatmul.mubr.bf16.vlgmr.msra.gmra.mrb[20].mxu0 %v972_v44  ;;  %1047 = vmatmul.mubr.bf16.vlgmr.msra.gmra.mrb[20].mxu1 %v972_v44 }
 0x131   :  { %1083 = vmatpush1.bf16.msra.mxu0 %v5632_v3  ;;  %1124 = vmatpush1.bf16.msra.mxu1 %v5634_v4 }
 0x132   :  { %1084 = vmatprep.subr.bf16.mxu0 %v5637_v5  ;;  %1125 = vmatprep.subr.bf16.mxu1 %v5641_v6 }
 0x133   :  { %1114 = vmatprep.mubr.bf16.mxu0 %v7672_v0  ;;  %1155 = vmatprep.mubr.bf16.mxu1 %v7672_v0 }
 0x135   :  { %1085 = vmatpush1.bf16.msra.mxu0 %v5643_v7  ;;  %1126 = vmatpush1.bf16.msra.mxu1 %v5646_v8 }
 0x136   :  { %1086 = vmatprep.subr.bf16.mxu0 %v5649_v9  ;;  %1127 = vmatprep.subr.bf16.mxu1 %v5651_v10 }
 0x139   :  { %1087 = vmatpush1.bf16.msra.mxu0 %v5653_v11  ;;  %1128 = vmatpush1.bf16.msra.mxu1 %v5655_v12 }
 0x13a   :  { %1088 = vmatprep.subr.bf16.mxu0 %v5659_v13  ;;  %1129 = vmatprep.subr.bf16.mxu1 %v5663_v14 }
 0x13d   :  { %1089 = vmatpush1.bf16.msra.mxu0 %v5665_v15  ;;  %1130 = vmatpush1.bf16.msra.mxu1 %v5669_v16 }
 0x13e   :  { %1090 = vmatprep.subr.bf16.mxu0 %v5671_v17  ;;  %1131 = vmatprep.subr.bf16.mxu1 %v5675_v18 }
 0x141   :  { %1091 = vmatpush1.bf16.msra.mxu0 %v5677_v19  ;;  %1132 = vmatpush1.bf16.msra.mxu1 %v5679_v20 }
 0x142   :  { %1092 = vmatprep.subr.bf16.mxu0 %v5683_v21  ;;  %1133 = vmatprep.subr.bf16.mxu1 %v5687_v22 }
 0x145   :  { %1093 = vmatpush1.bf16.msra.mxu0 %v5691_v23  ;;  %1134 = vmatpush1.bf16.msra.mxu1 %v5693_v24 }
 0x146   :  { %1094 = vmatprep.subr.bf16.mxu0 %v5697_v25  ;;  %1135 = vmatprep.subr.bf16.mxu1 %v5699_v26 }
 0x149   :  { %1095 = vmatpush1.bf16.msra.mxu0 %v5701_v27  ;;  %1136 = vmatpush1.bf16.msra.mxu1 %v5703_v28 }
 0x14a   :  { %1096 = vmatprep.subr.bf16.mxu0 %v5705_v29  ;;  %1137 = vmatprep.subr.bf16.mxu1 %v5707_v30 }
 0x14d   :  { %1097 = vmatpush1.bf16.msra.mxu0 %v5713_v31  ;;  %1138 = vmatpush1.bf16.msra.mxu1 %v5715_v32 }
 0x14e   :  { %1191 = vmatprep.subr.bf16.mxu0 %v5627_v1  ;;  %1232 = vmatprep.subr.bf16.mxu1 %v5629_v2 }
 0x150   :  { %1115 = vmatmul.mubr.bf16.vlgmr.msra.gmra.mrb[24].mxu0 %v1081_v46  ;;  %1156 = vmatmul.mubr.bf16.vlgmr.msra.gmra.mrb[24].mxu1 %v1081_v46 }
 0x151   :  { %1192 = vmatpush1.bf16.msra.mxu0 %v5632_v3  ;;  %1233 = vmatpush1.bf16.msra.mxu1 %v5634_v4 }
 0x152   :  { %1193 = vmatprep.subr.bf16.mxu0 %v5637_v5  ;;  %1234 = vmatprep.subr.bf16.mxu1 %v5641_v6  ;;  %v5981_v5 = vsub.s32 %v519_v59, %v5940_v48  ;;  %v6184_v48 = vld [vmem:[#allocation11 + $0x60] ss:$16 sps:$4 sm:$0xff]  }
 0x153   :  { %1223 = vmatprep.mubr.bf16.mxu0 %v7672_v0  ;;  %1264 = vmatprep.mubr.bf16.mxu1 %v7672_v0  ;;  %8047 = vst [vmem:[#allocation35_spill] sm:$0xff] %v6184_v48 }
 0x155   :  { %1194 = vmatpush1.bf16.msra.mxu0 %v5643_v7  ;;  %1235 = vmatpush1.bf16.msra.mxu1 %v5646_v8 }
 0x156   :  { %1195 = vmatprep.subr.bf16.mxu0 %v5649_v9  ;;  %1236 = vmatprep.subr.bf16.mxu1 %v5651_v10 }
 0x159   :  { %1196 = vmatpush1.bf16.msra.mxu0 %v5653_v11  ;;  %1237 = vmatpush1.bf16.msra.mxu1 %v5655_v12 }
 0x15a   :  { %1197 = vmatprep.subr.bf16.mxu0 %v5659_v13  ;;  %1238 = vmatprep.subr.bf16.mxu1 %v5663_v14 }
 0x15d   :  { %1198 = vmatpush1.bf16.msra.mxu0 %v5665_v15  ;;  %1239 = vmatpush1.bf16.msra.mxu1 %v5669_v16  ;;  %v1189_v15 = vld [vmem:[#allocation3 + $0xe] sm:$0x3]  ;;  %v5998_v16 = vld [vmem:[#allocation8 + $0x4] ss:$16 sps:$4 sm:$0xff]  }
 0x15e   :  { %1199 = vmatprep.subr.bf16.mxu0 %v5671_v17  ;;  %1240 = vmatprep.subr.bf16.mxu1 %v5675_v18  ;;  %v6000_v17 = vld [vmem:[#allocation8 + $0xc] ss:$16 sps:$4 sm:$0xff]  }
 0x161   :  { %1200 = vmatpush1.bf16.msra.mxu0 %v5677_v19  ;;  %1241 = vmatpush1.bf16.msra.mxu1 %v5679_v20  ;;  %v1190_v19 = vpack.c.bf16 %v1189_v15, %v1189_v15  ;;  %v6006_v20 = vld [vmem:[#allocation8] ss:$16 sps:$4 sm:$0xff]   ;;  %v6104_v15 = vld [vmem:[#allocation8 + $0xe8] ss:$16 sps:$4 sm:$0xff]  }
 0x162   :  { %1201 = vmatprep.subr.bf16.mxu0 %v5683_v21  ;;  %1242 = vmatprep.subr.bf16.mxu1 %v5687_v22  ;;  %v6008_v21 = vld [vmem:[#allocation8 + $0x8] ss:$16 sps:$4 sm:$0xff]   ;;  %v6012_v22 = vld [vmem:[#allocation8 + $0x24] ss:$16 sps:$4 sm:$0xff]  }
 0x163   :  { %v463_v61 = vpop.f32.mrb[0].mxu0  ;;  %v504_v62 = vpop.f32.mrb[0].mxu1 }
 0x164   :  { %v464_v63 = vadd.f32 %v463_v61, %v5959_v56  ;;  %v505_v1 = vadd.f32 %v504_v62, %v5963_v57  ;;  %v465_v2 = vpop.f32.mrb[1].mxu0  ;;  %v506_v3 = vpop.f32.mrb[1].mxu1 }
 0x165   :  { %v466_v4 = vadd.f32 %v465_v2, %v5969_v58  ;;  %v507_v6 = vadd.f32 %v506_v3, %v5973_v60  ;;  %v467_v7 = vpop.f32.mrb[2].mxu0  ;;  %v508_v8 = vpop.f32.mrb[2].mxu1  ;;  %1202 = vmatpush1.bf16.msra.mxu0 %v5691_v23  ;;  %1243 = vmatpush1.bf16.msra.mxu1 %v5693_v24  ;;  %v6014_v23 = vld [vmem:[#allocation8 + $0x2c] ss:$16 sps:$4 sm:$0xff]   ;;  %v6018_v24 = vld [vmem:[#allocation8 + $0x20] ss:$16 sps:$4 sm:$0xff]  }
 0x166   :  { %v468_v9 = vpop.f32.mrb[3].mxu0  ;;  %v509_v10 = vpop.f32.mrb[3].mxu1  ;;  %1203 = vmatprep.subr.bf16.mxu0 %v5697_v25  ;;  %1244 = vmatprep.subr.bf16.mxu1 %v5699_v26  ;;  %v6020_v25 = vld [vmem:[#allocation8 + $0x28] ss:$16 sps:$4 sm:$0xff]   ;;  %v6024_v26 = vld [vmem:[#allocation8 + $0x44] ss:$16 sps:$4 sm:$0xff]  }
 0x167   :  { %v515_v11 = vcombine.low %v464_v63, %v466_v4  ;;  %v516_v12 = vcombine.low %v505_v1, %v507_v6  ;;  %v6084_v1 = vld [vmem:[#allocation8 + $0xc0] ss:$16 sps:$4 sm:$0xff]   ;;  %v6086_v2 = vld [vmem:[#allocation8 + $0xc8] ss:$16 sps:$4 sm:$0xff]   ;;  %v6090_v6 = vld [vmem:[#allocation8 + $0xe4] ss:$16 sps:$4 sm:$0xff]  }
 0x168   :  { %v6092_v7 = vld [vmem:[#allocation8 + $0xec] ss:$16 sps:$4 sm:$0xff]  }
 0x169   :  { %v5989_v13 = vrot.slane %v515_v11, %v5981_v5  ;;  %v5992_v14 = vrot.slane %v516_v12, %v5981_v5  ;;  %1204 = vmatpush1.bf16.msra.mxu0 %v5701_v27  ;;  %1245 = vmatpush1.bf16.msra.mxu1 %v5703_v28  ;;  %v6026_v27 = vld [vmem:[#allocation8 + $0x4c] ss:$16 sps:$4 sm:$0xff]   ;;  %v6032_v28 = vld [vmem:[#allocation8 + $0x40] ss:$16 sps:$4 sm:$0xff]  }
 0x16a   :  { %1205 = vmatprep.subr.bf16.mxu0 %v5705_v29  ;;  %1246 = vmatprep.subr.bf16.mxu1 %v5707_v30  ;;  %v6034_v29 = vld [vmem:[#allocation8 + $0x48] ss:$16 sps:$4 sm:$0xff]   ;;  %v6038_v30 = vld [vmem:[#allocation8 + $0x64] ss:$16 sps:$4 sm:$0xff]   ;;  %v6102_v12 = vld [vmem:[#allocation8 + $0xe0] ss:$16 sps:$4 sm:$0xff]  }
 0x16d   :  { %1206 = vmatpush1.bf16.msra.mxu0 %v5713_v31  ;;  %1247 = vmatpush1.bf16.msra.mxu1 %v5715_v32  ;;  %v6040_v31 = vld [vmem:[#allocation8 + $0x6c] ss:$16 sps:$4 sm:$0xff]   ;;  %v6044_v32 = vld [vmem:[#allocation8 + $0x60] ss:$16 sps:$4 sm:$0xff]  }
 0x16e   :  { %1458 = vmatprep.subr.bf16.mxu0 %v5998_v16  ;;  %1499 = vmatprep.subr.bf16.mxu1 %v6000_v17 }
 0x170   :  { %1224 = vmatmul.mubr.bf16.vlgmr.msra.gmra.mrb[28].mxu0 %v1190_v19  ;;  %1265 = vmatmul.mubr.bf16.vlgmr.msra.gmra.mrb[28].mxu1 %v1190_v19 }
 0x171   :  { %1459 = vmatpush1.bf16.msra.mxu0 %v6006_v20  ;;  %1500 = vmatpush1.bf16.msra.mxu1 %v6008_v21 }
 0x172   :  { %1460 = vmatprep.subr.bf16.mxu0 %v6012_v22  ;;  %1501 = vmatprep.subr.bf16.mxu1 %v6014_v23 }
 0x173   :  { %1490 = vmatprep.mubr.bf16.mxu0 %v7672_v0  ;;  %1531 = vmatprep.mubr.bf16.mxu1 %v7672_v0 }
 0x175   :  { %1461 = vmatpush1.bf16.msra.mxu0 %v6018_v24  ;;  %1502 = vmatpush1.bf16.msra.mxu1 %v6020_v25 }
 0x176   :  { %1462 = vmatprep.subr.bf16.mxu0 %v6024_v26  ;;  %1503 = vmatprep.subr.bf16.mxu1 %v6026_v27 }
 0x179   :  { %1463 = vmatpush1.bf16.msra.mxu0 %v6032_v28  ;;  %1504 = vmatpush1.bf16.msra.mxu1 %v6034_v29 }
 0x17a   :  { %1464 = vmatprep.subr.bf16.mxu0 %v6038_v30  ;;  %1505 = vmatprep.subr.bf16.mxu1 %v6040_v31 }
 0x17d   :  { %1465 = vmatpush1.bf16.msra.mxu0 %v6044_v32  ;;  %1506 = vmatpush1.bf16.msra.mxu1 %v6046_v33 }
 0x17e   :  { %1466 = vmatprep.subr.bf16.mxu0 %v6050_v34  ;;  %1507 = vmatprep.subr.bf16.mxu1 %v6052_v35 }
 0x181   :  { %1467 = vmatpush1.bf16.msra.mxu0 %v6056_v36  ;;  %1508 = vmatpush1.bf16.msra.mxu1 %v6058_v37 }
 0x182   :  { %1468 = vmatprep.subr.bf16.mxu0 %v6062_v38  ;;  %1509 = vmatprep.subr.bf16.mxu1 %v6064_v39 }
 0x183   :  { %v571_v44 = vpop.f32.mrb[4].mxu0  ;;  %v612_v45 = vpop.f32.mrb[4].mxu1 }
 0x184   :  { %v572_v46 = vadd.f32 %v571_v44, %v5959_v56  ;;  %v613_v51 = vadd.f32 %v612_v45, %v5963_v57  ;;  %v573_v53 = vpop.f32.mrb[5].mxu0  ;;  %v614_v54 = vpop.f32.mrb[5].mxu1 }
 0x185   :  { %v574_v59 = vadd.f32 %v573_v53, %v5969_v58  ;;  %v615_v61 = vadd.f32 %v614_v54, %v5973_v60  ;;  %v575_v62 = vpop.f32.mrb[6].mxu0  ;;  %v616_v63 = vpop.f32.mrb[6].mxu1  ;;  %1469 = vmatpush1.bf16.msra.mxu0 %v6068_v40  ;;  %1510 = vmatpush1.bf16.msra.mxu1 %v6070_v41 }
 0x186   :  { %v576_v3 = vpop.f32.mrb[7].mxu0  ;;  %v617_v4 = vpop.f32.mrb[7].mxu1  ;;  %1470 = vmatprep.subr.bf16.mxu0 %v6074_v42  ;;  %1511 = vmatprep.subr.bf16.mxu1 %v6076_v43 }
 0x187   :  { %v623_v8 = vcombine.low %v572_v46, %v574_v59  ;;  %v624_v9 = vcombine.low %v613_v51, %v615_v61 }
 0x189   :  { %v6095_v10 = vrot.slane %v623_v8, %v5981_v5  ;;  %v6098_v11 = vrot.slane %v624_v9, %v5981_v5  ;;  %1471 = vmatpush1.bf16.msra.mxu0 %v6084_v1  ;;  %1512 = vmatpush1.bf16.msra.mxu1 %v6086_v2 }
 0x18a   :  { %1472 = vmatprep.subr.bf16.mxu0 %v6090_v6  ;;  %1513 = vmatprep.subr.bf16.mxu1 %v6092_v7 }
 0x18b   :  { %8033 = vst [vmem:[#allocation21_spill] sm:$0xff] %v6095_v10  ;;  %8034 = vst [vmem:[#allocation22_spill] sm:$0xff] %v6098_v11 }
 0x18d   :  { %1473 = vmatpush1.bf16.msra.mxu0 %v6102_v12  ;;  %1514 = vmatpush1.bf16.msra.mxu1 %v6104_v15 }
 0x190   :  { %1491 = vmatmul.mubr.bf16.vlgmr.msra.gmra.mrb[32].mxu0 %v7672_v0  ;;  %1532 = vmatmul.mubr.bf16.vlgmr.msra.gmra.mrb[32].mxu1 %v7672_v0 }
 0x191   :  { %1776 = vmatprep.mubr.bf16.mxu0 %v7672_v0  ;;  %1817 = vmatprep.mubr.bf16.mxu1 %v7672_v0 }
 0x1a3   :  { %v680_v44 = vpop.f32.mrb[8].mxu0  ;;  %v721_v45 = vpop.f32.mrb[8].mxu1 }
 0x1a4   :  { %v681_v46 = vadd.f32 %v680_v44, %v5959_v56  ;;  %v722_v51 = vadd.f32 %v721_v45, %v5963_v57  ;;  %v682_v53 = vpop.f32.mrb[9].mxu0  ;;  %v723_v54 = vpop.f32.mrb[9].mxu1 }
 0x1a5   :  { %v683_v59 = vadd.f32 %v682_v53, %v5969_v58  ;;  %v724_v61 = vadd.f32 %v723_v54, %v5973_v60  ;;  %v684_v62 = vpop.f32.mrb[10].mxu0  ;;  %v725_v63 = vpop.f32.mrb[10].mxu1 }
 0x1a6   :  { %v685_v3 = vpop.f32.mrb[11].mxu0  ;;  %v726_v4 = vpop.f32.mrb[11].mxu1 }
 0x1a7   :  { %v732_v8 = vcombine.low %v681_v46, %v683_v59  ;;  %v733_v9 = vcombine.low %v722_v51, %v724_v61 }
 0x1a9   :  { %v6121_v47 = vrot.slane %v732_v8, %v5981_v5  ;;  %v6124_v19 = vrot.slane %v733_v9, %v5981_v5 }
 0x1ab   :  { %8035 = vst [vmem:[#allocation23_spill] sm:$0xff] %v6121_v47  ;;  %8036 = vst [vmem:[#allocation24_spill] sm:$0xff] %v6124_v19 }
 0x1c3   :  { %v789_v45 = vpop.f32.mrb[12].mxu0  ;;  %v830_v55 = vpop.f32.mrb[12].mxu1 }
 0x1c4   :  { %v790_v53 = vadd.f32 %v789_v45, %v5959_v56  ;;  %v831_v54 = vadd.f32 %v830_v55, %v5963_v57  ;;  %v791_v62 = vpop.f32.mrb[13].mxu0  ;;  %v832_v63 = vpop.f32.mrb[13].mxu1  ;;  %v6140_v45 = vld [vmem:[#allocation11 + $0x4] ss:$16 sps:$4 sm:$0xff]  }
 0x1c5   :  { %v792_v46 = vadd.f32 %v791_v62, %v5969_v58  ;;  %v833_v51 = vadd.f32 %v832_v63, %v5973_v60  ;;  %v793_v59 = vpop.f32.mrb[14].mxu0  ;;  %v834_v61 = vpop.f32.mrb[14].mxu1  ;;  %v6142_v62 = vld [vmem:[#allocation11 + $0xc] ss:$16 sps:$4 sm:$0xff]   ;;  %v6144_v63 = vld [vmem:[#allocation11] ss:$16 sps:$4 sm:$0xff]   ;;  %1744 = vmatprep.subr.bf16.mxu0 %v6140_v45 }
 0x1c6   :  { %v794_v3 = vpop.f32.mrb[15].mxu0  ;;  %v835_v4 = vpop.f32.mrb[15].mxu1  ;;  %v6146_v59 = vld [vmem:[#allocation11 + $0x8] ss:$16 sps:$4 sm:$0xff]   ;;  %v6148_v61 = vld [vmem:[#allocation11 + $0x24] ss:$16 sps:$4 sm:$0xff]   ;;  %1785 = vmatprep.subr.bf16.mxu1 %v6142_v62  ;;  %1745 = vmatpush1.bf16.msra.mxu0 %v6144_v63 }
 0x1c7   :  { %v841_v8 = vcombine.low %v790_v53, %v792_v46  ;;  %v842_v9 = vcombine.low %v831_v54, %v833_v51  ;;  %v6150_v53 = vld [vmem:[#allocation11 + $0x2c] ss:$16 sps:$4 sm:$0xff]   ;;  %1786 = vmatpush1.bf16.msra.mxu1 %v6146_v59  ;;  %v6156_v54 = vld [vmem:[#allocation11 + $0x20] ss:$16 sps:$4 sm:$0xff]   ;;  %v6158_v46 = vld [vmem:[#allocation11 + $0x28] ss:$16 sps:$4 sm:$0xff]   ;;  %1746 = vmatprep.subr.bf16.mxu0 %v6148_v61 }
 0x1c8   :  { %8039 = vst [vmem:[#allocation27_spill] sm:$0xff] %v6156_v54  ;;  %8040 = vst [vmem:[#allocation28_spill] sm:$0xff] %v6158_v46  ;;  %1787 = vmatprep.subr.bf16.mxu1 %v6150_v53  ;;  %v6162_v51 = vld [vmem:[#allocation11 + $0x44] ss:$16 sps:$4 sm:$0xff]   ;;  %v6164_v3 = vld [vmem:[#allocation11 + $0x4c] ss:$16 sps:$4 sm:$0xff]  }
 0x1c9   :  { %v6133_v44 = vrot.slane %v841_v8, %v5981_v5  ;;  %v6136_v50 = vrot.slane %v842_v9, %v5981_v5  ;;  %8041 = vst [vmem:[#allocation29_spill] sm:$0xff] %v6162_v51  ;;  %8042 = vst [vmem:[#allocation30_spill] sm:$0xff] %v6164_v3  ;;  %v6168_v4 = vld [vmem:[#allocation11 + $0x40] ss:$16 sps:$4 sm:$0xff]   ;;  %v6170_v8 = vld [vmem:[#allocation11 + $0x48] ss:$16 sps:$4 sm:$0xff]  }
 0x1ca   :  { %1747 = vmatpush1.bf16.msra.mxu0 %v6156_v54  ;;  %8043 = vst [vmem:[#allocation31_spill] sm:$0xff] %v6168_v4  ;;  %8044 = vst [vmem:[#allocation32_spill] sm:$0xff] %v6170_v8  ;;  %v6296_v54 = vld [vmem:[#allocation9 + $0x60] ss:$16 sps:$4 sm:$0xff]  }
 0x1cb   :  { %8037 = vst [vmem:[#allocation25_spill] sm:$0xff] %v6133_v44  ;;  %8038 = vst [vmem:[#allocation26_spill] sm:$0xff] %v6136_v50  ;;  %1788 = vmatpush1.bf16.msra.mxu1 %v6158_v46  ;;  %1748 = vmatprep.subr.bf16.mxu0 %v6162_v51  ;;  %v6178_v50 = vld [vmem:[#allocation11 + $0x64] ss:$16 sps:$4 sm:$0xff]   ;;  %v6180_v44 = vld [vmem:[#allocation11 + $0x6c] ss:$16 sps:$4 sm:$0xff]  }
 0x1cc   :  { %1789 = vmatprep.subr.bf16.mxu1 %v6164_v3  ;;  %8045 = vst [vmem:[#allocation33_spill] sm:$0xff] %v6178_v50  ;;  %8046 = vst [vmem:[#allocation34_spill] sm:$0xff] %v6180_v44  ;;  %v6292_v51 = vld [vmem:[#allocation9 + $0x64] ss:$16 sps:$4 sm:$0xff]  }
 0x1cd   :  { %8078 = vst [vmem:[#allocation65_spill] sm:$0xff] %v6292_v51  ;;  %8080 = vst [vmem:[#allocation67_spill] sm:$0xff] %v6296_v54 }
 0x1ce   :  { %1749 = vmatpush1.bf16.msra.mxu0 %v6168_v4 }
 0x1cf   :  { %1790 = vmatpush1.bf16.msra.mxu1 %v6170_v8  ;;  %v6186_v8 = vld [vmem:[#allocation11 + $0x68] ss:$16 sps:$4 sm:$0xff]   ;;  %1750 = vmatprep.subr.bf16.mxu0 %v6178_v50 }
 0x1d0   :  { %8048 = vst [vmem:[#allocation36_spill] sm:$0xff] %v6186_v8  ;;  %1791 = vmatprep.subr.bf16.mxu1 %v6180_v44 }
 0x1d2   :  { %1751 = vmatpush1.bf16.msra.mxu0 %v6184_v48 }
 0x1d3   :  { %1792 = vmatpush1.bf16.msra.mxu1 %v6186_v8 }
 0x1e3   :  { %v898_v9 = vpop.f32.mrb[16].mxu0  ;;  %v939_v55 = vpop.f32.mrb[16].mxu1 }
 0x1e4   :  { %v899_v52 = vadd.f32 %v898_v9, %v5959_v56  ;;  %v940_v49 = vadd.f32 %v939_v55, %v5963_v57  ;;  %v900_v18 = vpop.f32.mrb[17].mxu0  ;;  %v941_v0 = vpop.f32.mrb[17].mxu1 }
 0x1e5   :  { %v901_v19 = vadd.f32 %v900_v18, %v5969_v58  ;;  %v942_v47 = vadd.f32 %v941_v0, %v5973_v60  ;;  %v902_v11 = vpop.f32.mrb[18].mxu0  ;;  %v943_v10 = vpop.f32.mrb[18].mxu1  ;;  %v6192_v18 = vld [vmem:[#allocation11 + $0x84] ss:$16 sps:$4 sm:$0xff]   ;;  %v6194_v0 = vld [vmem:[#allocation11 + $0x8c] ss:$16 sps:$4 sm:$0xff]  }
 0x1e6   :  { %v903_v4 = vpop.f32.mrb[19].mxu0  ;;  %v944_v9 = vpop.f32.mrb[19].mxu1  ;;  %8049 = vst [vmem:[#allocation37_spill] sm:$0xff] %v6192_v18  ;;  %8050 = vst [vmem:[#allocation38_spill] sm:$0xff] %v6194_v0  ;;  %1752 = vmatprep.subr.bf16.mxu0 %v6192_v18  ;;  %1793 = vmatprep.subr.bf16.mxu1 %v6194_v0  ;;  %v6282_v0 = vld [vmem:[#allocation9 + $0x48] ss:$16 sps:$4 sm:$0xff]  }
 0x1e7   :  { %v950_v55 = vcombine.low %v899_v52, %v901_v19  ;;  %v951_v3 = vcombine.low %v940_v49, %v942_v47  ;;  %v6202_v4 = vld [vmem:[#allocation11 + $0x80] ss:$16 sps:$4 sm:$0xff]   ;;  %v6204_v9 = vld [vmem:[#allocation11 + $0x88] ss:$16 sps:$4 sm:$0xff]   ;;  %v6212_v49 = vld [vmem:[#allocation11 + $0xa4] ss:$16 sps:$4 sm:$0xff]  }
 0x1e8   :  { %8053 = vst [vmem:[#allocation41_spill] sm:$0xff] %v6202_v4  ;;  %8054 = vst [vmem:[#allocation42_spill] sm:$0xff] %v6204_v9  ;;  %1753 = vmatpush1.bf16.msra.mxu0 %v6202_v4  ;;  %1794 = vmatpush1.bf16.msra.mxu1 %v6204_v9  ;;  %v6214_v52 = vld [vmem:[#allocation11 + $0xac] ss:$16 sps:$4 sm:$0xff]   ;;  %v6216_v19 = vld [vmem:[#allocation11 + $0xa0] ss:$16 sps:$4 sm:$0xff]  }
 0x1e9   :  { %v6197_v10 = vrot.slane %v950_v55, %v5981_v5  ;;  %v6200_v11 = vrot.slane %v951_v3, %v5981_v5  ;;  %8055 = vst [vmem:[#allocation43_spill] sm:$0xff] %v6212_v49  ;;  %8056 = vst [vmem:[#allocation44_spill] sm:$0xff] %v6214_v52  ;;  %v6218_v3 = vld [vmem:[#allocation11 + $0xa8] ss:$16 sps:$4 sm:$0xff]   ;;  %1754 = vmatprep.subr.bf16.mxu0 %v6212_v49  ;;  %1795 = vmatprep.subr.bf16.mxu1 %v6214_v52  ;;  %v6224_v55 = vld [vmem:[#allocation11 + $0xc4] ss:$16 sps:$4 sm:$0xff]  }
 0x1ea   :  { %8057 = vst [vmem:[#allocation45_spill] sm:$0xff] %v6216_v19  ;;  %8058 = vst [vmem:[#allocation46_spill] sm:$0xff] %v6218_v3  ;;  %v6226_v47 = vld [vmem:[#allocation11 + $0xcc] ss:$16 sps:$4 sm:$0xff]   ;;  %v6236_v52 = vld [vmem:[#allocation11 + $0xe4] ss:$16 sps:$4 sm:$0xff]  }
 0x1eb   :  { %8051 = vst [vmem:[#allocation39_spill] sm:$0xff] %v6197_v10  ;;  %8052 = vst [vmem:[#allocation40_spill] sm:$0xff] %v6200_v11  ;;  %v6228_v11 = vld [vmem:[#allocation11 + $0xc0] ss:$16 sps:$4 sm:$0xff]   ;;  %v6230_v10 = vld [vmem:[#allocation11 + $0xc8] ss:$16 sps:$4 sm:$0xff]  }
 0x1ec   :  { %1755 = vmatpush1.bf16.msra.mxu0 %v6216_v19  ;;  %1796 = vmatpush1.bf16.msra.mxu1 %v6218_v3  ;;  %8059 = vst [vmem:[#allocation47_spill] sm:$0xff] %v6224_v55  ;;  %8060 = vst [vmem:[#allocation48_spill] sm:$0xff] %v6226_v47  ;;  %v6238_v19 = vld [vmem:[#allocation11 + $0xec] ss:$16 sps:$4 sm:$0xff]   ;;  %v6240_v3 = vld [vmem:[#allocation11 + $0xe0] ss:$16 sps:$4 sm:$0xff]  }
 0x1ed   :  { %8061 = vst [vmem:[#allocation49_spill] sm:$0xff] %v6228_v11  ;;  %8062 = vst [vmem:[#allocation50_spill] sm:$0xff] %v6230_v10  ;;  %1756 = vmatprep.subr.bf16.mxu0 %v6224_v55  ;;  %1797 = vmatprep.subr.bf16.mxu1 %v6226_v47  ;;  %v6242_v49 = vld [vmem:[#allocation11 + $0xe8] ss:$16 sps:$4 sm:$0xff]   ;;  %v8067_v47 = vmov 0  }
 0x1ee   :  { %8063 = vst [vmem:[#allocation51_spill] sm:$0xff] %v6236_v52  ;;  %8064 = vst [vmem:[#allocation52_spill] sm:$0xff] %v6238_v19  ;;  %v6254_v55 = vld [vmem:[#allocation9] ss:$16 sps:$4 sm:$0xff]   ;;  %v6256_v9 = vld [vmem:[#allocation9 + $0x8] ss:$16 sps:$4 sm:$0xff]  }
 0x1ef   :  { %8065 = vst [vmem:[#allocation53_spill] sm:$0xff] %v6240_v3  ;;  %8066 = vst [vmem:[#allocation54_spill] sm:$0xff] %v6242_v49  ;;  %v6280_v4 = vld [vmem:[#allocation9 + $0x40] ss:$16 sps:$4 sm:$0xff]  }
 0x1f0   :  { %1757 = vmatpush1.bf16.msra.mxu0 %v6228_v11  ;;  %1798 = vmatpush1.bf16.msra.mxu1 %v6230_v10  ;;  %v6250_v10 = vld [vmem:[#allocation9 + $0x4] ss:$16 sps:$4 sm:$0xff]   ;;  %v6252_v11 = vld [vmem:[#allocation9 + $0xc] ss:$16 sps:$4 sm:$0xff]   ;;  %8070 = vst [vmem:[#allocation57_spill] sm:$0xff] %v6254_v55  ;;  %8071 = vst [vmem:[#allocation58_spill] sm:$0xff] %v6256_v9 }
 0x1f1   :  { %1758 = vmatprep.subr.bf16.mxu0 %v6236_v52  ;;  %1799 = vmatprep.subr.bf16.mxu1 %v6238_v19  ;;  %8068 = vst [vmem:[#allocation55_spill] sm:$0xff] %v6250_v10  ;;  %8069 = vst [vmem:[#allocation56_spill] sm:$0xff] %v6252_v11  ;;  %v6268_v19 = vld [vmem:[#allocation9 + $0x20] ss:$16 sps:$4 sm:$0xff]   ;;  %v6270_v52 = vld [vmem:[#allocation9 + $0x28] ss:$16 sps:$4 sm:$0xff]  }
 0x1f2   :  { %8074 = vst [vmem:[#allocation61_spill] sm:$0xff] %v6268_v19  ;;  %8075 = vst [vmem:[#allocation62_spill] sm:$0xff] %v6270_v52 }
 0x1f4   :  { %1759 = vmatpush1.bf16.msra.mxu0 %v6240_v3  ;;  %1800 = vmatpush1.bf16.msra.mxu1 %v6242_v49  ;;  %v6264_v49 = vld [vmem:[#allocation9 + $0x24] ss:$16 sps:$4 sm:$0xff]   ;;  %v6266_v3 = vld [vmem:[#allocation9 + $0x2c] ss:$16 sps:$4 sm:$0xff]  }
 0x1f5   :  { %1986 = vmatprep.subr.bf16.mxu0 %v6250_v10  ;;  %2027 = vmatprep.subr.bf16.mxu1 %v6252_v11  ;;  %8072 = vst [vmem:[#allocation59_spill] sm:$0xff] %v6264_v49  ;;  %8073 = vst [vmem:[#allocation60_spill] sm:$0xff] %v6266_v3  ;;  %v6276_v11 = vld [vmem:[#allocation9 + $0x44] ss:$16 sps:$4 sm:$0xff]  }
 0x1f6   :  { %8076 = vst [vmem:[#allocation63_spill] sm:$0xff] %v6276_v11 }
 0x1f7   :  { %1777 = vmatmul.mubr.bf16.vlgmr.msra.gmra.mrb[36].mxu0 %v8067_v47  ;;  %1818 = vmatmul.mubr.bf16.vlgmr.msra.gmra.mrb[36].mxu1 %v8067_v47 }
 0x1f8   :  { %2018 = vmatprep.mubr.bf16.mxu0 %v8067_v47  ;;  %2059 = vmatprep.mubr.bf16.mxu1 %v8067_v47 }
 0x1f9   :  { %1987 = vmatpush1.bf16.msra.mxu0 %v6254_v55  ;;  %2028 = vmatpush1.bf16.msra.mxu1 %v6256_v9  ;;  %v6278_v55 = vld [vmem:[#allocation9 + $0x4c] ss:$16 sps:$4 sm:$0xff]  }
 0x1fa   :  { %1988 = vmatprep.subr.bf16.mxu0 %v6264_v49  ;;  %2029 = vmatprep.subr.bf16.mxu1 %v6266_v3  ;;  %8077 = vst [vmem:[#allocation64_spill] sm:$0xff] %v6278_v55 }
 0x1fd   :  { %1989 = vmatpush1.bf16.msra.mxu0 %v6268_v19  ;;  %2030 = vmatpush1.bf16.msra.mxu1 %v6270_v52 }
 0x1fe   :  { %1990 = vmatprep.subr.bf16.mxu0 %v6276_v11  ;;  %2031 = vmatprep.subr.bf16.mxu1 %v6278_v55  ;;  %v6298_v55 = vld [vmem:[#allocation9 + $0x68] ss:$16 sps:$4 sm:$0xff]  }
 0x1ff   :  { %8081 = vst [vmem:[#allocation68_spill] sm:$0xff] %v6298_v55 }
 0x201   :  { %1991 = vmatpush1.bf16.msra.mxu0 %v6280_v4  ;;  %2032 = vmatpush1.bf16.msra.mxu1 %v6282_v0 }
 0x202   :  { %1992 = vmatprep.subr.bf16.mxu0 %v6292_v51 }
 0x203   :  { %v1007_v9 = vpop.f32.mrb[20].mxu0  ;;  %v1048_v10 = vpop.f32.mrb[20].mxu1 }
 0x204   :  { %v1008_v18 = vadd.f32 %v1007_v9, %v5959_v56  ;;  %v1049_v49 = vadd.f32 %v1048_v10, %v5963_v57  ;;  %v1009_v8 = vpop.f32.mrb[21].mxu0  ;;  %v1050_v3 = vpop.f32.mrb[21].mxu1  ;;  %v6294_v10 = vld [vmem:[#allocation9 + $0x6c] ss:$16 sps:$4 sm:$0xff]  }
 0x205   :  { %v1010_v52 = vadd.f32 %v1009_v8, %v5969_v58  ;;  %v1051_v19 = vadd.f32 %v1050_v3, %v5973_v60  ;;  %v1011_v48 = vpop.f32.mrb[22].mxu0  ;;  %v1052_v44 = vpop.f32.mrb[22].mxu1  ;;  %8079 = vst [vmem:[#allocation66_spill] sm:$0xff] %v6294_v10  ;;  %v6300_v8 = vld [vmem:[#allocation9 + $0x84] ss:$16 sps:$4 sm:$0xff]   ;;  %2033 = vmatprep.subr.bf16.mxu1 %v6294_v10  ;;  %1993 = vmatpush1.bf16.msra.mxu0 %v6296_v54 }
 0x206   :  { %v1012_v50 = vpop.f32.mrb[23].mxu0  ;;  %v1053_v9 = vpop.f32.mrb[23].mxu1  ;;  %8082 = vst [vmem:[#allocation69_spill] sm:$0xff] %v6300_v8  ;;  %v6304_v48 = vld [vmem:[#allocation9 + $0x8c] ss:$16 sps:$4 sm:$0xff]   ;;  %2034 = vmatpush1.bf16.msra.mxu1 %v6298_v55  ;;  %1994 = vmatprep.subr.bf16.mxu0 %v6300_v8 }
 0x207   :  { %v1059_v46 = vcombine.low %v1008_v18, %v1010_v52  ;;  %v1060_v11 = vcombine.low %v1049_v49, %v1051_v19  ;;  %8083 = vst [vmem:[#allocation70_spill] sm:$0xff] %v6304_v48  ;;  %v6314_v18 = vld [vmem:[#allocation9 + $0x80] ss:$16 sps:$4 sm:$0xff]   ;;  %v6316_v49 = vld [vmem:[#allocation9 + $0x88] ss:$16 sps:$4 sm:$0xff]   ;;  %2035 = vmatprep.subr.bf16.mxu1 %v6304_v48 }
 0x208   :  { %8086 = vst [vmem:[#allocation73_spill] sm:$0xff] %v6314_v18  ;;  %8087 = vst [vmem:[#allocation74_spill] sm:$0xff] %v6316_v49  ;;  %v6320_v52 = vld [vmem:[#allocation9 + $0xa4] ss:$16 sps:$4 sm:$0xff]   ;;  %v6322_v19 = vld [vmem:[#allocation9 + $0xac] ss:$16 sps:$4 sm:$0xff]  }
 0x209   :  { %v6307_v50 = vrot.slane %v1059_v46, %v5981_v5  ;;  %v6310_v44 = vrot.slane %v1060_v11, %v5981_v5  ;;  %8088 = vst [vmem:[#allocation75_spill] sm:$0xff] %v6320_v52  ;;  %8089 = vst [vmem:[#allocation76_spill] sm:$0xff] %v6322_v19  ;;  %1995 = vmatpush1.bf16.msra.mxu0 %v6314_v18  ;;  %v6328_v11 = vld [vmem:[#allocation9 + $0xa0] ss:$16 sps:$4 sm:$0xff]   ;;  %v6330_v3 = vld [vmem:[#allocation9 + $0xa8] ss:$16 sps:$4 sm:$0xff]  }
 0x20a   :  { %2036 = vmatpush1.bf16.msra.mxu1 %v6316_v49  ;;  %8090 = vst [vmem:[#allocation77_spill] sm:$0xff] %v6328_v11  ;;  %8091 = vst [vmem:[#allocation78_spill] sm:$0xff] %v6330_v3  ;;  %1996 = vmatprep.subr.bf16.mxu0 %v6320_v52  ;;  %v6334_v9 = vld [vmem:[#allocation9 + $0xc4] ss:$16 sps:$4 sm:$0xff]   ;;  %v6336_v48 = vld [vmem:[#allocation9 + $0xcc] ss:$16 sps:$4 sm:$0xff]  }
 0x20b   :  { %8084 = vst [vmem:[#allocation71_spill] sm:$0xff] %v6307_v50  ;;  %8085 = vst [vmem:[#allocation72_spill] sm:$0xff] %v6310_v44  ;;  %2037 = vmatprep.subr.bf16.mxu1 %v6322_v19  ;;  %v6340_v46 = vld [vmem:[#allocation9 + $0xc0] ss:$16 sps:$4 sm:$0xff]   ;;  %v6342_v44 = vld [vmem:[#allocation9 + $0xc8] ss:$16 sps:$4 sm:$0xff]  }
 0x20c   :  { %8092 = vst [vmem:[#allocation79_spill] sm:$0xff] %v6334_v9  ;;  %8093 = vst [vmem:[#allocation80_spill] sm:$0xff] %v6336_v48  ;;  %v6346_v50 = vld [vmem:[#allocation9 + $0xe4] ss:$16 sps:$4 sm:$0xff]   ;;  %v6348_v52 = vld [vmem:[#allocation9 + $0xec] ss:$16 sps:$4 sm:$0xff]  }
 0x20d   :  { %1997 = vmatpush1.bf16.msra.mxu0 %v6328_v11  ;;  %8094 = vst [vmem:[#allocation81_spill] sm:$0xff] %v6340_v46  ;;  %8095 = vst [vmem:[#allocation82_spill] sm:$0xff] %v6342_v44  ;;  %v6352_v19 = vld [vmem:[#allocation9 + $0xe0] ss:$16 sps:$4 sm:$0xff]   ;;  %v6354_v11 = vld [vmem:[#allocation9 + $0xe8] ss:$16 sps:$4 sm:$0xff]  }
 0x20e   :  { %2038 = vmatpush1.bf16.msra.mxu1 %v6330_v3  ;;  %1998 = vmatprep.subr.bf16.mxu0 %v6334_v9  ;;  %8096 = vst [vmem:[#allocation83_spill] sm:$0xff] %v6346_v50  ;;  %8097 = vst [vmem:[#allocation84_spill] sm:$0xff] %v6348_v52 }
 0x20f   :  { %2039 = vmatprep.subr.bf16.mxu1 %v6336_v48  ;;  %8098 = vst [vmem:[#allocation85_spill] sm:$0xff] %v6352_v19  ;;  %8099 = vst [vmem:[#allocation86_spill] sm:$0xff] %v6354_v11 }
 0x211   :  { %1999 = vmatpush1.bf16.msra.mxu0 %v6340_v46 }
 0x212   :  { %2040 = vmatpush1.bf16.msra.mxu1 %v6342_v44  ;;  %2000 = vmatprep.subr.bf16.mxu0 %v6346_v50 }
 0x213   :  { %2041 = vmatprep.subr.bf16.mxu1 %v6348_v52 }
 0x215   :  { %2001 = vmatpush1.bf16.msra.mxu0 %v6352_v19 }
 0x216   :  { %2042 = vmatpush1.bf16.msra.mxu1 %v6354_v11  ;;  %2118 = vmatprep.subr.bf16.mxu0 %v5998_v16 }
 0x217   :  { %2159 = vmatprep.subr.bf16.mxu1 %v6000_v17 }
 0x223   :  { %v1116_v48 = vpop.f32.mrb[24].mxu0  ;;  %v1157_v46 = vpop.f32.mrb[24].mxu1 }
 0x224   :  { %v1117_v44 = vadd.f32 %v1116_v48, %v5959_v56  ;;  %v1158_v9 = vadd.f32 %v1157_v46, %v5963_v57  ;;  %v1118_v3 = vpop.f32.mrb[25].mxu0  ;;  %v1159_v49 = vpop.f32.mrb[25].mxu1 }
 0x225   :  { %v1119_v50 = vadd.f32 %v1118_v3, %v5969_v58  ;;  %v1160_v52 = vadd.f32 %v1159_v49, %v5973_v60  ;;  %v1120_v18 = vpop.f32.mrb[26].mxu0  ;;  %v1161_v19 = vpop.f32.mrb[26].mxu1 }
 0x226   :  { %v1121_v8 = vpop.f32.mrb[27].mxu0  ;;  %v1162_v11 = vpop.f32.mrb[27].mxu1 }
 0x227   :  { %v1168_v55 = vcombine.low %v1117_v44, %v1119_v50  ;;  %v1169_v16 = vcombine.low %v1158_v9, %v1160_v52 }
 0x229   :  { %v6367_v17 = vrot.slane %v1168_v55, %v5981_v5  ;;  %v6370_v54 = vrot.slane %v1169_v16, %v5981_v5 }
 0x22b   :  { %8100 = vst [vmem:[#allocation87_spill] sm:$0xff] %v6367_v17  ;;  %8101 = vst [vmem:[#allocation88_spill] sm:$0xff] %v6370_v54 }
 0x243   :  { %v1225_v46 = vpop.f32.mrb[28].mxu0  ;;  %v1266_v10 = vpop.f32.mrb[28].mxu1 }
 0x244   :  { %v1226_v3 = vadd.f32 %v1225_v46, %v5959_v56  ;;  %v1267_v18 = vadd.f32 %v1266_v10, %v5963_v57  ;;  %v1227_v49 = vpop.f32.mrb[29].mxu0  ;;  %v1268_v8 = vpop.f32.mrb[29].mxu1 }
 0x245   :  { %v1228_v50 = vadd.f32 %v1227_v49, %v5969_v58  ;;  %v1269_v44 = vadd.f32 %v1268_v8, %v5973_v60  ;;  %v1229_v55 = vpop.f32.mrb[30].mxu0  ;;  %v1270_v52 = vpop.f32.mrb[30].mxu1 }
 0x246   :  { %v1230_v19 = vpop.f32.mrb[31].mxu0  ;;  %v1271_v11 = vpop.f32.mrb[31].mxu1 }
 0x247   :  { %v1277_v9 = vcombine.low %v1226_v3, %v1228_v50  ;;  %v1278_v16 = vcombine.low %v1267_v18, %v1269_v44  ;;  %v8104_v19 = vcombine.low %v5989_v13, %v5992_v14 }
 0x249   :  { %v6379_v48 = vrot.slane %v1277_v9, %v5981_v5  ;;  %v6382_v54 = vrot.slane %v1278_v16, %v5981_v5 }
 0x24b   :  { %8102 = vst [vmem:[#allocation89_spill] sm:$0xff] %v6379_v48  ;;  %8103 = vst [vmem:[#allocation90_spill] sm:$0xff] %v6382_v54 }
 0x263   :  { %v1492_v57 = vpop.f32.mrb[32].mxu0  ;;  %v1533_v10 = vpop.f32.mrb[32].mxu1 }
 0x264   :  { %v1494_v58 = vpop.f32.mrb[33].mxu0  ;;  %v1535_v46 = vpop.f32.mrb[33].mxu1 }
 0x265   :  { %v1544_v60 = vcombine.low %v1492_v57, %v1494_v58  ;;  %v1545_v49 = vcombine.low %v1533_v10, %v1535_v46  ;;  %v1496_v8 = vpop.f32.mrb[34].mxu0  ;;  %v1537_v55 = vpop.f32.mrb[34].mxu1 }
 0x266   :  { %v1497_v52 = vpop.f32.mrb[35].mxu0  ;;  %v1538_v3 = vpop.f32.mrb[35].mxu1 }
 0x267   :  { %v1552_v18 = vrot.slane %v1544_v60, %v5981_v5  ;;  %v1559_v50 = vrot.slane %v1545_v49, %v5981_v5  ;;  %v8127_v52 = vld [vmem:[#allocation51_spill] sm:$0xff]  ;;  %v8128_v3 = vld [vmem:[#allocation52_spill] sm:$0xff] }
 0x269   :  { %v1560_v44 = vcombine.low %v1552_v18, %v1559_v50  ;;  %v8129_v18 = vld [vmem:[#allocation53_spill] sm:$0xff]  ;;  %v8130_v50 = vld [vmem:[#allocation54_spill] sm:$0xff] }
 0x26b   :  { %v1562_v11 = vadd.f32 %v1560_v44, %v8104_v19  ;;  %v8131_v44 = vld [vmem:[#allocation55_spill] sm:$0xff]  ;;  %v8132_v19 = vld [vmem:[#allocation56_spill] sm:$0xff] }
 0x26d   :  { %v4571_v9 = vmul.f32 -1.442695, %v1562_v11  ;;  %v1570_v54 = vrot.slane %v1562_v11, 6  ;;  %v245_v11 = vld [vmem:[%s7663_s6] sm:$0xf] }
 0x26f   :  { %4922 = vpow2.f32 %v4571_v9  ;;  %v8133_v9 = vld [vmem:[#allocation20_spill] sm:$0xff] }
 0x279   :  { %v4923_v16 = vpop.eup %4922 }
 0x27a   :  { %v1566_v56 = vadd.f32 1.0, %v4923_v16  ;;  %v8134_v16 = vsub.s32 0, %v8133_v9 }
 0x27c   :  { %4924 = vrcp.f32 %v1566_v56  ;;  %v8126_v56 = vld [vmem:[#allocation50_spill] sm:$0xff] }
 0x27d   :  { %4926 = vtanh.f32 %v1570_v54  ;;  %v8125_v54 = vld [vmem:[#allocation49_spill] sm:$0xff] }
 0x286   :  { %v4925_v57 = vpop.eup %4924 }
 0x287   :  { %v1574_v10 = vrot.slane %v4925_v57, 2  ;;  %v4927_v58 = vpop.eup %4926  ;;  %v1580_v49 = vrot.slane %v4925_v57, 4 }
 0x288   :  { %v1577_v46 = vmul.f32 %v4927_v58, %v4925_v57  ;;  %v6467_v57 = vrot.slane %v245_v11, %v8134_v16 }
 0x289   :  { %v1576_v8 = vmul.f32 0.0, %v1574_v10 }
 0x28b   :  { %v6391_v60 = vadd.f32 %v1577_v46, %v1576_v8  ;;  %v8135_v46 = vsub.s32 1, %v8133_v9 }
 0x28d   :  { %4928 = vtanh.f32 %v6391_v60  ;;  %v6471_v8 = vrot.slane %v245_v11, %v8135_v46  ;;  %v8136_v46 = vsub.s32 2, %v8133_v9 }
 0x297   :  { %v4929_v55 = vpop.eup %4928 }
 0x298   :  { %v1582_v13 = vmul.f32 %v4929_v55, %v1580_v49 }
 0x29a   :  { %v1583_v14 = vpack.c.bf16 %v1582_v13, %v1582_v13 }
 0x29c   :  { %2019 = vmatmul.mubr.bf16.vlgmr.msra.gmra.mrb[40].mxu0 %v1583_v14  ;;  %2060 = vmatmul.mubr.bf16.vlgmr.msra.gmra.mrb[40].mxu1 %v1583_v14 }
 0x29d   :  { %2119 = vmatpush1.bf16.msra.mxu0 %v6006_v20  ;;  %2160 = vmatpush1.bf16.msra.mxu1 %v6008_v21  ;;  %v8105_v20 = vld [vmem:[#allocation27_spill] sm:$0xff]  ;;  %v8106_v21 = vld [vmem:[#allocation28_spill] sm:$0xff] }
 0x29e   :  { %2120 = vmatprep.subr.bf16.mxu0 %v6012_v22  ;;  %2161 = vmatprep.subr.bf16.mxu1 %v6014_v23  ;;  %v8107_v22 = vld [vmem:[#allocation29_spill] sm:$0xff]  ;;  %v8108_v23 = vld [vmem:[#allocation30_spill] sm:$0xff] }
 0x29f   :  { %2150 = vmatprep.mubr.bf16.mxu0 %v8067_v47  ;;  %2191 = vmatprep.mubr.bf16.mxu1 %v8067_v47 }
 0x2a1   :  { %2121 = vmatpush1.bf16.msra.mxu0 %v6018_v24  ;;  %2162 = vmatpush1.bf16.msra.mxu1 %v6020_v25  ;;  %v8109_v24 = vld [vmem:[#allocation31_spill] sm:$0xff]  ;;  %v8110_v25 = vld [vmem:[#allocation32_spill] sm:$0xff] }
 0x2a2   :  { %2122 = vmatprep.subr.bf16.mxu0 %v6024_v26  ;;  %2163 = vmatprep.subr.bf16.mxu1 %v6026_v27  ;;  %v8111_v26 = vld [vmem:[#allocation33_spill] sm:$0xff]  ;;  %v8112_v27 = vld [vmem:[#allocation34_spill] sm:$0xff] }
 0x2a5   :  { %2123 = vmatpush1.bf16.msra.mxu0 %v6032_v28  ;;  %2164 = vmatpush1.bf16.msra.mxu1 %v6034_v29  ;;  %v8113_v28 = vld [vmem:[#allocation35_spill] sm:$0xff]  ;;  %v8114_v29 = vld [vmem:[#allocation36_spill] sm:$0xff] }
 0x2a6   :  { %2124 = vmatprep.subr.bf16.mxu0 %v6038_v30  ;;  %2165 = vmatprep.subr.bf16.mxu1 %v6040_v31  ;;  %v8115_v30 = vld [vmem:[#allocation37_spill] sm:$0xff]  ;;  %v8116_v31 = vld [vmem:[#allocation38_spill] sm:$0xff] }
 0x2a9   :  { %2125 = vmatpush1.bf16.msra.mxu0 %v6044_v32  ;;  %2166 = vmatpush1.bf16.msra.mxu1 %v6046_v33 }
 0x2aa   :  { %2126 = vmatprep.subr.bf16.mxu0 %v6050_v34  ;;  %2167 = vmatprep.subr.bf16.mxu1 %v6052_v35  ;;  %v8117_v34 = vld [vmem:[#allocation41_spill] sm:$0xff]  ;;  %v8118_v35 = vld [vmem:[#allocation42_spill] sm:$0xff] }
 0x2ad   :  { %2127 = vmatpush1.bf16.msra.mxu0 %v6056_v36  ;;  %2168 = vmatpush1.bf16.msra.mxu1 %v6058_v37 }
 0x2ae   :  { %2128 = vmatprep.subr.bf16.mxu0 %v6062_v38  ;;  %2169 = vmatprep.subr.bf16.mxu1 %v6064_v39  ;;  %v8119_v38 = vld [vmem:[#allocation43_spill] sm:$0xff]  ;;  %v8120_v39 = vld [vmem:[#allocation44_spill] sm:$0xff] }
 0x2b1   :  { %2129 = vmatpush1.bf16.msra.mxu0 %v6068_v40  ;;  %2170 = vmatpush1.bf16.msra.mxu1 %v6070_v41 }
 0x2b2   :  { %2130 = vmatprep.subr.bf16.mxu0 %v6074_v42  ;;  %2171 = vmatprep.subr.bf16.mxu1 %v6076_v43 }
 0x2b5   :  { %2131 = vmatpush1.bf16.msra.mxu0 %v6084_v1  ;;  %2172 = vmatpush1.bf16.msra.mxu1 %v6086_v2  ;;  %v8121_v1 = vld [vmem:[#allocation45_spill] sm:$0xff]  ;;  %v8122_v2 = vld [vmem:[#allocation46_spill] sm:$0xff] }
 0x2b6   :  { %2132 = vmatprep.subr.bf16.mxu0 %v6090_v6  ;;  %2173 = vmatprep.subr.bf16.mxu1 %v6092_v7  ;;  %v8123_v6 = vld [vmem:[#allocation47_spill] sm:$0xff]  ;;  %v8124_v7 = vld [vmem:[#allocation48_spill] sm:$0xff] }
 0x2b9   :  { %2133 = vmatpush1.bf16.msra.mxu0 %v6102_v12  ;;  %2174 = vmatpush1.bf16.msra.mxu1 %v6104_v15 }
 0x2ba   :  { %2245 = vmatprep.subr.bf16.mxu0 %v6140_v45  ;;  %2286 = vmatprep.subr.bf16.mxu1 %v6142_v62 }
 0x2bc   :  { %2151 = vmatmul.mubr.bf16.vlgmr.msra.gmra.mrb[44].mxu0 %v1583_v14  ;;  %2192 = vmatmul.mubr.bf16.vlgmr.msra.gmra.mrb[44].mxu1 %v1583_v14 }
 0x2bd   :  { %2246 = vmatpush1.bf16.msra.mxu0 %v6144_v63  ;;  %2287 = vmatpush1.bf16.msra.mxu1 %v6146_v59 }
 0x2be   :  { %2247 = vmatprep.subr.bf16.mxu0 %v6148_v61  ;;  %2288 = vmatprep.subr.bf16.mxu1 %v6150_v53 }
 0x2bf   :  { %2277 = vmatprep.mubr.bf16.mxu0 %v8067_v47  ;;  %2318 = vmatprep.mubr.bf16.mxu1 %v8067_v47 }
 0x2c1   :  { %2248 = vmatpush1.bf16.msra.mxu0 %v8105_v20  ;;  %2289 = vmatpush1.bf16.msra.mxu1 %v8106_v21 }
 0x2c2   :  { %2249 = vmatprep.subr.bf16.mxu0 %v8107_v22  ;;  %2290 = vmatprep.subr.bf16.mxu1 %v8108_v23 }
 0x2c5   :  { %2250 = vmatpush1.bf16.msra.mxu0 %v8109_v24  ;;  %2291 = vmatpush1.bf16.msra.mxu1 %v8110_v25 }
 0x2c6   :  { %2251 = vmatprep.subr.bf16.mxu0 %v8111_v26  ;;  %2292 = vmatprep.subr.bf16.mxu1 %v8112_v27 }
 0x2c9   :  { %2252 = vmatpush1.bf16.msra.mxu0 %v8113_v28  ;;  %2293 = vmatpush1.bf16.msra.mxu1 %v8114_v29 }
 0x2ca   :  { %2253 = vmatprep.subr.bf16.mxu0 %v8115_v30  ;;  %2294 = vmatprep.subr.bf16.mxu1 %v8116_v31  ;;  %v1778_v32 = vpop.f32.mrb[36].mxu0  ;;  %v1819_v33 = vpop.f32.mrb[36].mxu1 }
 0x2cb   :  { %v1780_v36 = vpop.f32.mrb[37].mxu0  ;;  %v1821_v37 = vpop.f32.mrb[37].mxu1 }
 0x2cc   :  { %v1782_v40 = vpop.f32.mrb[38].mxu0  ;;  %v1823_v41 = vpop.f32.mrb[38].mxu1 }
 0x2cd   :  { %2254 = vmatpush1.bf16.msra.mxu0 %v8117_v34  ;;  %2295 = vmatpush1.bf16.msra.mxu1 %v8118_v35  ;;  %v1783_v42 = vpop.f32.mrb[39].mxu0  ;;  %v1824_v43 = vpop.f32.mrb[39].mxu1 }
 0x2ce   :  { %2255 = vmatprep.subr.bf16.mxu0 %v8119_v38  ;;  %2296 = vmatprep.subr.bf16.mxu1 %v8120_v39 }
 0x2d1   :  { %2256 = vmatpush1.bf16.msra.mxu0 %v8121_v1  ;;  %2297 = vmatpush1.bf16.msra.mxu1 %v8122_v2 }
 0x2d2   :  { %2257 = vmatprep.subr.bf16.mxu0 %v8123_v6  ;;  %2298 = vmatprep.subr.bf16.mxu1 %v8124_v7 }
 0x2d5   :  { %2258 = vmatpush1.bf16.msra.mxu0 %v8125_v54  ;;  %2299 = vmatpush1.bf16.msra.mxu1 %v8126_v56 }
 0x2d6   :  { %2259 = vmatprep.subr.bf16.mxu0 %v8127_v52  ;;  %2300 = vmatprep.subr.bf16.mxu1 %v8128_v3 }
 0x2d9   :  { %2260 = vmatpush1.bf16.msra.mxu0 %v8129_v18  ;;  %2301 = vmatpush1.bf16.msra.mxu1 %v8130_v50  ;;  %v6477_v18 = vrot.slane %v245_v11, %v8136_v46 }
 0x2da   :  { %2327 = vmatprep.subr.bf16.mxu0 %v8131_v44  ;;  %2368 = vmatprep.subr.bf16.mxu1 %v8132_v19 }
 0x36f   :  { %v2020_v10 = vpop.f32.mrb[40].mxu0  ;;  %v2061_v58 = vpop.f32.mrb[40].mxu1 }
 0x370   :  { %v2021_v49 = vadd.f32 %v2020_v10, %v1778_v32  ;;  %v2062_v55 = vadd.f32 %v2061_v58, %v1819_v33  ;;  %v2022_v13 = vpop.f32.mrb[41].mxu0  ;;  %v2063_v14 = vpop.f32.mrb[41].mxu1  ;;  %v8137_v32 = vsub.s32 3, %v8133_v9 }
 0x371   :  { %v2023_v40 = vadd.f32 %v2022_v13, %v1780_v36  ;;  %v2064_v41 = vadd.f32 %v2063_v14, %v1821_v37  ;;  %v2024_v42 = vpop.f32.mrb[42].mxu0  ;;  %v2065_v43 = vpop.f32.mrb[42].mxu1 }
 0x372   :  { %v2089_v48 = vadd.f32 %v6467_v57, %v2021_v49  ;;  %v2025_v17 = vpop.f32.mrb[43].mxu0  ;;  %v2066_v19 = vpop.f32.mrb[43].mxu1  ;;  %v6481_v33 = vrot.slane %v245_v11, %v8137_v32  ;;  %v2091_v36 = vadd.f32 %v6477_v18, %v2062_v55 }
 0x373   :  { %v2090_v16 = vadd.f32 %v6471_v8, %v2023_v40 }
 0x374   :  { %v4636_v44 = vmul.f32 -1.442695, %v2089_v48  ;;  %v2092_v37 = vadd.f32 %v6481_v33, %v2064_v41  ;;  %v4638_v17 = vmul.f32 -1.442695, %v2091_v36 }
 0x375   :  { %v4637_v50 = vmul.f32 -1.442695, %v2090_v16 }
 0x376   :  { %4930 = vpow2.f32 %v4636_v44 }
 0x377   :  { %4932 = vpow2.f32 %v4637_v50 }
 0x378   :  { %4934 = vtanh.f32 %v2092_v37 }
 0x379   :  { %4936 = vpow2.f32 %v4638_v17 }
 0x380   :  { %v4931_v19 = vpop.eup %4930 }
 0x381   :  { %v2102_v10 = vadd.f32 1.0, %v4931_v19  ;;  %v4933_v48 = vpop.eup %4932 }
 0x382   :  { %v2103_v44 = vadd.f32 1.0, %v4933_v48  ;;  %v4935_v58 = vpop.eup %4934 }
 0x383   :  { %4938 = vrcp.f32 %v2102_v10  ;;  %v4937_v49 = vpop.eup %4936 }
 0x384   :  { %4940 = vrcp.f32 %v2103_v44  ;;  %v2104_v11 = vadd.f32 1.0, %v4937_v49  ;;  %v8138_v44 = vld [vmem:[#allocation21_spill] sm:$0xff] }
 0x386   :  { %4942 = vrcp.f32 %v2104_v11  ;;  %v8141_v11 = vld [vmem:[#allocation57_spill] sm:$0xff] }
 0x38d   :  { %v4939_v50 = vpop.eup %4938 }
 0x38e   :  { %v2113_v13 = vmul.f32 %v4939_v50, %v4935_v58  ;;  %v4941_v9 = vpop.eup %4940  ;;  %v8139_v58 = vld [vmem:[#allocation22_spill] sm:$0xff] }
 0x38f   :  { %v2152_v14 = vpop.f32.mrb[44].mxu0  ;;  %v2193_v40 = vpop.f32.mrb[44].mxu1  ;;  %v2112_v55 = vmul.f32 0.0, %v4941_v9  ;;  %v8140_v49 = vcombine.low %v8138_v44, %v8139_v58  ;;  %v8150_v44 = vld [vmem:[#allocation67_spill] sm:$0xff]  ;;  %v8151_v58 = vld [vmem:[#allocation68_spill] sm:$0xff] }
 0x390   :  { %v2154_v42 = vpop.f32.mrb[45].mxu0  ;;  %v2195_v41 = vpop.f32.mrb[45].mxu1 }
 0x391   :  { %v2204_v43 = vcombine.low %v2152_v14, %v2154_v42  ;;  %v2205_v16 = vcombine.low %v2193_v40, %v2195_v41  ;;  %v2156_v46 = vpop.f32.mrb[46].mxu0  ;;  %v2197_v32 = vpop.f32.mrb[46].mxu1  ;;  %v6485_v36 = vadd.f32 %v2113_v13, %v2112_v55  ;;  %v8142_v42 = vld [vmem:[#allocation58_spill] sm:$0xff] }
 0x392   :  { %v2157_v37 = vpop.f32.mrb[47].mxu0  ;;  %v2198_v17 = vpop.f32.mrb[47].mxu1 }
 0x393   :  { %v2212_v19 = vrot.slane %v2204_v43, %v5981_v5  ;;  %v2219_v10 = vrot.slane %v2205_v16, %v5981_v5  ;;  %4944 = vtanh.f32 %v6485_v36  ;;  %v4943_v14 = vpop.eup %4942  ;;  %v8143_v43 = vld [vmem:[#allocation59_spill] sm:$0xff]  ;;  %v8144_v16 = vld [vmem:[#allocation60_spill] sm:$0xff]  ;;  %v8145_v37 = vld [vmem:[#allocation61_spill] sm:$0xff] }
 0x394   :  { %v8146_v17 = vld [vmem:[#allocation62_spill] sm:$0xff] }
 0x395   :  { %v2220_v48 = vcombine.low %v2212_v19, %v2219_v10  ;;  %v8147_v19 = vld [vmem:[#allocation63_spill] sm:$0xff]  ;;  %v8148_v10 = vld [vmem:[#allocation64_spill] sm:$0xff] }
 0x397   :  { %v2222_v50 = vadd.f32 %v2220_v48, %v8140_v49  ;;  %v8149_v48 = vld [vmem:[#allocation66_spill] sm:$0xff]  ;;  %v8152_v49 = vld [vmem:[#allocation69_spill] sm:$0xff] }
 0x399   :  { %v4639_v9 = vmul.f32 -1.442695, %v2222_v50  ;;  %v2230_v32 = vrot.slane %v2222_v50, 6  ;;  %v8153_v50 = vld [vmem:[#allocation70_spill] sm:$0xff] }
 0x39b   :  { %4946 = vpow2.f32 %v4639_v9 }
 0x39d   :  { %v4945_v40 = vpop.eup %4944 }
 0x39e   :  { %v2116_v13 = vmul.f32 %v4945_v40, %v4943_v14 }
 0x3a0   :  { %v2244_v55 = vpack.c.bf16 %v2116_v13, %v2116_v13  ;;  %v8154_v13 = vld [vmem:[#allocation73_spill] sm:$0xff] }
 0x3a2   :  { %2278 = vmatmul.mubr.bf16.vlgmr.msra.gmra.mrb[48].mxu0 %v2244_v55  ;;  %2319 = vmatmul.mubr.bf16.vlgmr.msra.gmra.mrb[48].mxu1 %v2244_v55  ;;  %v8155_v55 = vld [vmem:[#allocation74_spill] sm:$0xff] }
 0x3a3   :  { %2328 = vmatpush1.bf16.msra.mxu0 %v8141_v11  ;;  %2369 = vmatpush1.bf16.msra.mxu1 %v8142_v42 }
 0x3a4   :  { %2329 = vmatprep.subr.bf16.mxu0 %v8143_v43  ;;  %2370 = vmatprep.subr.bf16.mxu1 %v8144_v16 }
 0x3a5   :  { %v4947_v41 = vpop.eup %4946  ;;  %2359 = vmatprep.mubr.bf16.mxu0 %v8067_v47  ;;  %2400 = vmatprep.mubr.bf16.mxu1 %v8067_v47 }
 0x3a6   :  { %v2226_v46 = vadd.f32 1.0, %v4947_v41 }
 0x3a7   :  { %2330 = vmatpush1.bf16.msra.mxu0 %v8145_v37  ;;  %2371 = vmatpush1.bf16.msra.mxu1 %v8146_v17 }
 0x3a8   :  { %4948 = vrcp.f32 %v2226_v46  ;;  %2331 = vmatprep.subr.bf16.mxu0 %v8147_v19  ;;  %2372 = vmatprep.subr.bf16.mxu1 %v8148_v10  ;;  %v8156_v46 = vld [vmem:[#allocation75_spill] sm:$0xff] }
 0x3a9   :  { %4950 = vtanh.f32 %v2230_v32  ;;  %v8157_v32 = vld [vmem:[#allocation76_spill] sm:$0xff] }
 0x3ab   :  { %2332 = vmatpush1.bf16.msra.mxu0 %v6280_v4  ;;  %2373 = vmatpush1.bf16.msra.mxu1 %v6282_v0 }
 0x3ac   :  { %2333 = vmatprep.subr.bf16.mxu0 %v6292_v51  ;;  %2374 = vmatprep.subr.bf16.mxu1 %v8149_v48  ;;  %v8161_v51 = vld [vmem:[#allocation80_spill] sm:$0xff] }
 0x3af   :  { %2334 = vmatpush1.bf16.msra.mxu0 %v8150_v44  ;;  %2375 = vmatpush1.bf16.msra.mxu1 %v8151_v58  ;;  %v8158_v58 = vld [vmem:[#allocation77_spill] sm:$0xff] }
 0x3b0   :  { %2335 = vmatprep.subr.bf16.mxu0 %v8152_v49  ;;  %2376 = vmatprep.subr.bf16.mxu1 %v8153_v50  ;;  %v8159_v49 = vld [vmem:[#allocation78_spill] sm:$0xff]  ;;  %v8160_v50 = vld [vmem:[#allocation79_spill] sm:$0xff] }
 0x3b2   :  { %v4949_v9 = vpop.eup %4948 }
 0x3b3   :  { %v2234_v14 = vrot.slane %v4949_v9, 2  ;;  %v4951_v40 = vpop.eup %4950  ;;  %2336 = vmatpush1.bf16.msra.mxu0 %v8154_v13  ;;  %2377 = vmatpush1.bf16.msra.mxu1 %v8155_v55  ;;  %v8162_v55 = vld [vmem:[#allocation81_spill] sm:$0xff] }
 0x3b4   :  { %v2237_v41 = vmul.f32 %v4951_v40, %v4949_v9  ;;  %2337 = vmatprep.subr.bf16.mxu0 %v8156_v46  ;;  %2378 = vmatprep.subr.bf16.mxu1 %v8157_v32  ;;  %v8163_v40 = vld [vmem:[#allocation82_spill] sm:$0xff]  ;;  %v8164_v46 = vld [vmem:[#allocation83_spill] sm:$0xff]  ;;  %v8165_v32 = vld [vmem:[#allocation84_spill] sm:$0xff] }
 0x3b5   :  { %v2236_v44 = vmul.f32 %v2234_v14, %v6391_v60  ;;  %v8166_v60 = vld [vmem:[#allocation85_spill] sm:$0xff]  ;;  %v6529_v14 = vld [vmem:[#allocation8 + $0x4] ss:$16 sps:$4 sm:$0xff]  }
 0x3b6   :  { %8168 = vst [vmem:[#allocation27_spill] sm:$0xff] %v6529_v14 }
 0x3b7   :  { %v6516_v48 = vadd.f32 %v2237_v41, %v2236_v44  ;;  %2338 = vmatpush1.bf16.msra.mxu0 %v8158_v58  ;;  %2379 = vmatpush1.bf16.msra.mxu1 %v8159_v49  ;;  %v8167_v44 = vld [vmem:[#allocation86_spill] sm:$0xff]  ;;  %v6532_v41 = vld [vmem:[#allocation8 + $0xc] ss:$16 sps:$4 sm:$0xff]  }
 0x3b8   :  { %2339 = vmatprep.subr.bf16.mxu0 %v8160_v50  ;;  %2380 = vmatprep.subr.bf16.mxu1 %v8161_v51  ;;  %v2240_v51 = vrot.slane %v4949_v9, 4  ;;  %v6548_v9 = vld [vmem:[#allocation8 + $0x2c] ss:$16 sps:$4 sm:$0xff]  }
 0x3b9   :  { %4952 = vtanh.f32 %v6516_v48  ;;  %8171 = vst [vmem:[#allocation30_spill] sm:$0xff] %v6548_v9 }
 0x3bb   :  { %2340 = vmatpush1.bf16.msra.mxu0 %v8162_v55  ;;  %2381 = vmatpush1.bf16.msra.mxu1 %v8163_v40 }
 0x3bc   :  { %2341 = vmatprep.subr.bf16.mxu0 %v8164_v46  ;;  %2382 = vmatprep.subr.bf16.mxu1 %v8165_v32 }
 0x3bf   :  { %2342 = vmatpush1.bf16.msra.mxu0 %v8166_v60  ;;  %2383 = vmatpush1.bf16.msra.mxu1 %v8167_v44  ;;  %v6539_v60 = vld [vmem:[#allocation8] ss:$16 sps:$4 sm:$0xff]   ;;  %v6542_v44 = vld [vmem:[#allocation8 + $0x8] ss:$16 sps:$4 sm:$0xff]  }
 0x3c0   :  { %2438 = vmatprep.subr.bf16.mxu0 %v6529_v14  ;;  %2479 = vmatprep.subr.bf16.mxu1 %v6532_v41  ;;  %8169 = vst [vmem:[#allocation28_spill] sm:$0xff] %v6542_v44  ;;  %v6545_v14 = vld [vmem:[#allocation8 + $0x24] ss:$16 sps:$4 sm:$0xff]  }
 0x3c1   :  { %8170 = vst [vmem:[#allocation29_spill] sm:$0xff] %v6545_v14 }
 0x3c3   :  { %v4953_v55 = vpop.eup %4952 }
 0x3c4   :  { %v2242_v50 = vmul.f32 %v4953_v55, %v2240_v51  ;;  %v6553_v51 = vld [vmem:[#allocation8 + $0x20] ss:$16 sps:$4 sm:$0xff]   ;;  %v6559_v55 = vld [vmem:[#allocation8 + $0x44] ss:$16 sps:$4 sm:$0xff]  }
 0x3c5   :  { %8172 = vst [vmem:[#allocation31_spill] sm:$0xff] %v6553_v51  ;;  %8174 = vst [vmem:[#allocation33_spill] sm:$0xff] %v6559_v55 }
 0x3c6   :  { %v6535_v40 = vpack.c.bf16 %v2242_v50, %v2242_v50  ;;  %v6556_v50 = vld [vmem:[#allocation8 + $0x28] ss:$16 sps:$4 sm:$0xff]  }
 0x3c7   :  { %8173 = vst [vmem:[#allocation32_spill] sm:$0xff] %v6556_v50 }
 0x3c8   :  { %2360 = vmatmul.mubr.bf16.vlgmr.msra.gmra.mrb[52].mxu0 %v6535_v40  ;;  %2401 = vmatmul.mubr.bf16.vlgmr.msra.gmra.mrb[52].mxu1 %v6535_v40 }
 0x3c9   :  { %2439 = vmatpush1.bf16.msra.mxu0 %v6539_v60  ;;  %2480 = vmatpush1.bf16.msra.mxu1 %v6542_v44  ;;  %v6568_v44 = vld [vmem:[#allocation8 + $0x48] ss:$16 sps:$4 sm:$0xff]  }
 0x3ca   :  { %2440 = vmatprep.subr.bf16.mxu0 %v6545_v14  ;;  %2481 = vmatprep.subr.bf16.mxu1 %v6548_v9  ;;  %v6562_v14 = vld [vmem:[#allocation8 + $0x4c] ss:$16 sps:$4 sm:$0xff]   ;;  %v6565_v9 = vld [vmem:[#allocation8 + $0x40] ss:$16 sps:$4 sm:$0xff]   ;;  %8177 = vst [vmem:[#allocation36_spill] sm:$0xff] %v6568_v44 }
 0x3cb   :  { %2470 = vmatprep.mubr.bf16.mxu0 %v8067_v47  ;;  %2511 = vmatprep.mubr.bf16.mxu1 %v8067_v47  ;;  %8175 = vst [vmem:[#allocation34_spill] sm:$0xff] %v6562_v14  ;;  %8176 = vst [vmem:[#allocation35_spill] sm:$0xff] %v6565_v9 }
 0x3cd   :  { %2441 = vmatpush1.bf16.msra.mxu0 %v6553_v51  ;;  %2482 = vmatpush1.bf16.msra.mxu1 %v6556_v50  ;;  %v6571_v51 = vld [vmem:[#allocation8 + $0x64] ss:$16 sps:$4 sm:$0xff]   ;;  %v6574_v50 = vld [vmem:[#allocation8 + $0x6c] ss:$16 sps:$4 sm:$0xff]  }
 0x3ce   :  { %2442 = vmatprep.subr.bf16.mxu0 %v6559_v55  ;;  %2483 = vmatprep.subr.bf16.mxu1 %v6562_v14  ;;  %8178 = vst [vmem:[#allocation37_spill] sm:$0xff] %v6571_v51  ;;  %8179 = vst [vmem:[#allocation38_spill] sm:$0xff] %v6574_v50  ;;  %v6577_v55 = vld [vmem:[#allocation8 + $0x60] ss:$16 sps:$4 sm:$0xff]   ;;  %v6580_v14 = vld [vmem:[#allocation8 + $0x68] ss:$16 sps:$4 sm:$0xff]  }
 0x3cf   :  { %8180 = vst [vmem:[#allocation41_spill] sm:$0xff] %v6577_v55  ;;  %8181 = vst [vmem:[#allocation42_spill] sm:$0xff] %v6580_v14 }
 0x3d1   :  { %2443 = vmatpush1.bf16.msra.mxu0 %v6565_v9  ;;  %2484 = vmatpush1.bf16.msra.mxu1 %v6568_v44  ;;  %v6583_v9 = vld [vmem:[#allocation8 + $0x84] ss:$16 sps:$4 sm:$0xff]   ;;  %v6586_v44 = vld [vmem:[#allocation8 + $0x8c] ss:$16 sps:$4 sm:$0xff]  }
 0x3d2   :  { %2444 = vmatprep.subr.bf16.mxu0 %v6571_v51  ;;  %2485 = vmatprep.subr.bf16.mxu1 %v6574_v50  ;;  %8182 = vst [vmem:[#allocation43_spill] sm:$0xff] %v6583_v9  ;;  %8183 = vst [vmem:[#allocation44_spill] sm:$0xff] %v6586_v44  ;;  %v6589_v51 = vld [vmem:[#allocation8 + $0x80] ss:$16 sps:$4 sm:$0xff]   ;;  %v6592_v50 = vld [vmem:[#allocation8 + $0x88] ss:$16 sps:$4 sm:$0xff]  }
 0x3d3   :  { %8184 = vst [vmem:[#allocation45_spill] sm:$0xff] %v6589_v51  ;;  %8185 = vst [vmem:[#allocation46_spill] sm:$0xff] %v6592_v50 }
 0x3d5   :  { %2445 = vmatpush1.bf16.msra.mxu0 %v6577_v55  ;;  %2486 = vmatpush1.bf16.msra.mxu1 %v6580_v14  ;;  %v6595_v55 = vld [vmem:[#allocation8 + $0xa4] ss:$16 sps:$4 sm:$0xff]   ;;  %v6598_v14 = vld [vmem:[#allocation8 + $0xac] ss:$16 sps:$4 sm:$0xff]  }
 0x3d6   :  { %2446 = vmatprep.subr.bf16.mxu0 %v6583_v9  ;;  %2487 = vmatprep.subr.bf16.mxu1 %v6586_v44  ;;  %8186 = vst [vmem:[#allocation47_spill] sm:$0xff] %v6595_v55  ;;  %8187 = vst [vmem:[#allocation48_spill] sm:$0xff] %v6598_v14  ;;  %v6601_v9 = vld [vmem:[#allocation8 + $0xa0] ss:$16 sps:$4 sm:$0xff]   ;;  %v6604_v44 = vld [vmem:[#allocation8 + $0xa8] ss:$16 sps:$4 sm:$0xff]  }
 0x3d7   :  { %8188 = vst [vmem:[#allocation49_spill] sm:$0xff] %v6601_v9  ;;  %8189 = vst [vmem:[#allocation50_spill] sm:$0xff] %v6604_v44 }
 0x3d9   :  { %2447 = vmatpush1.bf16.msra.mxu0 %v6589_v51  ;;  %2488 = vmatpush1.bf16.msra.mxu1 %v6592_v50  ;;  %v6607_v51 = vld [vmem:[#allocation8 + $0xc4] ss:$16 sps:$4 sm:$0xff]   ;;  %v6610_v50 = vld [vmem:[#allocation8 + $0xcc] ss:$16 sps:$4 sm:$0xff]  }
 0x3da   :  { %2448 = vmatprep.subr.bf16.mxu0 %v6595_v55  ;;  %2489 = vmatprep.subr.bf16.mxu1 %v6598_v14  ;;  %v6613_v55 = vld [vmem:[#allocation8 + $0xc0] ss:$16 sps:$4 sm:$0xff]   ;;  %v6616_v14 = vld [vmem:[#allocation8 + $0xc8] ss:$16 sps:$4 sm:$0xff]  }
 0x3dd   :  { %2449 = vmatpush1.bf16.msra.mxu0 %v6601_v9  ;;  %2490 = vmatpush1.bf16.msra.mxu1 %v6604_v44  ;;  %v6619_v9 = vld [vmem:[#allocation8 + $0xe4] ss:$16 sps:$4 sm:$0xff]   ;;  %v6622_v44 = vld [vmem:[#allocation8 + $0xec] ss:$16 sps:$4 sm:$0xff]  }
 0x3de   :  { %2450 = vmatprep.subr.bf16.mxu0 %v6607_v51  ;;  %2491 = vmatprep.subr.bf16.mxu1 %v6610_v50 }
 0x3e1   :  { %2451 = vmatpush1.bf16.msra.mxu0 %v6613_v55  ;;  %2492 = vmatpush1.bf16.msra.mxu1 %v6616_v14 }
 0x3e2   :  { %2452 = vmatprep.subr.bf16.mxu0 %v6619_v9  ;;  %2493 = vmatprep.subr.bf16.mxu1 %v6622_v44 }
 0x3e5   :  { %2453 = vmatpush1.bf16.msra.mxu0 %v6102_v12  ;;  %2494 = vmatpush1.bf16.msra.mxu1 %v6104_v15  ;;  %v8190_v12 = vld [vmem:[#allocation53_spill] sm:$0xff]  ;;  %v8191_v15 = vld [vmem:[#allocation54_spill] sm:$0xff] }
 0x3e6   :  { %2565 = vmatprep.subr.bf16.mxu0 %v6140_v45  ;;  %2606 = vmatprep.subr.bf16.mxu1 %v6142_v62  ;;  %v8192_v45 = vld [vmem:[#allocation55_spill] sm:$0xff]  ;;  %v8193_v62 = vld [vmem:[#allocation56_spill] sm:$0xff] }
 0x3e8   :  { %2471 = vmatmul.mubr.bf16.vlgmr.msra.gmra.mrb[56].mxu0 %v6535_v40  ;;  %2512 = vmatmul.mubr.bf16.vlgmr.msra.gmra.mrb[56].mxu1 %v6535_v40 }
 0x3e9   :  { %2566 = vmatpush1.bf16.msra.mxu0 %v6144_v63  ;;  %2607 = vmatpush1.bf16.msra.mxu1 %v6146_v59 }
 0x3ea   :  { %2567 = vmatprep.subr.bf16.mxu0 %v6148_v61  ;;  %2608 = vmatprep.subr.bf16.mxu1 %v6150_v53 }
 0x3eb   :  { %2597 = vmatprep.mubr.bf16.mxu0 %v8067_v47  ;;  %2638 = vmatprep.mubr.bf16.mxu1 %v8067_v47 }
 0x3ed   :  { %2568 = vmatpush1.bf16.msra.mxu0 %v8105_v20  ;;  %2609 = vmatpush1.bf16.msra.mxu1 %v8106_v21 }
 0x3ee   :  { %2569 = vmatprep.subr.bf16.mxu0 %v8107_v22  ;;  %2610 = vmatprep.subr.bf16.mxu1 %v8108_v23 }
 0x3f1   :  { %2570 = vmatpush1.bf16.msra.mxu0 %v8109_v24  ;;  %2611 = vmatpush1.bf16.msra.mxu1 %v8110_v25 }
 0x3f2   :  { %2571 = vmatprep.subr.bf16.mxu0 %v8111_v26  ;;  %2612 = vmatprep.subr.bf16.mxu1 %v8112_v27 }
 0x3f5   :  { %2572 = vmatpush1.bf16.msra.mxu0 %v8113_v28  ;;  %2613 = vmatpush1.bf16.msra.mxu1 %v8114_v29 }
 0x3f6   :  { %2573 = vmatprep.subr.bf16.mxu0 %v8115_v30  ;;  %2614 = vmatprep.subr.bf16.mxu1 %v8116_v31 }
 0x3f9   :  { %2574 = vmatpush1.bf16.msra.mxu0 %v8117_v34  ;;  %2615 = vmatpush1.bf16.msra.mxu1 %v8118_v35 }
 0x3fa   :  { %2575 = vmatprep.subr.bf16.mxu0 %v8119_v38  ;;  %2616 = vmatprep.subr.bf16.mxu1 %v8120_v39 }
 0x3fd   :  { %2576 = vmatpush1.bf16.msra.mxu0 %v8121_v1  ;;  %2617 = vmatpush1.bf16.msra.mxu1 %v8122_v2 }
 0x3fe   :  { %2577 = vmatprep.subr.bf16.mxu0 %v8123_v6  ;;  %2618 = vmatprep.subr.bf16.mxu1 %v8124_v7 }
 0x401   :  { %2578 = vmatpush1.bf16.msra.mxu0 %v8125_v54  ;;  %2619 = vmatpush1.bf16.msra.mxu1 %v8126_v56 }
 0x402   :  { %2579 = vmatprep.subr.bf16.mxu0 %v8127_v52  ;;  %2620 = vmatprep.subr.bf16.mxu1 %v8128_v3 }
 0x405   :  { %2580 = vmatpush1.bf16.msra.mxu0 %v8190_v12  ;;  %2621 = vmatpush1.bf16.msra.mxu1 %v8191_v15 }
 0x406   :  { %2647 = vmatprep.subr.bf16.mxu0 %v8192_v45  ;;  %2688 = vmatprep.subr.bf16.mxu1 %v8193_v62 }
 0x475   :  { %v2279_v63 = vpop.f32.mrb[48].mxu0  ;;  %v2320_v59 = vpop.f32.mrb[48].mxu1 }
 0x476   :  { %v2281_v61 = vpop.f32.mrb[49].mxu0  ;;  %v2322_v53 = vpop.f32.mrb[49].mxu1 }
 0x477   :  { %v2283_v20 = vpop.f32.mrb[50].mxu0  ;;  %v2324_v21 = vpop.f32.mrb[50].mxu1 }
 0x478   :  { %v2284_v22 = vpop.f32.mrb[51].mxu0  ;;  %v2325_v23 = vpop.f32.mrb[51].mxu1 }
 0x49b   :  { %v2361_v24 = vpop.f32.mrb[52].mxu0  ;;  %v2402_v25 = vpop.f32.mrb[52].mxu1 }
 0x49c   :  { %v2362_v26 = vadd.f32 %v2361_v24, %v2279_v63  ;;  %v2403_v27 = vadd.f32 %v2402_v25, %v2320_v59  ;;  %v2363_v28 = vpop.f32.mrb[53].mxu0  ;;  %v2404_v29 = vpop.f32.mrb[53].mxu1 }
 0x49d   :  { %v2364_v30 = vadd.f32 %v2363_v28, %v2281_v61  ;;  %v2405_v31 = vadd.f32 %v2404_v29, %v2322_v53  ;;  %v2365_v34 = vpop.f32.mrb[54].mxu0  ;;  %v2406_v35 = vpop.f32.mrb[54].mxu1 }
 0x49e   :  { %v2409_v38 = vadd.f32 %v2362_v26, %v6467_v57  ;;  %v2366_v39 = vpop.f32.mrb[55].mxu0  ;;  %v2407_v1 = vpop.f32.mrb[55].mxu1  ;;  %v2411_v54 = vadd.f32 %v2403_v27, %v6477_v18 }
 0x49f   :  { %v2410_v2 = vadd.f32 %v2364_v30, %v6471_v8  ;;  %v2412_v56 = vadd.f32 %v2405_v31, %v6481_v33  ;;  %v8194_v39 = vld [vmem:[#allocation23_spill] sm:$0xff] }
 0x4a0   :  { %v4640_v6 = vmul.f32 -1.442695, %v2409_v38  ;;  %v4642_v52 = vmul.f32 -1.442695, %v2411_v54 }
 0x4a1   :  { %v4641_v7 = vmul.f32 -1.442695, %v2410_v2 }
 0x4a2   :  { %4954 = vpow2.f32 %v4640_v6 }
 0x4a3   :  { %4956 = vpow2.f32 %v4641_v7 }
 0x4a4   :  { %4958 = vtanh.f32 %v2412_v56 }
 0x4a5   :  { %4960 = vpow2.f32 %v4642_v52 }
 0x4ac   :  { %v4955_v3 = vpop.eup %4954 }
 0x4ad   :  { %v2422_v40 = vadd.f32 1.0, %v4955_v3  ;;  %v4957_v12 = vpop.eup %4956 }
 0x4ae   :  { %v2423_v15 = vadd.f32 1.0, %v4957_v12  ;;  %v4959_v45 = vpop.eup %4958 }
 0x4af   :  { %4962 = vrcp.f32 %v2422_v40  ;;  %v4961_v62 = vpop.eup %4960 }
 0x4b0   :  { %4964 = vrcp.f32 %v2423_v15  ;;  %v2424_v53 = vadd.f32 1.0, %v4961_v62  ;;  %v8205_v62 = vld [vmem:[#allocation76_spill] sm:$0xff] }
 0x4b2   :  { %4966 = vrcp.f32 %v2424_v53  ;;  %v8207_v53 = vld [vmem:[#allocation80_spill] sm:$0xff] }
 0x4b9   :  { %v4963_v63 = vpop.eup %4962 }
 0x4ba   :  { %v2433_v59 = vmul.f32 %v4963_v63, %v4959_v45  ;;  %v4965_v61 = vpop.eup %4964  ;;  %v8204_v45 = vld [vmem:[#allocation75_spill] sm:$0xff] }
 0x4bb   :  { %v2472_v20 = vpop.f32.mrb[56].mxu0  ;;  %v2513_v21 = vpop.f32.mrb[56].mxu1  ;;  %v2432_v22 = vmul.f32 %v4965_v61, %v6485_v36  ;;  %v8195_v36 = vld [vmem:[#allocation24_spill] sm:$0xff]  ;;  %v8206_v61 = vld [vmem:[#allocation79_spill] sm:$0xff] }
 0x4bc   :  { %v2474_v23 = vpop.f32.mrb[57].mxu0  ;;  %v2515_v24 = vpop.f32.mrb[57].mxu1  ;;  %v8196_v1 = vcombine.low %v8194_v39, %v8195_v36  ;;  %v8224_v39 = vld [vmem:[#allocation41_spill] sm:$0xff]  ;;  %v8225_v36 = vld [vmem:[#allocation42_spill] sm:$0xff] }
 0x4bd   :  { %v2524_v25 = vcombine.low %v2472_v20, %v2474_v23  ;;  %v2525_v26 = vcombine.low %v2513_v21, %v2515_v24  ;;  %v2476_v27 = vpop.f32.mrb[58].mxu0  ;;  %v2517_v28 = vpop.f32.mrb[58].mxu1  ;;  %v6670_v29 = vadd.f32 %v2433_v59, %v2432_v22  ;;  %v8209_v20 = vld [vmem:[#allocation82_spill] sm:$0xff] }
 0x4be   :  { %v2477_v30 = vpop.f32.mrb[59].mxu0  ;;  %v2518_v31 = vpop.f32.mrb[59].mxu1  ;;  %v8211_v21 = vld [vmem:[#allocation86_spill] sm:$0xff]  ;;  %v8217_v27 = vld [vmem:[#allocation32_spill] sm:$0xff]  ;;  %v8218_v28 = vld [vmem:[#allocation33_spill] sm:$0xff] }
 0x4bf   :  { %v2532_v34 = vrot.slane %v2524_v25, %v5981_v5  ;;  %v2539_v35 = vrot.slane %v2525_v26, %v5981_v5  ;;  %4968 = vtanh.f32 %v6670_v29  ;;  %v4967_v7 = vpop.eup %4966  ;;  %v8213_v25 = vld [vmem:[#allocation28_spill] sm:$0xff]  ;;  %v8216_v26 = vld [vmem:[#allocation31_spill] sm:$0xff]  ;;  %v8219_v30 = vld [vmem:[#allocation34_spill] sm:$0xff] }
 0x4c0   :  { %v8220_v31 = vld [vmem:[#allocation35_spill] sm:$0xff] }
 0x4c1   :  { %v2540_v38 = vcombine.low %v2532_v34, %v2539_v35  ;;  %v8221_v34 = vld [vmem:[#allocation36_spill] sm:$0xff]  ;;  %v8222_v35 = vld [vmem:[#allocation37_spill] sm:$0xff] }
 0x4c3   :  { %v2542_v2 = vadd.f32 %v2540_v38, %v8196_v1  ;;  %v8223_v38 = vld [vmem:[#allocation38_spill] sm:$0xff]  ;;  %v8226_v1 = vld [vmem:[#allocation43_spill] sm:$0xff] }
 0x4c5   :  { %v4643_v6 = vmul.f32 -1.442695, %v2542_v2  ;;  %v2550_v12 = vrot.slane %v2542_v2, 6  ;;  %v8227_v2 = vld [vmem:[#allocation44_spill] sm:$0xff] }
 0x4c7   :  { %4970 = vpow2.f32 %v4643_v6  ;;  %v8228_v6 = vld [vmem:[#allocation45_spill] sm:$0xff] }
 0x4c9   :  { %v4969_v54 = vpop.eup %4968 }
 0x4ca   :  { %v2436_v56 = vmul.f32 %v4969_v54, %v4967_v7  ;;  %v8229_v7 = vld [vmem:[#allocation46_spill] sm:$0xff]  ;;  %v8230_v54 = vld [vmem:[#allocation47_spill] sm:$0xff] }
 0x4cc   :  { %v2564_v52 = vpack.c.bf16 %v2436_v56, %v2436_v56  ;;  %v8231_v56 = vld [vmem:[#allocation48_spill] sm:$0xff] }
 0x4ce   :  { %2598 = vmatmul.mubr.bf16.vlgmr.msra.gmra.mrb[60].mxu0 %v2564_v52  ;;  %2639 = vmatmul.mubr.bf16.vlgmr.msra.gmra.mrb[60].mxu1 %v2564_v52  ;;  %v8232_v52 = vld [vmem:[#allocation49_spill] sm:$0xff] }
 0x4cf   :  { %2648 = vmatpush1.bf16.msra.mxu0 %v8141_v11  ;;  %2689 = vmatpush1.bf16.msra.mxu1 %v8142_v42  ;;  %v8197_v11 = vld [vmem:[#allocation65_spill] sm:$0xff]  ;;  %v8198_v42 = vld [vmem:[#allocation66_spill] sm:$0xff] }
 0x4d0   :  { %2649 = vmatprep.subr.bf16.mxu0 %v8143_v43  ;;  %2690 = vmatprep.subr.bf16.mxu1 %v8144_v16  ;;  %v8199_v43 = vld [vmem:[#allocation67_spill] sm:$0xff]  ;;  %v8200_v16 = vld [vmem:[#allocation68_spill] sm:$0xff] }
 0x4d1   :  { %v4971_v3 = vpop.eup %4970  ;;  %2679 = vmatprep.mubr.bf16.mxu0 %v8067_v47  ;;  %2720 = vmatprep.mubr.bf16.mxu1 %v8067_v47 }
 0x4d2   :  { %v2546_v40 = vadd.f32 1.0, %v4971_v3  ;;  %v8233_v3 = vld [vmem:[#allocation50_spill] sm:$0xff] }
 0x4d3   :  { %2650 = vmatpush1.bf16.msra.mxu0 %v8145_v37  ;;  %2691 = vmatpush1.bf16.msra.mxu1 %v8146_v17  ;;  %v8201_v37 = vld [vmem:[#allocation69_spill] sm:$0xff]  ;;  %v8202_v17 = vld [vmem:[#allocation70_spill] sm:$0xff] }
 0x4d4   :  { %4972 = vrcp.f32 %v2546_v40  ;;  %2651 = vmatprep.subr.bf16.mxu0 %v8147_v19  ;;  %2692 = vmatprep.subr.bf16.mxu1 %v8148_v10  ;;  %v6746_v40 = vld [vmem:[#allocation8 + $0xe0] ss:$16 sps:$4 sm:$0xff]  }
 0x4d5   :  { %4974 = vtanh.f32 %v2550_v12  ;;  %v6749_v12 = vld [vmem:[#allocation8 + $0xe8] ss:$16 sps:$4 sm:$0xff]  }
 0x4d7   :  { %2652 = vmatpush1.bf16.msra.mxu0 %v6280_v4  ;;  %2693 = vmatpush1.bf16.msra.mxu1 %v6282_v0  ;;  %v8203_v4 = vld [vmem:[#allocation74_spill] sm:$0xff] }
 0x4d8   :  { %2653 = vmatprep.subr.bf16.mxu0 %v8197_v11  ;;  %2694 = vmatprep.subr.bf16.mxu1 %v8198_v42  ;;  %v6752_v11 = vld [vmem:[#allocation11 + $0x4] ss:$16 sps:$4 sm:$0xff]   ;;  %v6755_v42 = vld [vmem:[#allocation11 + $0xc] ss:$16 sps:$4 sm:$0xff]  }
 0x4db   :  { %2654 = vmatpush1.bf16.msra.mxu0 %v8199_v43  ;;  %2695 = vmatpush1.bf16.msra.mxu1 %v8200_v16  ;;  %v6758_v43 = vld [vmem:[#allocation11] ss:$16 sps:$4 sm:$0xff]   ;;  %v6761_v16 = vld [vmem:[#allocation11 + $0x8] ss:$16 sps:$4 sm:$0xff]  }
 0x4dc   :  { %2655 = vmatprep.subr.bf16.mxu0 %v8201_v37  ;;  %2696 = vmatprep.subr.bf16.mxu1 %v8202_v17  ;;  %8234 = vst [vmem:[#allocation51_spill] sm:$0xff] %v6758_v43  ;;  %8235 = vst [vmem:[#allocation52_spill] sm:$0xff] %v6761_v16  ;;  %v6764_v37 = vld [vmem:[#allocation11 + $0x24] ss:$16 sps:$4 sm:$0xff]   ;;  %v6767_v17 = vld [vmem:[#allocation11 + $0x2c] ss:$16 sps:$4 sm:$0xff]  }
 0x4dd   :  { %8236 = vst [vmem:[#allocation20_spill] sm:$0xff] %v6764_v37  ;;  %8237 = vst [vmem:[#allocation21_spill] sm:$0xff] %v6767_v17 }
 0x4de   :  { %v4973_v19 = vpop.eup %4972 }
 0x4df   :  { %v2554_v15 = vrot.slane %v4973_v19, 2  ;;  %v4975_v10 = vpop.eup %4974  ;;  %2656 = vmatpush1.bf16.msra.mxu0 %v8154_v13  ;;  %2697 = vmatpush1.bf16.msra.mxu1 %v8203_v4  ;;  %v8208_v13 = vld [vmem:[#allocation81_spill] sm:$0xff] }
 0x4e0   :  { %v2557_v0 = vmul.f32 %v4975_v10, %v4973_v19  ;;  %2657 = vmatprep.subr.bf16.mxu0 %v8204_v45  ;;  %2698 = vmatprep.subr.bf16.mxu1 %v8205_v62  ;;  %v6778_v10 = vld [vmem:[#allocation11 + $0x44] ss:$16 sps:$4 sm:$0xff]   ;;  %v6781_v4 = vld [vmem:[#allocation11 + $0x4c] ss:$16 sps:$4 sm:$0xff]   ;;  %v6787_v45 = vld [vmem:[#allocation11 + $0x48] ss:$16 sps:$4 sm:$0xff]  }
 0x4e1   :  { %v2556_v63 = vmul.f32 %v2554_v15, %v6516_v48  ;;  %v8210_v48 = vld [vmem:[#allocation85_spill] sm:$0xff]  ;;  %8240 = vst [vmem:[#allocation58_spill] sm:$0xff] %v6778_v10  ;;  %8241 = vst [vmem:[#allocation59_spill] sm:$0xff] %v6781_v4  ;;  %v6790_v62 = vld [vmem:[#allocation11 + $0x64] ss:$16 sps:$4 sm:$0xff]  }
 0x4e2   :  { %v6775_v15 = vld [vmem:[#allocation11 + $0x28] ss:$16 sps:$4 sm:$0xff]   ;;  %8243 = vst [vmem:[#allocation61_spill] sm:$0xff] %v6787_v45  ;;  %8244 = vst [vmem:[#allocation62_spill] sm:$0xff] %v6790_v62 }
 0x4e3   :  { %v6701_v59 = vadd.f32 %v2557_v0, %v2556_v63  ;;  %2658 = vmatpush1.bf16.msra.mxu0 %v8158_v58  ;;  %2699 = vmatpush1.bf16.msra.mxu1 %v8159_v49  ;;  %v8212_v58 = vld [vmem:[#allocation27_spill] sm:$0xff]  ;;  %v2560_v49 = vrot.slane %v4973_v19, 4  ;;  %8239 = vst [vmem:[#allocation57_spill] sm:$0xff] %v6775_v15 }
 0x4e4   :  { %2659 = vmatprep.subr.bf16.mxu0 %v8206_v61  ;;  %2700 = vmatprep.subr.bf16.mxu1 %v8207_v53  ;;  %v6772_v19 = vld [vmem:[#allocation11 + $0x20] ss:$16 sps:$4 sm:$0xff]   ;;  %v6793_v63 = vld [vmem:[#allocation11 + $0x6c] ss:$16 sps:$4 sm:$0xff]   ;;  %v6799_v53 = vld [vmem:[#allocation11 + $0x68] ss:$16 sps:$4 sm:$0xff]  }
 0x4e5   :  { %4976 = vtanh.f32 %v6701_v59  ;;  %8238 = vst [vmem:[#allocation22_spill] sm:$0xff] %v6772_v19  ;;  %v6784_v0 = vld [vmem:[#allocation11 + $0x40] ss:$16 sps:$4 sm:$0xff]   ;;  %8245 = vst [vmem:[#allocation63_spill] sm:$0xff] %v6793_v63 }
 0x4e6   :  { %8242 = vst [vmem:[#allocation60_spill] sm:$0xff] %v6784_v0  ;;  %v6796_v61 = vld [vmem:[#allocation11 + $0x60] ss:$16 sps:$4 sm:$0xff]   ;;  %8247 = vst [vmem:[#allocation73_spill] sm:$0xff] %v6799_v53 }
 0x4e7   :  { %2660 = vmatpush1.bf16.msra.mxu0 %v8208_v13  ;;  %2701 = vmatpush1.bf16.msra.mxu1 %v8209_v20  ;;  %8246 = vst [vmem:[#allocation64_spill] sm:$0xff] %v6796_v61  ;;  %v6802_v13 = vld [vmem:[#allocation11 + $0x84] ss:$16 sps:$4 sm:$0xff]   ;;  %v6805_v20 = vld [vmem:[#allocation11 + $0x8c] ss:$16 sps:$4 sm:$0xff]  }
 0x4e8   :  { %2661 = vmatprep.subr.bf16.mxu0 %v8164_v46  ;;  %2702 = vmatprep.subr.bf16.mxu1 %v8165_v32  ;;  %v8214_v46 = vld [vmem:[#allocation29_spill] sm:$0xff]  ;;  %v8215_v32 = vld [vmem:[#allocation30_spill] sm:$0xff]  ;;  %8248 = vst [vmem:[#allocation77_spill] sm:$0xff] %v6802_v13  ;;  %8249 = vst [vmem:[#allocation78_spill] sm:$0xff] %v6805_v20 }
 0x4eb   :  { %2662 = vmatpush1.bf16.msra.mxu0 %v8210_v48  ;;  %2703 = vmatpush1.bf16.msra.mxu1 %v8211_v21  ;;  %v6808_v48 = vld [vmem:[#allocation11 + $0x80] ss:$16 sps:$4 sm:$0xff]   ;;  %v6811_v21 = vld [vmem:[#allocation11 + $0x88] ss:$16 sps:$4 sm:$0xff]  }
 0x4ec   :  { %2758 = vmatprep.subr.bf16.mxu0 %v8212_v58  ;;  %2799 = vmatprep.subr.bf16.mxu1 %v6532_v41  ;;  %8250 = vst [vmem:[#allocation83_spill] sm:$0xff] %v6808_v48  ;;  %8251 = vst [vmem:[#allocation84_spill] sm:$0xff] %v6811_v21 }
 0x4ef   :  { %v4977_v22 = vpop.eup %4976 }
 0x4f0   :  { %v2562_v23 = vmul.f32 %v4977_v22, %v2560_v49  ;;  %v6814_v49 = vld [vmem:[#allocation11 + $0xa4] ss:$16 sps:$4 sm:$0xff]   ;;  %v6817_v22 = vld [vmem:[#allocation11 + $0xac] ss:$16 sps:$4 sm:$0xff]  }
 0x4f1   :  { %8252 = vst [vmem:[#allocation53_spill] sm:$0xff] %v6814_v49  ;;  %8253 = vst [vmem:[#allocation54_spill] sm:$0xff] %v6817_v22 }
 0x4f2   :  { %v2563_v24 = vpack.c.bf16 %v2562_v23, %v2562_v23  ;;  %v6820_v23 = vld [vmem:[#allocation11 + $0xa0] ss:$16 sps:$4 sm:$0xff]  }
 0x4f3   :  { %8254 = vst [vmem:[#allocation55_spill] sm:$0xff] %v6820_v23 }
 0x4f4   :  { %2680 = vmatmul.mubr.bf16.vlgmr.msra.gmra.mrb[64].mxu0 %v2563_v24  ;;  %2721 = vmatmul.mubr.bf16.vlgmr.msra.gmra.mrb[64].mxu1 %v2563_v24 }
 0x4f5   :  { %2759 = vmatpush1.bf16.msra.mxu0 %v6539_v60  ;;  %2800 = vmatpush1.bf16.msra.mxu1 %v8213_v25 }
 0x4f6   :  { %2760 = vmatprep.subr.bf16.mxu0 %v8214_v46  ;;  %2801 = vmatprep.subr.bf16.mxu1 %v8215_v32 }
 0x4f7   :  { %2790 = vmatprep.mubr.bf16.mxu0 %v8067_v47  ;;  %2831 = vmatprep.mubr.bf16.mxu1 %v8067_v47 }
 0x4f9   :  { %2761 = vmatpush1.bf16.msra.mxu0 %v8216_v26  ;;  %2802 = vmatpush1.bf16.msra.mxu1 %v8217_v27 }
 0x4fa   :  { %2762 = vmatprep.subr.bf16.mxu0 %v8218_v28  ;;  %2803 = vmatprep.subr.bf16.mxu1 %v8219_v30 }
 0x4fd   :  { %2763 = vmatpush1.bf16.msra.mxu0 %v8220_v31  ;;  %2804 = vmatpush1.bf16.msra.mxu1 %v8221_v34 }
 0x4fe   :  { %2764 = vmatprep.subr.bf16.mxu0 %v8222_v35  ;;  %2805 = vmatprep.subr.bf16.mxu1 %v8223_v38 }
 0x501   :  { %2765 = vmatpush1.bf16.msra.mxu0 %v8224_v39  ;;  %2806 = vmatpush1.bf16.msra.mxu1 %v8225_v36 }
 0x502   :  { %2766 = vmatprep.subr.bf16.mxu0 %v8226_v1  ;;  %2807 = vmatprep.subr.bf16.mxu1 %v8227_v2 }
 0x505   :  { %2767 = vmatpush1.bf16.msra.mxu0 %v8228_v6  ;;  %2808 = vmatpush1.bf16.msra.mxu1 %v8229_v7 }
 0x506   :  { %2768 = vmatprep.subr.bf16.mxu0 %v8230_v54  ;;  %2809 = vmatprep.subr.bf16.mxu1 %v8231_v56 }
 0x509   :  { %2769 = vmatpush1.bf16.msra.mxu0 %v8232_v52  ;;  %2810 = vmatpush1.bf16.msra.mxu1 %v8233_v3 }
 0x50a   :  { %2770 = vmatprep.subr.bf16.mxu0 %v6607_v51  ;;  %2811 = vmatprep.subr.bf16.mxu1 %v6610_v50 }
 0x50d   :  { %2771 = vmatpush1.bf16.msra.mxu0 %v6613_v55  ;;  %2812 = vmatpush1.bf16.msra.mxu1 %v6616_v14 }
 0x50e   :  { %2772 = vmatprep.subr.bf16.mxu0 %v6619_v9  ;;  %2813 = vmatprep.subr.bf16.mxu1 %v6622_v44 }
 0x511   :  { %2773 = vmatpush1.bf16.msra.mxu0 %v6746_v40  ;;  %2814 = vmatpush1.bf16.msra.mxu1 %v6749_v12 }
 0x512   :  { %2885 = vmatprep.subr.bf16.mxu0 %v6752_v11  ;;  %2926 = vmatprep.subr.bf16.mxu1 %v6755_v42 }
 0x514   :  { %2791 = vmatmul.mubr.bf16.vlgmr.msra.gmra.mrb[68].mxu0 %v2563_v24  ;;  %2832 = vmatmul.mubr.bf16.vlgmr.msra.gmra.mrb[68].mxu1 %v2563_v24  ;;  %v6823_v24 = vld [vmem:[#allocation11 + $0xa8] ss:$16 sps:$4 sm:$0xff]  }
 0x515   :  { %2886 = vmatpush1.bf16.msra.mxu0 %v6758_v43  ;;  %2927 = vmatpush1.bf16.msra.mxu1 %v6761_v16  ;;  %8255 = vst [vmem:[#allocation56_spill] sm:$0xff] %v6823_v24 }
 0x516   :  { %2887 = vmatprep.subr.bf16.mxu0 %v6764_v37  ;;  %2928 = vmatprep.subr.bf16.mxu1 %v6767_v17 }
 0x517   :  { %2917 = vmatprep.mubr.bf16.mxu0 %v8067_v47  ;;  %2958 = vmatprep.mubr.bf16.mxu1 %v8067_v47 }
 0x519   :  { %2888 = vmatpush1.bf16.msra.mxu0 %v6772_v19  ;;  %2929 = vmatpush1.bf16.msra.mxu1 %v6775_v15 }
 0x51a   :  { %2889 = vmatprep.subr.bf16.mxu0 %v6778_v10  ;;  %2930 = vmatprep.subr.bf16.mxu1 %v6781_v4 }
 0x51d   :  { %2890 = vmatpush1.bf16.msra.mxu0 %v6784_v0  ;;  %2931 = vmatpush1.bf16.msra.mxu1 %v6787_v45 }
 0x51e   :  { %2891 = vmatprep.subr.bf16.mxu0 %v6790_v62  ;;  %2932 = vmatprep.subr.bf16.mxu1 %v6793_v63 }
 0x521   :  { %2892 = vmatpush1.bf16.msra.mxu0 %v6796_v61  ;;  %2933 = vmatpush1.bf16.msra.mxu1 %v6799_v53 }
 0x522   :  { %2893 = vmatprep.subr.bf16.mxu0 %v6802_v13  ;;  %2934 = vmatprep.subr.bf16.mxu1 %v6805_v20 }
 0x525   :  { %2894 = vmatpush1.bf16.msra.mxu0 %v6808_v48  ;;  %2935 = vmatpush1.bf16.msra.mxu1 %v6811_v21  ;;  %v6826_v48 = vld [vmem:[#allocation11 + $0xc4] ss:$16 sps:$4 sm:$0xff]   ;;  %v6829_v21 = vld [vmem:[#allocation11 + $0xcc] ss:$16 sps:$4 sm:$0xff]  }
 0x526   :  { %2895 = vmatprep.subr.bf16.mxu0 %v6814_v49  ;;  %2936 = vmatprep.subr.bf16.mxu1 %v6817_v22  ;;  %8256 = vst [vmem:[#allocation23_spill] sm:$0xff] %v6826_v48  ;;  %8257 = vst [vmem:[#allocation24_spill] sm:$0xff] %v6829_v21  ;;  %v6832_v49 = vld [vmem:[#allocation11 + $0xc0] ss:$16 sps:$4 sm:$0xff]   ;;  %v6835_v22 = vld [vmem:[#allocation11 + $0xc8] ss:$16 sps:$4 sm:$0xff]  }
 0x527   :  { %8258 = vst [vmem:[#allocation65_spill] sm:$0xff] %v6832_v49  ;;  %8259 = vst [vmem:[#allocation66_spill] sm:$0xff] %v6835_v22 }
 0x529   :  { %2896 = vmatpush1.bf16.msra.mxu0 %v6820_v23  ;;  %2937 = vmatpush1.bf16.msra.mxu1 %v6823_v24  ;;  %v6838_v23 = vld [vmem:[#allocation11 + $0xe4] ss:$16 sps:$4 sm:$0xff]   ;;  %v6841_v24 = vld [vmem:[#allocation11 + $0xec] ss:$16 sps:$4 sm:$0xff]  }
 0x52a   :  { %2897 = vmatprep.subr.bf16.mxu0 %v6826_v48  ;;  %2938 = vmatprep.subr.bf16.mxu1 %v6829_v21  ;;  %8260 = vst [vmem:[#allocation67_spill] sm:$0xff] %v6838_v23  ;;  %8261 = vst [vmem:[#allocation68_spill] sm:$0xff] %v6841_v24  ;;  %v6844_v48 = vld [vmem:[#allocation11 + $0xe0] ss:$16 sps:$4 sm:$0xff]   ;;  %v6847_v21 = vld [vmem:[#allocation11 + $0xe8] ss:$16 sps:$4 sm:$0xff]  }
 0x52b   :  { %8262 = vst [vmem:[#allocation69_spill] sm:$0xff] %v6844_v48  ;;  %8263 = vst [vmem:[#allocation70_spill] sm:$0xff] %v6847_v21 }
 0x52d   :  { %2898 = vmatpush1.bf16.msra.mxu0 %v6832_v49  ;;  %2939 = vmatpush1.bf16.msra.mxu1 %v6835_v22  ;;  %v6850_v49 = vld [vmem:[#allocation9 + $0x4] ss:$16 sps:$4 sm:$0xff]   ;;  %v6853_v22 = vld [vmem:[#allocation9 + $0xc] ss:$16 sps:$4 sm:$0xff]  }
 0x52e   :  { %2899 = vmatprep.subr.bf16.mxu0 %v6838_v23  ;;  %2940 = vmatprep.subr.bf16.mxu1 %v6841_v24  ;;  %8264 = vst [vmem:[#allocation74_spill] sm:$0xff] %v6850_v49  ;;  %8265 = vst [vmem:[#allocation75_spill] sm:$0xff] %v6853_v22 }
 0x531   :  { %2900 = vmatpush1.bf16.msra.mxu0 %v6844_v48  ;;  %2941 = vmatpush1.bf16.msra.mxu1 %v6847_v21 }
 0x532   :  { %2967 = vmatprep.subr.bf16.mxu0 %v6850_v49  ;;  %3008 = vmatprep.subr.bf16.mxu1 %v6853_v22 }
 0x5a1   :  { %v2599_v23 = vpop.f32.mrb[60].mxu0  ;;  %v2640_v20 = vpop.f32.mrb[60].mxu1 }
 0x5a2   :  { %v2601_v13 = vpop.f32.mrb[61].mxu0  ;;  %v2642_v24 = vpop.f32.mrb[61].mxu1 }
 0x5a3   :  { %v2603_v53 = vpop.f32.mrb[62].mxu0  ;;  %v2644_v61 = vpop.f32.mrb[62].mxu1 }
 0x5a4   :  { %v2604_v63 = vpop.f32.mrb[63].mxu0  ;;  %v2645_v48 = vpop.f32.mrb[63].mxu1 }
 0x5c7   :  { %v2681_v62 = vpop.f32.mrb[64].mxu0  ;;  %v2722_v45 = vpop.f32.mrb[64].mxu1 }
 0x5c8   :  { %v2682_v0 = vadd.f32 %v2681_v62, %v2599_v23  ;;  %v2723_v21 = vadd.f32 %v2722_v45, %v2640_v20  ;;  %v2683_v4 = vpop.f32.mrb[65].mxu0  ;;  %v2724_v10 = vpop.f32.mrb[65].mxu1 }
 0x5c9   :  { %v2684_v15 = vadd.f32 %v2683_v4, %v2601_v13  ;;  %v2725_v49 = vadd.f32 %v2724_v10, %v2642_v24  ;;  %v2685_v19 = vpop.f32.mrb[66].mxu0  ;;  %v2726_v17 = vpop.f32.mrb[66].mxu1 }
 0x5ca   :  { %v2729_v22 = vadd.f32 %v2682_v0, %v6467_v57  ;;  %v2686_v37 = vpop.f32.mrb[67].mxu0  ;;  %v2727_v16 = vpop.f32.mrb[67].mxu1  ;;  %v2731_v63 = vadd.f32 %v2723_v21, %v6477_v18 }
 0x5cb   :  { %v2730_v43 = vadd.f32 %v2684_v15, %v6471_v8  ;;  %v2732_v45 = vadd.f32 %v2725_v49, %v6481_v33 }
 0x5cc   :  { %v4644_v53 = vmul.f32 -1.442695, %v2729_v22  ;;  %v4646_v62 = vmul.f32 -1.442695, %v2731_v63 }
 0x5cd   :  { %v4645_v61 = vmul.f32 -1.442695, %v2730_v43 }
 0x5ce   :  { %4978 = vpow2.f32 %v4644_v53 }
 0x5cf   :  { %4980 = vpow2.f32 %v4645_v61 }
 0x5d0   :  { %4982 = vtanh.f32 %v2732_v45 }
 0x5d1   :  { %4984 = vpow2.f32 %v4646_v62 }
 0x5d8   :  { %v4979_v20 = vpop.eup %4978 }
 0x5d9   :  { %v2742_v4 = vadd.f32 1.0, %v4979_v20  ;;  %v4981_v19 = vpop.eup %4980 }
 0x5da   :  { %v2743_v17 = vadd.f32 1.0, %v4981_v19  ;;  %v4983_v16 = vpop.eup %4982 }
 0x5db   :  { %4986 = vrcp.f32 %v2742_v4  ;;  %v4985_v37 = vpop.eup %4984 }
 0x5dc   :  { %4988 = vrcp.f32 %v2743_v17  ;;  %v2744_v0 = vadd.f32 1.0, %v4985_v37  ;;  %v8266_v17 = vld [vmem:[#allocation25_spill] sm:$0xff] }
 0x5de   :  { %4990 = vrcp.f32 %v2744_v0  ;;  %v6869_v0 = vld [vmem:[#allocation9] ss:$16 sps:$4 sm:$0xff]  }
 0x5e5   :  { %v4987_v15 = vpop.eup %4986 }
 0x5e6   :  { %v2753_v10 = vmul.f32 %v4987_v15, %v4983_v16  ;;  %v4989_v43 = vpop.eup %4988 }
 0x5e7   :  { %v2792_v13 = vpop.f32.mrb[68].mxu0  ;;  %v2833_v48 = vpop.f32.mrb[68].mxu1  ;;  %v2752_v21 = vmul.f32 %v4989_v43, %v6670_v29  ;;  %v8267_v29 = vld [vmem:[#allocation26_spill] sm:$0xff] }
 0x5e8   :  { %v2794_v49 = vpop.f32.mrb[69].mxu0  ;;  %v2835_v22 = vpop.f32.mrb[69].mxu1  ;;  %v8268_v16 = vcombine.low %v8266_v17, %v8267_v29  ;;  %v6901_v17 = vld [vmem:[#allocation9 + $0x64] ss:$16 sps:$4 sm:$0xff]   ;;  %v6904_v29 = vld [vmem:[#allocation9 + $0x6c] ss:$16 sps:$4 sm:$0xff]  }
 0x5e9   :  { %v2844_v23 = vcombine.low %v2792_v13, %v2794_v49  ;;  %v2845_v24 = vcombine.low %v2833_v48, %v2835_v22  ;;  %v2796_v53 = vpop.f32.mrb[70].mxu0  ;;  %v2837_v61 = vpop.f32.mrb[70].mxu1  ;;  %v6861_v63 = vadd.f32 %v2753_v10, %v2752_v21  ;;  %v6872_v21 = vld [vmem:[#allocation9 + $0x8] ss:$16 sps:$4 sm:$0xff]   ;;  %v6875_v22 = vld [vmem:[#allocation9 + $0x24] ss:$16 sps:$4 sm:$0xff]  }
 0x5ea   :  { %v2797_v45 = vpop.f32.mrb[71].mxu0  ;;  %v2838_v62 = vpop.f32.mrb[71].mxu1  ;;  %v6883_v61 = vld [vmem:[#allocation9 + $0x20] ss:$16 sps:$4 sm:$0xff]   ;;  %8269 = vst [vmem:[#allocation76_spill] sm:$0xff] %v6904_v29 }
 0x5eb   :  { %v2852_v20 = vrot.slane %v2844_v23, %v5981_v5  ;;  %v2859_v4 = vrot.slane %v2845_v24, %v5981_v5  ;;  %4992 = vtanh.f32 %v6861_v63  ;;  %v4991_v43 = vpop.eup %4990  ;;  %v6878_v23 = vld [vmem:[#allocation9 + $0x2c] ss:$16 sps:$4 sm:$0xff]   ;;  %v6886_v45 = vld [vmem:[#allocation9 + $0x28] ss:$16 sps:$4 sm:$0xff]   ;;  %v6889_v62 = vld [vmem:[#allocation9 + $0x44] ss:$16 sps:$4 sm:$0xff]  }
 0x5ed   :  { %v2860_v19 = vcombine.low %v2852_v20, %v2859_v4  ;;  %v6892_v20 = vld [vmem:[#allocation9 + $0x4c] ss:$16 sps:$4 sm:$0xff]   ;;  %v6895_v4 = vld [vmem:[#allocation9 + $0x40] ss:$16 sps:$4 sm:$0xff]  }
 0x5ef   :  { %v2862_v37 = vadd.f32 %v2860_v19, %v8268_v16  ;;  %v6898_v19 = vld [vmem:[#allocation9 + $0x48] ss:$16 sps:$4 sm:$0xff]   ;;  %v6907_v16 = vld [vmem:[#allocation9 + $0x60] ss:$16 sps:$4 sm:$0xff]  }
 0x5f0   :  { %8270 = vst [vmem:[#allocation79_spill] sm:$0xff] %v6907_v16 }
 0x5f1   :  { %v4647_v15 = vmul.f32 -1.442695, %v2862_v37  ;;  %v2870_v53 = vrot.slane %v2862_v37, 6  ;;  %v6910_v37 = vld [vmem:[#allocation9 + $0x68] ss:$16 sps:$4 sm:$0xff]  }
 0x5f2   :  { %8271 = vst [vmem:[#allocation80_spill] sm:$0xff] %v6910_v37 }
 0x5f3   :  { %4994 = vpow2.f32 %v4647_v15  ;;  %v6913_v15 = vld [vmem:[#allocation9 + $0x84] ss:$16 sps:$4 sm:$0xff]  }
 0x5f4   :  { %8272 = vst [vmem:[#allocation81_spill] sm:$0xff] %v6913_v15 }
 0x5f5   :  { %v4993_v13 = vpop.eup %4992 }
 0x5f6   :  { %v2756_v10 = vmul.f32 %v4993_v13, %v4991_v43  ;;  %v6916_v43 = vld [vmem:[#allocation9 + $0x8c] ss:$16 sps:$4 sm:$0xff]  }
 0x5f7   :  { %8273 = vst [vmem:[#allocation82_spill] sm:$0xff] %v6916_v43 }
 0x5f8   :  { %v2884_v48 = vpack.c.bf16 %v2756_v10, %v2756_v10 }
 0x5fa   :  { %2918 = vmatmul.mubr.bf16.vlgmr.msra.gmra.mrb[72].mxu0 %v2884_v48  ;;  %2959 = vmatmul.mubr.bf16.vlgmr.msra.gmra.mrb[72].mxu1 %v2884_v48 }
 0x5fb   :  { %2968 = vmatpush1.bf16.msra.mxu0 %v6869_v0  ;;  %3009 = vmatpush1.bf16.msra.mxu1 %v6872_v21 }
 0x5fc   :  { %2969 = vmatprep.subr.bf16.mxu0 %v6875_v22  ;;  %3010 = vmatprep.subr.bf16.mxu1 %v6878_v23 }
 0x5fd   :  { %v4995_v49 = vpop.eup %4994  ;;  %2999 = vmatprep.mubr.bf16.mxu0 %v8067_v47  ;;  %3040 = vmatprep.mubr.bf16.mxu1 %v8067_v47 }
 0x5fe   :  { %v2866_v24 = vadd.f32 1.0, %v4995_v49  ;;  %v6919_v49 = vld [vmem:[#allocation9 + $0x80] ss:$16 sps:$4 sm:$0xff]  }
 0x5ff   :  { %2970 = vmatpush1.bf16.msra.mxu0 %v6883_v61  ;;  %3011 = vmatpush1.bf16.msra.mxu1 %v6886_v45  ;;  %8274 = vst [vmem:[#allocation85_spill] sm:$0xff] %v6919_v49 }
 0x600   :  { %4996 = vrcp.f32 %v2866_v24  ;;  %2971 = vmatprep.subr.bf16.mxu0 %v6889_v62  ;;  %3012 = vmatprep.subr.bf16.mxu1 %v6892_v20  ;;  %v6922_v24 = vld [vmem:[#allocation9 + $0x88] ss:$16 sps:$4 sm:$0xff]  }
 0x601   :  { %4998 = vtanh.f32 %v2870_v53 }
 0x603   :  { %2972 = vmatpush1.bf16.msra.mxu0 %v6895_v4  ;;  %3013 = vmatpush1.bf16.msra.mxu1 %v6898_v19 }
 0x604   :  { %2973 = vmatprep.subr.bf16.mxu0 %v6901_v17  ;;  %3014 = vmatprep.subr.bf16.mxu1 %v6904_v29  ;;  %v6934_v29 = vld [vmem:[#allocation9 + $0xa0] ss:$16 sps:$4 sm:$0xff]  }
 0x607   :  { %2974 = vmatpush1.bf16.msra.mxu0 %v6907_v16  ;;  %3015 = vmatpush1.bf16.msra.mxu1 %v6910_v37  ;;  %v6925_v37 = vld [vmem:[#allocation9 + $0xa4] ss:$16 sps:$4 sm:$0xff]  }
 0x608   :  { %2975 = vmatprep.subr.bf16.mxu0 %v6913_v15  ;;  %3016 = vmatprep.subr.bf16.mxu1 %v6916_v43  ;;  %8275 = vst [vmem:[#allocation86_spill] sm:$0xff] %v6925_v37  ;;  %v6928_v15 = vld [vmem:[#allocation9 + $0xac] ss:$16 sps:$4 sm:$0xff]  }
 0x60a   :  { %v4997_v13 = vpop.eup %4996 }
 0x60b   :  { %v2874_v10 = vrot.slane %v4997_v13, 2  ;;  %v4999_v48 = vpop.eup %4998  ;;  %2976 = vmatpush1.bf16.msra.mxu0 %v6919_v49  ;;  %3017 = vmatpush1.bf16.msra.mxu1 %v6922_v24  ;;  %v6937_v49 = vld [vmem:[#allocation9 + $0xa8] ss:$16 sps:$4 sm:$0xff]  }
 0x60c   :  { %v2877_v53 = vmul.f32 %v4999_v48, %v4997_v13  ;;  %2977 = vmatprep.subr.bf16.mxu0 %v6925_v37  ;;  %3018 = vmatprep.subr.bf16.mxu1 %v6928_v15  ;;  %8276 = vst [vmem:[#allocation27_spill] sm:$0xff] %v6937_v49  ;;  %v6940_v48 = vld [vmem:[#allocation9 + $0xc4] ss:$16 sps:$4 sm:$0xff]   ;;  %v6943_v37 = vld [vmem:[#allocation9 + $0xcc] ss:$16 sps:$4 sm:$0xff]  }
 0x60d   :  { %v2876_v43 = vmul.f32 %v2874_v10, %v6701_v59  ;;  %8277 = vst [vmem:[#allocation28_spill] sm:$0xff] %v6940_v48  ;;  %8278 = vst [vmem:[#allocation29_spill] sm:$0xff] %v6943_v37  ;;  %v6947_v59 = vld [vmem:[#allocation9 + $0xc0] ss:$16 sps:$4 sm:$0xff]   ;;  %v6953_v10 = vld [vmem:[#allocation9 + $0xe4] ss:$16 sps:$4 sm:$0xff]  }
 0x60e   :  { %8279 = vst [vmem:[#allocation30_spill] sm:$0xff] %v6947_v59  ;;  %8281 = vst [vmem:[#allocation32_spill] sm:$0xff] %v6953_v10 }
 0x60f   :  { %v6932_v16 = vadd.f32 %v2877_v53, %v2876_v43  ;;  %2978 = vmatpush1.bf16.msra.mxu0 %v6934_v29  ;;  %3019 = vmatpush1.bf16.msra.mxu1 %v6937_v49  ;;  %v6950_v43 = vld [vmem:[#allocation9 + $0xc8] ss:$16 sps:$4 sm:$0xff]   ;;  %v6956_v53 = vld [vmem:[#allocation9 + $0xec] ss:$16 sps:$4 sm:$0xff]  }
 0x610   :  { %2979 = vmatprep.subr.bf16.mxu0 %v6940_v48  ;;  %3020 = vmatprep.subr.bf16.mxu1 %v6943_v37  ;;  %8280 = vst [vmem:[#allocation31_spill] sm:$0xff] %v6950_v43  ;;  %v6959_v48 = vld [vmem:[#allocation9 + $0xe0] ss:$16 sps:$4 sm:$0xff]   ;;  %v6962_v37 = vld [vmem:[#allocation9 + $0xe8] ss:$16 sps:$4 sm:$0xff]  }
 0x611   :  { %5000 = vtanh.f32 %v6932_v16 }
 0x613   :  { %2980 = vmatpush1.bf16.msra.mxu0 %v6947_v59  ;;  %3021 = vmatpush1.bf16.msra.mxu1 %v6950_v43  ;;  %v2880_v43 = vrot.slane %v4997_v13, 4  ;;  %v8312_v13 = vld [vmem:[#allocation74_spill] sm:$0xff] }
 0x614   :  { %2981 = vmatprep.subr.bf16.mxu0 %v6953_v10  ;;  %3022 = vmatprep.subr.bf16.mxu1 %v6956_v53 }
 0x617   :  { %2982 = vmatpush1.bf16.msra.mxu0 %v6959_v48  ;;  %3023 = vmatpush1.bf16.msra.mxu1 %v6962_v37 }
 0x618   :  { %3078 = vmatprep.subr.bf16.mxu0 %v8212_v58  ;;  %3119 = vmatprep.subr.bf16.mxu1 %v6532_v41  ;;  %v8283_v41 = vld [vmem:[#allocation52_spill] sm:$0xff] }
 0x619   :  { %v8290_v58 = vld [vmem:[#allocation60_spill] sm:$0xff] }
 0x61b   :  { %v5001_v59 = vpop.eup %5000 }
 0x61c   :  { %v2882_v49 = vmul.f32 %v5001_v59, %v2880_v43 }
 0x61e   :  { %v2883_v10 = vpack.c.bf16 %v2882_v49, %v2882_v49  ;;  %v8313_v49 = vld [vmem:[#allocation75_spill] sm:$0xff] }
 0x620   :  { %3000 = vmatmul.mubr.bf16.vlgmr.msra.gmra.mrb[76].mxu0 %v2883_v10  ;;  %3041 = vmatmul.mubr.bf16.vlgmr.msra.gmra.mrb[76].mxu1 %v2883_v10 }
 0x621   :  { %3079 = vmatpush1.bf16.msra.mxu0 %v6539_v60  ;;  %3120 = vmatpush1.bf16.msra.mxu1 %v8213_v25  ;;  %v8282_v60 = vld [vmem:[#allocation51_spill] sm:$0xff]  ;;  %v8291_v25 = vld [vmem:[#allocation61_spill] sm:$0xff] }
 0x622   :  { %3080 = vmatprep.subr.bf16.mxu0 %v8214_v46  ;;  %3121 = vmatprep.subr.bf16.mxu1 %v8215_v32  ;;  %v8292_v46 = vld [vmem:[#allocation62_spill] sm:$0xff]  ;;  %v8293_v32 = vld [vmem:[#allocation63_spill] sm:$0xff] }
 0x623   :  { %3110 = vmatprep.mubr.bf16.mxu0 %v8067_v47  ;;  %3151 = vmatprep.mubr.bf16.mxu1 %v8067_v47 }
 0x625   :  { %3081 = vmatpush1.bf16.msra.mxu0 %v8216_v26  ;;  %3122 = vmatpush1.bf16.msra.mxu1 %v8217_v27  ;;  %v8294_v26 = vld [vmem:[#allocation64_spill] sm:$0xff]  ;;  %v8295_v27 = vld [vmem:[#allocation73_spill] sm:$0xff] }
 0x626   :  { %3082 = vmatprep.subr.bf16.mxu0 %v8218_v28  ;;  %3123 = vmatprep.subr.bf16.mxu1 %v8219_v30  ;;  %v8296_v28 = vld [vmem:[#allocation77_spill] sm:$0xff]  ;;  %v8297_v30 = vld [vmem:[#allocation78_spill] sm:$0xff] }
 0x629   :  { %3083 = vmatpush1.bf16.msra.mxu0 %v8220_v31  ;;  %3124 = vmatpush1.bf16.msra.mxu1 %v8221_v34  ;;  %v8298_v31 = vld [vmem:[#allocation83_spill] sm:$0xff]  ;;  %v8299_v34 = vld [vmem:[#allocation84_spill] sm:$0xff] }
 0x62a   :  { %3084 = vmatprep.subr.bf16.mxu0 %v8222_v35  ;;  %3125 = vmatprep.subr.bf16.mxu1 %v8223_v38  ;;  %v8300_v35 = vld [vmem:[#allocation53_spill] sm:$0xff]  ;;  %v8301_v38 = vld [vmem:[#allocation54_spill] sm:$0xff] }
 0x62d   :  { %3085 = vmatpush1.bf16.msra.mxu0 %v8224_v39  ;;  %3126 = vmatpush1.bf16.msra.mxu1 %v8225_v36  ;;  %v8302_v39 = vld [vmem:[#allocation55_spill] sm:$0xff]  ;;  %v8303_v36 = vld [vmem:[#allocation56_spill] sm:$0xff] }
 0x62e   :  { %3086 = vmatprep.subr.bf16.mxu0 %v8226_v1  ;;  %3127 = vmatprep.subr.bf16.mxu1 %v8227_v2  ;;  %v8304_v1 = vld [vmem:[#allocation23_spill] sm:$0xff]  ;;  %v8305_v2 = vld [vmem:[#allocation24_spill] sm:$0xff] }
 0x631   :  { %3087 = vmatpush1.bf16.msra.mxu0 %v8228_v6  ;;  %3128 = vmatpush1.bf16.msra.mxu1 %v8229_v7  ;;  %v8306_v6 = vld [vmem:[#allocation65_spill] sm:$0xff]  ;;  %v8307_v7 = vld [vmem:[#allocation66_spill] sm:$0xff] }
 0x632   :  { %3088 = vmatprep.subr.bf16.mxu0 %v8230_v54  ;;  %3129 = vmatprep.subr.bf16.mxu1 %v8231_v56  ;;  %v8308_v54 = vld [vmem:[#allocation67_spill] sm:$0xff]  ;;  %v8309_v56 = vld [vmem:[#allocation68_spill] sm:$0xff] }
 0x635   :  { %3089 = vmatpush1.bf16.msra.mxu0 %v8232_v52  ;;  %3130 = vmatpush1.bf16.msra.mxu1 %v8233_v3  ;;  %v8310_v52 = vld [vmem:[#allocation69_spill] sm:$0xff]  ;;  %v8311_v3 = vld [vmem:[#allocation70_spill] sm:$0xff] }
 0x636   :  { %3090 = vmatprep.subr.bf16.mxu0 %v6607_v51  ;;  %3131 = vmatprep.subr.bf16.mxu1 %v6610_v50  ;;  %v8284_v51 = vld [vmem:[#allocation20_spill] sm:$0xff]  ;;  %v8288_v50 = vld [vmem:[#allocation58_spill] sm:$0xff] }
 0x639   :  { %3091 = vmatpush1.bf16.msra.mxu0 %v6613_v55  ;;  %3132 = vmatpush1.bf16.msra.mxu1 %v6616_v14  ;;  %v8285_v14 = vld [vmem:[#allocation21_spill] sm:$0xff]  ;;  %v8289_v55 = vld [vmem:[#allocation59_spill] sm:$0xff] }
 0x63a   :  { %3092 = vmatprep.subr.bf16.mxu0 %v6619_v9  ;;  %3133 = vmatprep.subr.bf16.mxu1 %v6622_v44  ;;  %v8286_v44 = vld [vmem:[#allocation22_spill] sm:$0xff]  ;;  %v8287_v9 = vld [vmem:[#allocation57_spill] sm:$0xff] }
 0x63d   :  { %3093 = vmatpush1.bf16.msra.mxu0 %v6746_v40  ;;  %3134 = vmatpush1.bf16.msra.mxu1 %v6749_v12 }
 0x63e   :  { %3205 = vmatprep.subr.bf16.mxu0 %v6752_v11  ;;  %3246 = vmatprep.subr.bf16.mxu1 %v6755_v42 }
 0x640   :  { %3111 = vmatmul.mubr.bf16.vlgmr.msra.gmra.mrb[80].mxu0 %v2883_v10  ;;  %3152 = vmatmul.mubr.bf16.vlgmr.msra.gmra.mrb[80].mxu1 %v2883_v10 }
 0x641   :  { %3206 = vmatpush1.bf16.msra.mxu0 %v8282_v60  ;;  %3247 = vmatpush1.bf16.msra.mxu1 %v8283_v41 }
 0x642   :  { %3207 = vmatprep.subr.bf16.mxu0 %v8284_v51  ;;  %3248 = vmatprep.subr.bf16.mxu1 %v8285_v14 }
 0x643   :  { %3237 = vmatprep.mubr.bf16.mxu0 %v8067_v47  ;;  %3278 = vmatprep.mubr.bf16.mxu1 %v8067_v47 }
 0x645   :  { %3208 = vmatpush1.bf16.msra.mxu0 %v8286_v44  ;;  %3249 = vmatpush1.bf16.msra.mxu1 %v8287_v9 }
 0x646   :  { %3209 = vmatprep.subr.bf16.mxu0 %v8288_v50  ;;  %3250 = vmatprep.subr.bf16.mxu1 %v8289_v55 }
 0x649   :  { %3210 = vmatpush1.bf16.msra.mxu0 %v8290_v58  ;;  %3251 = vmatpush1.bf16.msra.mxu1 %v8291_v25 }
 0x64a   :  { %3211 = vmatprep.subr.bf16.mxu0 %v8292_v46  ;;  %3252 = vmatprep.subr.bf16.mxu1 %v8293_v32 }
 0x64d   :  { %3212 = vmatpush1.bf16.msra.mxu0 %v8294_v26  ;;  %3253 = vmatpush1.bf16.msra.mxu1 %v8295_v27 }
 0x64e   :  { %3213 = vmatprep.subr.bf16.mxu0 %v8296_v28  ;;  %3254 = vmatprep.subr.bf16.mxu1 %v8297_v30 }
 0x651   :  { %3214 = vmatpush1.bf16.msra.mxu0 %v8298_v31  ;;  %3255 = vmatpush1.bf16.msra.mxu1 %v8299_v34 }
 0x652   :  { %3215 = vmatprep.subr.bf16.mxu0 %v8300_v35  ;;  %3256 = vmatprep.subr.bf16.mxu1 %v8301_v38 }
 0x655   :  { %3216 = vmatpush1.bf16.msra.mxu0 %v8302_v39  ;;  %3257 = vmatpush1.bf16.msra.mxu1 %v8303_v36 }
 0x656   :  { %3217 = vmatprep.subr.bf16.mxu0 %v8304_v1  ;;  %3258 = vmatprep.subr.bf16.mxu1 %v8305_v2 }
 0x659   :  { %3218 = vmatpush1.bf16.msra.mxu0 %v8306_v6  ;;  %3259 = vmatpush1.bf16.msra.mxu1 %v8307_v7 }
 0x65a   :  { %3219 = vmatprep.subr.bf16.mxu0 %v8308_v54  ;;  %3260 = vmatprep.subr.bf16.mxu1 %v8309_v56 }
 0x65d   :  { %3220 = vmatpush1.bf16.msra.mxu0 %v8310_v52  ;;  %3261 = vmatpush1.bf16.msra.mxu1 %v8311_v3 }
 0x65e   :  { %3287 = vmatprep.subr.bf16.mxu0 %v8312_v13  ;;  %3328 = vmatprep.subr.bf16.mxu1 %v8313_v49 }
 0x6cd   :  { %v2919_v59 = vpop.f32.mrb[72].mxu0  ;;  %v2960_v43 = vpop.f32.mrb[72].mxu1 }
 0x6ce   :  { %v2921_v10 = vpop.f32.mrb[73].mxu0  ;;  %v2962_v2 = vpop.f32.mrb[73].mxu1 }
 0x6cf   :  { %v2923_v1 = vpop.f32.mrb[74].mxu0  ;;  %v2964_v6 = vpop.f32.mrb[74].mxu1 }
 0x6d0   :  { %v2924_v36 = vpop.f32.mrb[75].mxu0  ;;  %v2965_v7 = vpop.f32.mrb[75].mxu1 }
 0x6f3   :  { %v3001_v39 = vpop.f32.mrb[76].mxu0  ;;  %v3042_v54 = vpop.f32.mrb[76].mxu1 }
 0x6f4   :  { %v3002_v38 = vadd.f32 %v3001_v39, %v2919_v59  ;;  %v3043_v56 = vadd.f32 %v3042_v54, %v2960_v43  ;;  %v3003_v35 = vpop.f32.mrb[77].mxu0  ;;  %v3044_v52 = vpop.f32.mrb[77].mxu1 }
 0x6f5   :  { %v3004_v34 = vadd.f32 %v3003_v35, %v2921_v10  ;;  %v3045_v3 = vadd.f32 %v3044_v52, %v2962_v2  ;;  %v3005_v31 = vpop.f32.mrb[78].mxu0  ;;  %v3046_v13 = vpop.f32.mrb[78].mxu1 }
 0x6f6   :  { %v3049_v49 = vadd.f32 %v3002_v38, %v6467_v57  ;;  %v3006_v30 = vpop.f32.mrb[79].mxu0  ;;  %v3047_v28 = vpop.f32.mrb[79].mxu1  ;;  %v3051_v36 = vadd.f32 %v3043_v56, %v6477_v18 }
 0x6f7   :  { %v3050_v27 = vadd.f32 %v3004_v34, %v6471_v8  ;;  %v3052_v39 = vadd.f32 %v3045_v3, %v6481_v33 }
 0x6f8   :  { %v4648_v1 = vmul.f32 -1.442695, %v3049_v49  ;;  %v4650_v7 = vmul.f32 -1.442695, %v3051_v36 }
 0x6f9   :  { %v4649_v6 = vmul.f32 -1.442695, %v3050_v27 }
 0x6fa   :  { %5002 = vpow2.f32 %v4648_v1 }
 0x6fb   :  { %5004 = vpow2.f32 %v4649_v6 }
 0x6fc   :  { %5006 = vtanh.f32 %v3052_v39 }
 0x6fd   :  { %5008 = vpow2.f32 %v4650_v7 }
 0x704   :  { %v5003_v54 = vpop.eup %5002 }
 0x705   :  { %v3062_v35 = vadd.f32 1.0, %v5003_v54  ;;  %v5005_v31 = vpop.eup %5004 }
 0x706   :  { %v3063_v38 = vadd.f32 1.0, %v5005_v31  ;;  %v5007_v28 = vpop.eup %5006 }
 0x707   :  { %5010 = vrcp.f32 %v3062_v35  ;;  %v5009_v30 = vpop.eup %5008 }
 0x708   :  { %5012 = vrcp.f32 %v3063_v38  ;;  %v3064_v52 = vadd.f32 1.0, %v5009_v30  ;;  %v8314_v38 = vld [vmem:[#allocation39_spill] sm:$0xff] }
 0x70a   :  { %5014 = vrcp.f32 %v3064_v52 }
 0x711   :  { %v5011_v34 = vpop.eup %5010 }
 0x712   :  { %v3073_v2 = vmul.f32 %v5011_v34, %v5007_v28  ;;  %v5013_v27 = vpop.eup %5012 }
 0x713   :  { %v3112_v13 = vpop.f32.mrb[80].mxu0  ;;  %v3153_v49 = vpop.f32.mrb[80].mxu1  ;;  %v3072_v56 = vmul.f32 %v5013_v27, %v6861_v63  ;;  %v8315_v63 = vld [vmem:[#allocation40_spill] sm:$0xff] }
 0x714   :  { %v3114_v3 = vpop.f32.mrb[81].mxu0  ;;  %v3155_v59 = vpop.f32.mrb[81].mxu1  ;;  %v8316_v28 = vcombine.low %v8314_v38, %v8315_v63  ;;  %v8323_v38 = vld [vmem:[#allocation86_spill] sm:$0xff] }
 0x715   :  { %v3164_v43 = vcombine.low %v3112_v13, %v3114_v3  ;;  %v3165_v10 = vcombine.low %v3153_v49, %v3155_v59  ;;  %v3116_v1 = vpop.f32.mrb[82].mxu0  ;;  %v3157_v6 = vpop.f32.mrb[82].mxu1  ;;  %v7040_v36 = vadd.f32 %v3073_v2, %v3072_v56  ;;  %v8317_v59 = vld [vmem:[#allocation76_spill] sm:$0xff] }
 0x716   :  { %v3117_v39 = vpop.f32.mrb[83].mxu0  ;;  %v3158_v7 = vpop.f32.mrb[83].mxu1  ;;  %v8320_v1 = vld [vmem:[#allocation81_spill] sm:$0xff]  ;;  %v8321_v6 = vld [vmem:[#allocation82_spill] sm:$0xff] }
 0x717   :  { %v3172_v54 = vrot.slane %v3164_v43, %v5981_v5  ;;  %v3179_v35 = vrot.slane %v3165_v10, %v5981_v5  ;;  %5016 = vtanh.f32 %v7040_v36  ;;  %v5015_v27 = vpop.eup %5014  ;;  %v8318_v43 = vld [vmem:[#allocation79_spill] sm:$0xff]  ;;  %v8319_v10 = vld [vmem:[#allocation80_spill] sm:$0xff] }
 0x719   :  { %v3180_v31 = vcombine.low %v3172_v54, %v3179_v35  ;;  %v8322_v35 = vld [vmem:[#allocation85_spill] sm:$0xff] }
 0x71b   :  { %v3182_v30 = vadd.f32 %v3180_v31, %v8316_v28 }
 0x71d   :  { %v4651_v34 = vmul.f32 -1.442695, %v3182_v30  ;;  %v3190_v3 = vrot.slane %v3182_v30, 6  ;;  %v8324_v30 = vld [vmem:[#allocation27_spill] sm:$0xff] }
 0x71f   :  { %5018 = vpow2.f32 %v4651_v34  ;;  %v8325_v34 = vld [vmem:[#allocation28_spill] sm:$0xff] }
 0x721   :  { %v5017_v13 = vpop.eup %5016 }
 0x722   :  { %v3076_v2 = vmul.f32 %v5017_v13, %v5015_v27  ;;  %v8326_v27 = vld [vmem:[#allocation29_spill] sm:$0xff]  ;;  %v8327_v13 = vld [vmem:[#allocation30_spill] sm:$0xff] }
 0x724   :  { %v3204_v49 = vpack.c.bf16 %v3076_v2, %v3076_v2  ;;  %v8328_v2 = vld [vmem:[#allocation31_spill] sm:$0xff] }
 0x726   :  { %3238 = vmatmul.mubr.bf16.vlgmr.msra.gmra.mrb[84].mxu0 %v3204_v49  ;;  %3279 = vmatmul.mubr.bf16.vlgmr.msra.gmra.mrb[84].mxu1 %v3204_v49  ;;  %v8329_v49 = vld [vmem:[#allocation32_spill] sm:$0xff] }
 0x727   :  { %3288 = vmatpush1.bf16.msra.mxu0 %v6869_v0  ;;  %3329 = vmatpush1.bf16.msra.mxu1 %v6872_v21 }
 0x728   :  { %3289 = vmatprep.subr.bf16.mxu0 %v6875_v22  ;;  %3330 = vmatprep.subr.bf16.mxu1 %v6878_v23 }
 0x729   :  { %v5019_v52 = vpop.eup %5018  ;;  %3319 = vmatprep.mubr.bf16.mxu0 %v8067_v47  ;;  %3360 = vmatprep.mubr.bf16.mxu1 %v8067_v47 }
 0x72a   :  { %v3186_v56 = vadd.f32 1.0, %v5019_v52  ;;  %v7087_v52 = vld [vmem:[#allocation8 + $0xc] ss:$16 sps:$4 sm:$0xff]  }
 0x72b   :  { %3290 = vmatpush1.bf16.msra.mxu0 %v6883_v61  ;;  %3331 = vmatpush1.bf16.msra.mxu1 %v6886_v45 }
 0x72c   :  { %5020 = vrcp.f32 %v3186_v56  ;;  %3291 = vmatprep.subr.bf16.mxu0 %v6889_v62  ;;  %3332 = vmatprep.subr.bf16.mxu1 %v6892_v20 }
 0x72d   :  { %5022 = vtanh.f32 %v3190_v3 }
 0x72f   :  { %3292 = vmatpush1.bf16.msra.mxu0 %v6895_v4  ;;  %3333 = vmatpush1.bf16.msra.mxu1 %v6898_v19 }
 0x730   :  { %3293 = vmatprep.subr.bf16.mxu0 %v6901_v17  ;;  %3334 = vmatprep.subr.bf16.mxu1 %v8317_v59 }
 0x733   :  { %3294 = vmatpush1.bf16.msra.mxu0 %v8318_v43  ;;  %3335 = vmatpush1.bf16.msra.mxu1 %v8319_v10 }
 0x734   :  { %3295 = vmatprep.subr.bf16.mxu0 %v8320_v1  ;;  %3336 = vmatprep.subr.bf16.mxu1 %v8321_v6 }
 0x736   :  { %v5021_v39 = vpop.eup %5020 }
 0x737   :  { %v3194_v7 = vrot.slane %v5021_v39, 2  ;;  %v5023_v54 = vpop.eup %5022  ;;  %3296 = vmatpush1.bf16.msra.mxu0 %v8322_v35  ;;  %3337 = vmatpush1.bf16.msra.mxu1 %v6922_v24  ;;  %v3200_v56 = vrot.slane %v5021_v39, 4 }
 0x738   :  { %v3197_v31 = vmul.f32 %v5023_v54, %v5021_v39  ;;  %3297 = vmatprep.subr.bf16.mxu0 %v8323_v38  ;;  %3338 = vmatprep.subr.bf16.mxu1 %v6928_v15  ;;  %v7103_v39 = vld [vmem:[#allocation8 + $0x2c] ss:$16 sps:$4 sm:$0xff]  }
 0x739   :  { %v3196_v63 = vmul.f32 %v3194_v7, %v6932_v16  ;;  %v7084_v16 = vld [vmem:[#allocation8 + $0x4] ss:$16 sps:$4 sm:$0xff]   ;;  %8333 = vst [vmem:[#allocation36_spill] sm:$0xff] %v7103_v39 }
 0x73a   :  { %8330 = vst [vmem:[#allocation33_spill] sm:$0xff] %v7084_v16 }
 0x73b   :  { %v7071_v28 = vadd.f32 %v3197_v31, %v3196_v63  ;;  %3298 = vmatpush1.bf16.msra.mxu0 %v6934_v29  ;;  %3339 = vmatpush1.bf16.msra.mxu1 %v8324_v30  ;;  %v7094_v31 = vld [vmem:[#allocation8] ss:$16 sps:$4 sm:$0xff]   ;;  %v7097_v63 = vld [vmem:[#allocation8 + $0x8] ss:$16 sps:$4 sm:$0xff]  }
 0x73c   :  { %3299 = vmatprep.subr.bf16.mxu0 %v8325_v34  ;;  %3340 = vmatprep.subr.bf16.mxu1 %v8326_v27  ;;  %8331 = vst [vmem:[#allocation34_spill] sm:$0xff] %v7097_v63 }
 0x73d   :  { %5024 = vtanh.f32 %v7071_v28 }
 0x73f   :  { %3300 = vmatpush1.bf16.msra.mxu0 %v8327_v13  ;;  %3341 = vmatpush1.bf16.msra.mxu1 %v8328_v2 }
 0x740   :  { %3301 = vmatprep.subr.bf16.mxu0 %v8329_v49  ;;  %3342 = vmatprep.subr.bf16.mxu1 %v6956_v53 }
 0x743   :  { %3302 = vmatpush1.bf16.msra.mxu0 %v6959_v48  ;;  %3343 = vmatpush1.bf16.msra.mxu1 %v6962_v37 }
 0x744   :  { %3398 = vmatprep.subr.bf16.mxu0 %v7084_v16  ;;  %3439 = vmatprep.subr.bf16.mxu1 %v7087_v52  ;;  %v7100_v16 = vld [vmem:[#allocation8 + $0x24] ss:$16 sps:$4 sm:$0xff]  }
 0x745   :  { %8332 = vst [vmem:[#allocation35_spill] sm:$0xff] %v7100_v16 }
 0x747   :  { %v5025_v3 = vpop.eup %5024 }
 0x748   :  { %v3202_v7 = vmul.f32 %v5025_v3, %v3200_v56  ;;  %v7108_v56 = vld [vmem:[#allocation8 + $0x20] ss:$16 sps:$4 sm:$0xff]   ;;  %v7111_v3 = vld [vmem:[#allocation8 + $0x28] ss:$16 sps:$4 sm:$0xff]  }
 0x749   :  { %8334 = vst [vmem:[#allocation37_spill] sm:$0xff] %v7108_v56  ;;  %8335 = vst [vmem:[#allocation38_spill] sm:$0xff] %v7111_v3 }
 0x74a   :  { %v7090_v54 = vpack.c.bf16 %v3202_v7, %v3202_v7  ;;  %v7114_v7 = vld [vmem:[#allocation8 + $0x44] ss:$16 sps:$4 sm:$0xff]  }
 0x74b   :  { %8336 = vst [vmem:[#allocation41_spill] sm:$0xff] %v7114_v7 }
 0x74c   :  { %3320 = vmatmul.mubr.bf16.vlgmr.msra.gmra.mrb[88].mxu0 %v7090_v54  ;;  %3361 = vmatmul.mubr.bf16.vlgmr.msra.gmra.mrb[88].mxu1 %v7090_v54 }
 0x74d   :  { %3399 = vmatpush1.bf16.msra.mxu0 %v7094_v31  ;;  %3440 = vmatpush1.bf16.msra.mxu1 %v7097_v63  ;;  %v7123_v63 = vld [vmem:[#allocation8 + $0x48] ss:$16 sps:$4 sm:$0xff]  }
 0x74e   :  { %3400 = vmatprep.subr.bf16.mxu0 %v7100_v16  ;;  %3441 = vmatprep.subr.bf16.mxu1 %v7103_v39  ;;  %v7117_v16 = vld [vmem:[#allocation8 + $0x4c] ss:$16 sps:$4 sm:$0xff]   ;;  %v7120_v39 = vld [vmem:[#allocation8 + $0x40] ss:$16 sps:$4 sm:$0xff]   ;;  %8339 = vst [vmem:[#allocation44_spill] sm:$0xff] %v7123_v63 }
 0x74f   :  { %3430 = vmatprep.mubr.bf16.mxu0 %v8067_v47  ;;  %3471 = vmatprep.mubr.bf16.mxu1 %v8067_v47  ;;  %8337 = vst [vmem:[#allocation42_spill] sm:$0xff] %v7117_v16  ;;  %8338 = vst [vmem:[#allocation43_spill] sm:$0xff] %v7120_v39 }
 0x751   :  { %3401 = vmatpush1.bf16.msra.mxu0 %v7108_v56  ;;  %3442 = vmatpush1.bf16.msra.mxu1 %v7111_v3  ;;  %v7126_v56 = vld [vmem:[#allocation8 + $0x64] ss:$16 sps:$4 sm:$0xff]   ;;  %v7129_v3 = vld [vmem:[#allocation8 + $0x6c] ss:$16 sps:$4 sm:$0xff]  }
 0x752   :  { %3402 = vmatprep.subr.bf16.mxu0 %v7114_v7  ;;  %3443 = vmatprep.subr.bf16.mxu1 %v7117_v16  ;;  %8340 = vst [vmem:[#allocation45_spill] sm:$0xff] %v7126_v56  ;;  %8341 = vst [vmem:[#allocation46_spill] sm:$0xff] %v7129_v3  ;;  %v7132_v7 = vld [vmem:[#allocation8 + $0x60] ss:$16 sps:$4 sm:$0xff]   ;;  %v7135_v16 = vld [vmem:[#allocation8 + $0x68] ss:$16 sps:$4 sm:$0xff]  }
 0x753   :  { %8342 = vst [vmem:[#allocation47_spill] sm:$0xff] %v7132_v7  ;;  %8343 = vst [vmem:[#allocation48_spill] sm:$0xff] %v7135_v16 }
 0x755   :  { %3403 = vmatpush1.bf16.msra.mxu0 %v7120_v39  ;;  %3444 = vmatpush1.bf16.msra.mxu1 %v7123_v63  ;;  %v7138_v39 = vld [vmem:[#allocation8 + $0x84] ss:$16 sps:$4 sm:$0xff]   ;;  %v7141_v63 = vld [vmem:[#allocation8 + $0x8c] ss:$16 sps:$4 sm:$0xff]  }
 0x756   :  { %3404 = vmatprep.subr.bf16.mxu0 %v7126_v56  ;;  %3445 = vmatprep.subr.bf16.mxu1 %v7129_v3  ;;  %8344 = vst [vmem:[#allocation49_spill] sm:$0xff] %v7138_v39  ;;  %8345 = vst [vmem:[#allocation50_spill] sm:$0xff] %v7141_v63  ;;  %v7144_v56 = vld [vmem:[#allocation8 + $0x80] ss:$16 sps:$4 sm:$0xff]   ;;  %v7147_v3 = vld [vmem:[#allocation8 + $0x88] ss:$16 sps:$4 sm:$0xff]  }
 0x757   :  { %8346 = vst [vmem:[#allocation25_spill] sm:$0xff] %v7144_v56  ;;  %8347 = vst [vmem:[#allocation26_spill] sm:$0xff] %v7147_v3 }
 0x759   :  { %3405 = vmatpush1.bf16.msra.mxu0 %v7132_v7  ;;  %3446 = vmatpush1.bf16.msra.mxu1 %v7135_v16  ;;  %v7150_v7 = vld [vmem:[#allocation8 + $0xa4] ss:$16 sps:$4 sm:$0xff]   ;;  %v7153_v16 = vld [vmem:[#allocation8 + $0xac] ss:$16 sps:$4 sm:$0xff]  }
 0x75a   :  { %3406 = vmatprep.subr.bf16.mxu0 %v7138_v39  ;;  %3447 = vmatprep.subr.bf16.mxu1 %v7141_v63  ;;  %8348 = vst [vmem:[#allocation51_spill] sm:$0xff] %v7150_v7  ;;  %8349 = vst [vmem:[#allocation52_spill] sm:$0xff] %v7153_v16  ;;  %v7156_v39 = vld [vmem:[#allocation8 + $0xa0] ss:$16 sps:$4 sm:$0xff]   ;;  %v7159_v63 = vld [vmem:[#allocation8 + $0xa8] ss:$16 sps:$4 sm:$0xff]  }
 0x75b   :  { %8350 = vst [vmem:[#allocation20_spill] sm:$0xff] %v7156_v39  ;;  %8351 = vst [vmem:[#allocation21_spill] sm:$0xff] %v7159_v63 }
 0x75d   :  { %3407 = vmatpush1.bf16.msra.mxu0 %v7144_v56  ;;  %3448 = vmatpush1.bf16.msra.mxu1 %v7147_v3  ;;  %v7162_v56 = vld [vmem:[#allocation8 + $0xc4] ss:$16 sps:$4 sm:$0xff]   ;;  %v7165_v3 = vld [vmem:[#allocation8 + $0xcc] ss:$16 sps:$4 sm:$0xff]  }
 0x75e   :  { %3408 = vmatprep.subr.bf16.mxu0 %v7150_v7  ;;  %3449 = vmatprep.subr.bf16.mxu1 %v7153_v16  ;;  %v7168_v7 = vld [vmem:[#allocation8 + $0xc0] ss:$16 sps:$4 sm:$0xff]   ;;  %v7171_v16 = vld [vmem:[#allocation8 + $0xc8] ss:$16 sps:$4 sm:$0xff]  }
 0x75f   :  { %8352 = vst [vmem:[#allocation22_spill] sm:$0xff] %v7168_v7  ;;  %8353 = vst [vmem:[#allocation57_spill] sm:$0xff] %v7171_v16 }
 0x761   :  { %3409 = vmatpush1.bf16.msra.mxu0 %v7156_v39  ;;  %3450 = vmatpush1.bf16.msra.mxu1 %v7159_v63  ;;  %v7174_v39 = vld [vmem:[#allocation8 + $0xe4] ss:$16 sps:$4 sm:$0xff]   ;;  %v7177_v63 = vld [vmem:[#allocation8 + $0xec] ss:$16 sps:$4 sm:$0xff]  }
 0x762   :  { %3410 = vmatprep.subr.bf16.mxu0 %v7162_v56  ;;  %3451 = vmatprep.subr.bf16.mxu1 %v7165_v3  ;;  %8354 = vst [vmem:[#allocation58_spill] sm:$0xff] %v7174_v39  ;;  %8355 = vst [vmem:[#allocation59_spill] sm:$0xff] %v7177_v63 }
 0x765   :  { %3411 = vmatpush1.bf16.msra.mxu0 %v7168_v7  ;;  %3452 = vmatpush1.bf16.msra.mxu1 %v7171_v16 }
 0x766   :  { %3412 = vmatprep.subr.bf16.mxu0 %v7174_v39  ;;  %3453 = vmatprep.subr.bf16.mxu1 %v7177_v63 }
 0x769   :  { %3413 = vmatpush1.bf16.msra.mxu0 %v6746_v40  ;;  %3454 = vmatpush1.bf16.msra.mxu1 %v6749_v12  ;;  %v8356_v40 = vld [vmem:[#allocation73_spill] sm:$0xff] }
 0x76a   :  { %3525 = vmatprep.subr.bf16.mxu0 %v6752_v11  ;;  %3566 = vmatprep.subr.bf16.mxu1 %v6755_v42  ;;  %v8357_v12 = vld [vmem:[#allocation77_spill] sm:$0xff]  ;;  %v8358_v11 = vld [vmem:[#allocation78_spill] sm:$0xff]  ;;  %v8359_v42 = vld [vmem:[#allocation83_spill] sm:$0xff] }
 0x76c   :  { %3431 = vmatmul.mubr.bf16.vlgmr.msra.gmra.mrb[92].mxu0 %v7090_v54  ;;  %3472 = vmatmul.mubr.bf16.vlgmr.msra.gmra.mrb[92].mxu1 %v7090_v54  ;;  %v8373_v54 = vld [vmem:[#allocation74_spill] sm:$0xff] }
 0x76d   :  { %3526 = vmatpush1.bf16.msra.mxu0 %v8282_v60  ;;  %3567 = vmatpush1.bf16.msra.mxu1 %v8283_v41  ;;  %v8360_v60 = vld [vmem:[#allocation84_spill] sm:$0xff]  ;;  %v8361_v41 = vld [vmem:[#allocation53_spill] sm:$0xff] }
 0x76e   :  { %3527 = vmatprep.subr.bf16.mxu0 %v8284_v51  ;;  %3568 = vmatprep.subr.bf16.mxu1 %v8285_v14  ;;  %v8362_v51 = vld [vmem:[#allocation54_spill] sm:$0xff]  ;;  %v8363_v14 = vld [vmem:[#allocation55_spill] sm:$0xff] }
 0x76f   :  { %3557 = vmatprep.mubr.bf16.mxu0 %v8067_v47  ;;  %3598 = vmatprep.mubr.bf16.mxu1 %v8067_v47 }
 0x771   :  { %3528 = vmatpush1.bf16.msra.mxu0 %v8286_v44  ;;  %3569 = vmatpush1.bf16.msra.mxu1 %v8287_v9  ;;  %v8364_v44 = vld [vmem:[#allocation56_spill] sm:$0xff]  ;;  %v8365_v9 = vld [vmem:[#allocation23_spill] sm:$0xff] }
 0x772   :  { %3529 = vmatprep.subr.bf16.mxu0 %v8288_v50  ;;  %3570 = vmatprep.subr.bf16.mxu1 %v8289_v55  ;;  %v8366_v50 = vld [vmem:[#allocation24_spill] sm:$0xff]  ;;  %v8367_v55 = vld [vmem:[#allocation65_spill] sm:$0xff] }
 0x775   :  { %3530 = vmatpush1.bf16.msra.mxu0 %v8290_v58  ;;  %3571 = vmatpush1.bf16.msra.mxu1 %v8291_v25  ;;  %v8368_v58 = vld [vmem:[#allocation66_spill] sm:$0xff]  ;;  %v8369_v25 = vld [vmem:[#allocation67_spill] sm:$0xff] }
 0x776   :  { %3531 = vmatprep.subr.bf16.mxu0 %v8292_v46  ;;  %3572 = vmatprep.subr.bf16.mxu1 %v8293_v32  ;;  %v8370_v46 = vld [vmem:[#allocation68_spill] sm:$0xff]  ;;  %v8371_v32 = vld [vmem:[#allocation69_spill] sm:$0xff] }
 0x779   :  { %3532 = vmatpush1.bf16.msra.mxu0 %v8294_v26  ;;  %3573 = vmatpush1.bf16.msra.mxu1 %v8356_v40  ;;  %v8372_v26 = vld [vmem:[#allocation70_spill] sm:$0xff]  ;;  %v8374_v40 = vld [vmem:[#allocation75_spill] sm:$0xff] }
 0x77a   :  { %3533 = vmatprep.subr.bf16.mxu0 %v8357_v12  ;;  %3574 = vmatprep.subr.bf16.mxu1 %v8358_v11 }
 0x77d   :  { %3534 = vmatpush1.bf16.msra.mxu0 %v8359_v42  ;;  %3575 = vmatpush1.bf16.msra.mxu1 %v8360_v60 }
 0x77e   :  { %3535 = vmatprep.subr.bf16.mxu0 %v8361_v41  ;;  %3576 = vmatprep.subr.bf16.mxu1 %v8362_v51 }
 0x781   :  { %3536 = vmatpush1.bf16.msra.mxu0 %v8363_v14  ;;  %3577 = vmatpush1.bf16.msra.mxu1 %v8364_v44 }
 0x782   :  { %3537 = vmatprep.subr.bf16.mxu0 %v8365_v9  ;;  %3578 = vmatprep.subr.bf16.mxu1 %v8366_v50 }
 0x785   :  { %3538 = vmatpush1.bf16.msra.mxu0 %v8367_v55  ;;  %3579 = vmatpush1.bf16.msra.mxu1 %v8368_v58 }
 0x786   :  { %3539 = vmatprep.subr.bf16.mxu0 %v8369_v25  ;;  %3580 = vmatprep.subr.bf16.mxu1 %v8370_v46 }
 0x789   :  { %3540 = vmatpush1.bf16.msra.mxu0 %v8371_v32  ;;  %3581 = vmatpush1.bf16.msra.mxu1 %v8372_v26 }
 0x78a   :  { %3607 = vmatprep.subr.bf16.mxu0 %v8373_v54  ;;  %3648 = vmatprep.subr.bf16.mxu1 %v8374_v40 }
 0x7f9   :  { %v3239_v12 = vpop.f32.mrb[84].mxu0  ;;  %v3280_v11 = vpop.f32.mrb[84].mxu1 }
 0x7fa   :  { %v3241_v42 = vpop.f32.mrb[85].mxu0  ;;  %v3282_v60 = vpop.f32.mrb[85].mxu1 }
 0x7fb   :  { %v3243_v41 = vpop.f32.mrb[86].mxu0  ;;  %v3284_v51 = vpop.f32.mrb[86].mxu1 }
 0x7fc   :  { %v3244_v14 = vpop.f32.mrb[87].mxu0  ;;  %v3285_v44 = vpop.f32.mrb[87].mxu1 }
 0x81f   :  { %v3321_v9 = vpop.f32.mrb[88].mxu0  ;;  %v3362_v50 = vpop.f32.mrb[88].mxu1 }
 0x820   :  { %v3322_v55 = vadd.f32 %v3321_v9, %v3239_v12  ;;  %v3363_v58 = vadd.f32 %v3362_v50, %v3280_v11  ;;  %v3323_v25 = vpop.f32.mrb[89].mxu0  ;;  %v3364_v46 = vpop.f32.mrb[89].mxu1 }
 0x821   :  { %v3324_v32 = vadd.f32 %v3323_v25, %v3241_v42  ;;  %v3365_v26 = vadd.f32 %v3364_v46, %v3282_v60  ;;  %v3325_v63 = vpop.f32.mrb[90].mxu0  ;;  %v3366_v54 = vpop.f32.mrb[90].mxu1 }
 0x822   :  { %v3369_v40 = vadd.f32 %v3322_v55, %v6467_v57  ;;  %v3326_v39 = vpop.f32.mrb[91].mxu0  ;;  %v3367_v16 = vpop.f32.mrb[91].mxu1  ;;  %v3371_v14 = vadd.f32 %v3363_v58, %v6477_v18 }
 0x823   :  { %v3370_v7 = vadd.f32 %v3324_v32, %v6471_v8  ;;  %v3372_v12 = vadd.f32 %v3365_v26, %v6481_v33 }
 0x824   :  { %v4652_v41 = vmul.f32 -1.442695, %v3369_v40  ;;  %v4654_v11 = vmul.f32 -1.442695, %v3371_v14 }
 0x825   :  { %v4653_v51 = vmul.f32 -1.442695, %v3370_v7 }
 0x826   :  { %5026 = vpow2.f32 %v4652_v41 }
 0x827   :  { %5028 = vpow2.f32 %v4653_v51 }
 0x828   :  { %5030 = vtanh.f32 %v3372_v12 }
 0x829   :  { %5032 = vpow2.f32 %v4654_v11 }
 0x830   :  { %v5027_v44 = vpop.eup %5026 }
 0x831   :  { %v3382_v42 = vadd.f32 1.0, %v5027_v44  ;;  %v5029_v63 = vpop.eup %5028 }
 0x832   :  { %v3383_v60 = vadd.f32 1.0, %v5029_v63  ;;  %v5031_v16 = vpop.eup %5030 }
 0x833   :  { %5034 = vrcp.f32 %v3382_v42  ;;  %v5033_v39 = vpop.eup %5032 }
 0x834   :  { %5036 = vrcp.f32 %v3383_v60  ;;  %v3384_v55 = vadd.f32 1.0, %v5033_v39  ;;  %v8375_v60 = vld [vmem:[#allocation71_spill] sm:$0xff] }
 0x836   :  { %5038 = vrcp.f32 %v3384_v55 }
 0x83d   :  { %v5035_v9 = vpop.eup %5034 }
 0x83e   :  { %v3393_v50 = vmul.f32 %v5035_v9, %v5031_v16  ;;  %v5037_v7 = vpop.eup %5036 }
 0x83f   :  { %v3432_v25 = vpop.f32.mrb[92].mxu0  ;;  %v3473_v46 = vpop.f32.mrb[92].mxu1  ;;  %v3392_v58 = vmul.f32 %v5037_v7, %v7040_v36  ;;  %v8376_v36 = vld [vmem:[#allocation72_spill] sm:$0xff] }
 0x840   :  { %v3434_v32 = vpop.f32.mrb[93].mxu0  ;;  %v3475_v26 = vpop.f32.mrb[93].mxu1  ;;  %v8377_v16 = vcombine.low %v8375_v60, %v8376_v36  ;;  %v7316_v60 = vld [vmem:[#allocation11 + $0x8] ss:$16 sps:$4 sm:$0xff]   ;;  %v7319_v36 = vld [vmem:[#allocation11 + $0x24] ss:$16 sps:$4 sm:$0xff]  }
 0x841   :  { %v3484_v54 = vcombine.low %v3432_v25, %v3434_v32  ;;  %v3485_v40 = vcombine.low %v3473_v46, %v3475_v26  ;;  %v3436_v41 = vpop.f32.mrb[94].mxu0  ;;  %v3477_v51 = vpop.f32.mrb[94].mxu1  ;;  %v7225_v14 = vadd.f32 %v3393_v50, %v3392_v58  ;;  %v8399_v26 = vld [vmem:[#allocation21_spill] sm:$0xff]  ;;  %8405 = vst [vmem:[#allocation61_spill] sm:$0xff] %v7316_v60  ;;  %8406 = vst [vmem:[#allocation62_spill] sm:$0xff] %v7319_v36 }
 0x842   :  { %v3437_v12 = vpop.f32.mrb[95].mxu0  ;;  %v3478_v11 = vpop.f32.mrb[95].mxu1  ;;  %v8402_v41 = vld [vmem:[#allocation58_spill] sm:$0xff]  ;;  %v8403_v51 = vld [vmem:[#allocation59_spill] sm:$0xff] }
 0x843   :  { %v3492_v44 = vrot.slane %v3484_v54, %v5981_v5  ;;  %v3499_v42 = vrot.slane %v3485_v40, %v5981_v5  ;;  %5040 = vtanh.f32 %v7225_v14  ;;  %v5039_v7 = vpop.eup %5038  ;;  %v8400_v54 = vld [vmem:[#allocation22_spill] sm:$0xff]  ;;  %v8401_v40 = vld [vmem:[#allocation57_spill] sm:$0xff] }
 0x844   :  { %v7301_v12 = vld [vmem:[#allocation8 + $0xe0] ss:$16 sps:$4 sm:$0xff]   ;;  %v7304_v11 = vld [vmem:[#allocation8 + $0xe8] ss:$16 sps:$4 sm:$0xff]  }
 0x845   :  { %v3500_v63 = vcombine.low %v3492_v44, %v3499_v42  ;;  %v7307_v44 = vld [vmem:[#allocation11 + $0x4] ss:$16 sps:$4 sm:$0xff]   ;;  %v7310_v42 = vld [vmem:[#allocation11 + $0xc] ss:$16 sps:$4 sm:$0xff]  }
 0x847   :  { %v3502_v39 = vadd.f32 %v3500_v63, %v8377_v16  ;;  %v7313_v63 = vld [vmem:[#allocation11] ss:$16 sps:$4 sm:$0xff]   ;;  %v7322_v16 = vld [vmem:[#allocation11 + $0x2c] ss:$16 sps:$4 sm:$0xff]  }
 0x848   :  { %8404 = vst [vmem:[#allocation60_spill] sm:$0xff] %v7313_v63  ;;  %8407 = vst [vmem:[#allocation63_spill] sm:$0xff] %v7322_v16 }
 0x849   :  { %v4655_v9 = vmul.f32 -1.442695, %v3502_v39  ;;  %v3510_v32 = vrot.slane %v3502_v39, 6  ;;  %v7327_v39 = vld [vmem:[#allocation11 + $0x20] ss:$16 sps:$4 sm:$0xff]  }
 0x84a   :  { %8408 = vst [vmem:[#allocation64_spill] sm:$0xff] %v7327_v39 }
 0x84b   :  { %5042 = vpow2.f32 %v4655_v9  ;;  %v7330_v9 = vld [vmem:[#allocation11 + $0x28] ss:$16 sps:$4 sm:$0xff]  }
 0x84c   :  { %8409 = vst [vmem:[#allocation39_spill] sm:$0xff] %v7330_v9 }
 0x84d   :  { %v5041_v25 = vpop.eup %5040 }
 0x84e   :  { %v3396_v50 = vmul.f32 %v5041_v25, %v5039_v7  ;;  %v7333_v7 = vld [vmem:[#allocation11 + $0x44] ss:$16 sps:$4 sm:$0xff]   ;;  %v7336_v25 = vld [vmem:[#allocation11 + $0x4c] ss:$16 sps:$4 sm:$0xff]  }
 0x84f   :  { %8410 = vst [vmem:[#allocation40_spill] sm:$0xff] %v7333_v7  ;;  %8411 = vst [vmem:[#allocation76_spill] sm:$0xff] %v7336_v25 }
 0x850   :  { %v3524_v46 = vpack.c.bf16 %v3396_v50, %v3396_v50  ;;  %v7339_v50 = vld [vmem:[#allocation11 + $0x40] ss:$16 sps:$4 sm:$0xff]  }
 0x851   :  { %8412 = vst [vmem:[#allocation79_spill] sm:$0xff] %v7339_v50 }
 0x852   :  { %3558 = vmatmul.mubr.bf16.vlgmr.msra.gmra.mrb[96].mxu0 %v3524_v46  ;;  %3599 = vmatmul.mubr.bf16.vlgmr.msra.gmra.mrb[96].mxu1 %v3524_v46  ;;  %v7342_v46 = vld [vmem:[#allocation11 + $0x48] ss:$16 sps:$4 sm:$0xff]  }
 0x853   :  { %3608 = vmatpush1.bf16.msra.mxu0 %v6869_v0  ;;  %3649 = vmatpush1.bf16.msra.mxu1 %v6872_v21  ;;  %8413 = vst [vmem:[#allocation80_spill] sm:$0xff] %v7342_v46 }
 0x854   :  { %3609 = vmatprep.subr.bf16.mxu0 %v6875_v22  ;;  %3650 = vmatprep.subr.bf16.mxu1 %v6878_v23 }
 0x855   :  { %v5043_v55 = vpop.eup %5042  ;;  %3639 = vmatprep.mubr.bf16.mxu0 %v8067_v47  ;;  %3680 = vmatprep.mubr.bf16.mxu1 %v8067_v47 }
 0x856   :  { %v3506_v58 = vadd.f32 1.0, %v5043_v55  ;;  %v7345_v55 = vld [vmem:[#allocation11 + $0x64] ss:$16 sps:$4 sm:$0xff]  }
 0x857   :  { %3610 = vmatpush1.bf16.msra.mxu0 %v6883_v61  ;;  %3651 = vmatpush1.bf16.msra.mxu1 %v6886_v45  ;;  %8414 = vst [vmem:[#allocation81_spill] sm:$0xff] %v7345_v55 }
 0x858   :  { %5044 = vrcp.f32 %v3506_v58  ;;  %3611 = vmatprep.subr.bf16.mxu0 %v6889_v62  ;;  %3652 = vmatprep.subr.bf16.mxu1 %v6892_v20  ;;  %v8378_v62 = vld [vmem:[#allocation33_spill] sm:$0xff] }
 0x859   :  { %5046 = vtanh.f32 %v3510_v32  ;;  %v7348_v58 = vld [vmem:[#allocation11 + $0x6c] ss:$16 sps:$4 sm:$0xff]   ;;  %v7351_v32 = vld [vmem:[#allocation11 + $0x60] ss:$16 sps:$4 sm:$0xff]  }
 0x85a   :  { %8415 = vst [vmem:[#allocation82_spill] sm:$0xff] %v7348_v58  ;;  %8416 = vst [vmem:[#allocation85_spill] sm:$0xff] %v7351_v32 }
 0x85b   :  { %3612 = vmatpush1.bf16.msra.mxu0 %v6895_v4  ;;  %3653 = vmatpush1.bf16.msra.mxu1 %v6898_v19 }
 0x85c   :  { %3613 = vmatprep.subr.bf16.mxu0 %v6901_v17  ;;  %3654 = vmatprep.subr.bf16.mxu1 %v8317_v59  ;;  %v8385_v59 = vld [vmem:[#allocation42_spill] sm:$0xff] }
 0x85f   :  { %3614 = vmatpush1.bf16.msra.mxu0 %v8318_v43  ;;  %3655 = vmatpush1.bf16.msra.mxu1 %v8319_v10  ;;  %v8386_v43 = vld [vmem:[#allocation43_spill] sm:$0xff]  ;;  %v8387_v10 = vld [vmem:[#allocation44_spill] sm:$0xff] }
 0x860   :  { %3615 = vmatprep.subr.bf16.mxu0 %v8320_v1  ;;  %3656 = vmatprep.subr.bf16.mxu1 %v8321_v6  ;;  %v8388_v1 = vld [vmem:[#allocation45_spill] sm:$0xff]  ;;  %v8389_v6 = vld [vmem:[#allocation46_spill] sm:$0xff] }
 0x862   :  { %v5045_v0 = vpop.eup %5044 }
 0x863   :  { %v3514_v21 = vrot.slane %v5045_v0, 2  ;;  %v5047_v22 = vpop.eup %5046  ;;  %3616 = vmatpush1.bf16.msra.mxu0 %v8322_v35  ;;  %3657 = vmatpush1.bf16.msra.mxu1 %v6922_v24  ;;  %v3520_v20 = vrot.slane %v5045_v0, 4  ;;  %v8381_v24 = vld [vmem:[#allocation36_spill] sm:$0xff]  ;;  %v8390_v35 = vld [vmem:[#allocation47_spill] sm:$0xff] }
 0x864   :  { %v3517_v23 = vmul.f32 %v5047_v22, %v5045_v0  ;;  %3617 = vmatprep.subr.bf16.mxu0 %v8323_v38  ;;  %3658 = vmatprep.subr.bf16.mxu1 %v6928_v15  ;;  %v8380_v15 = vld [vmem:[#allocation35_spill] sm:$0xff]  ;;  %v8391_v38 = vld [vmem:[#allocation48_spill] sm:$0xff] }
 0x865   :  { %v3516_v61 = vmul.f32 %v3514_v21, %v7071_v28  ;;  %v8392_v28 = vld [vmem:[#allocation49_spill] sm:$0xff]  ;;  %v7357_v21 = vld [vmem:[#allocation11 + $0x84] ss:$16 sps:$4 sm:$0xff]  }
 0x866   :  { %v7354_v0 = vld [vmem:[#allocation11 + $0x68] ss:$16 sps:$4 sm:$0xff]   ;;  %8418 = vst [vmem:[#allocation27_spill] sm:$0xff] %v7357_v21  ;;  %v7360_v22 = vld [vmem:[#allocation11 + $0x8c] ss:$16 sps:$4 sm:$0xff]  }
 0x867   :  { %v7256_v45 = vadd.f32 %v3517_v23, %v3516_v61  ;;  %3618 = vmatpush1.bf16.msra.mxu0 %v6934_v29  ;;  %3659 = vmatpush1.bf16.msra.mxu1 %v8324_v30  ;;  %v8379_v29 = vld [vmem:[#allocation34_spill] sm:$0xff]  ;;  %8417 = vst [vmem:[#allocation86_spill] sm:$0xff] %v7354_v0  ;;  %8419 = vst [vmem:[#allocation28_spill] sm:$0xff] %v7360_v22 }
 0x868   :  { %3619 = vmatprep.subr.bf16.mxu0 %v8325_v34  ;;  %3660 = vmatprep.subr.bf16.mxu1 %v8326_v27  ;;  %v8393_v30 = vld [vmem:[#allocation50_spill] sm:$0xff]  ;;  %v8394_v34 = vld [vmem:[#allocation25_spill] sm:$0xff] }
 0x869   :  { %5048 = vtanh.f32 %v7256_v45  ;;  %v8395_v27 = vld [vmem:[#allocation26_spill] sm:$0xff] }
 0x86a   :  { %v7363_v23 = vld [vmem:[#allocation11 + $0x80] ss:$16 sps:$4 sm:$0xff]   ;;  %v7366_v61 = vld [vmem:[#allocation11 + $0x88] ss:$16 sps:$4 sm:$0xff]  }
 0x86b   :  { %3620 = vmatpush1.bf16.msra.mxu0 %v8327_v13  ;;  %3661 = vmatpush1.bf16.msra.mxu1 %v8328_v2  ;;  %v8396_v13 = vld [vmem:[#allocation51_spill] sm:$0xff]  ;;  %v8397_v2 = vld [vmem:[#allocation52_spill] sm:$0xff]  ;;  %8420 = vst [vmem:[#allocation29_spill] sm:$0xff] %v7363_v23  ;;  %8421 = vst [vmem:[#allocation30_spill] sm:$0xff] %v7366_v61 }
 0x86c   :  { %3621 = vmatprep.subr.bf16.mxu0 %v8329_v49  ;;  %3662 = vmatprep.subr.bf16.mxu1 %v6956_v53  ;;  %v8384_v53 = vld [vmem:[#allocation41_spill] sm:$0xff]  ;;  %v8398_v49 = vld [vmem:[#allocation20_spill] sm:$0xff] }
 0x86f   :  { %3622 = vmatpush1.bf16.msra.mxu0 %v6959_v48  ;;  %3663 = vmatpush1.bf16.msra.mxu1 %v6962_v37  ;;  %v8382_v37 = vld [vmem:[#allocation37_spill] sm:$0xff]  ;;  %v8383_v48 = vld [vmem:[#allocation38_spill] sm:$0xff] }
 0x870   :  { %3718 = vmatprep.subr.bf16.mxu0 %v8378_v62  ;;  %3759 = vmatprep.subr.bf16.mxu1 %v7087_v52 }
 0x873   :  { %v5049_v4 = vpop.eup %5048 }
 0x874   :  { %v3522_v19 = vmul.f32 %v5049_v4, %v3520_v20  ;;  %v7369_v20 = vld [vmem:[#allocation11 + $0xa4] ss:$16 sps:$4 sm:$0xff]   ;;  %v7372_v4 = vld [vmem:[#allocation11 + $0xac] ss:$16 sps:$4 sm:$0xff]  }
 0x875   :  { %8422 = vst [vmem:[#allocation31_spill] sm:$0xff] %v7369_v20  ;;  %8423 = vst [vmem:[#allocation32_spill] sm:$0xff] %v7372_v4 }
 0x876   :  { %v3523_v17 = vpack.c.bf16 %v3522_v19, %v3522_v19  ;;  %v7375_v19 = vld [vmem:[#allocation11 + $0xa0] ss:$16 sps:$4 sm:$0xff]  }
 0x877   :  { %8424 = vst [vmem:[#allocation73_spill] sm:$0xff] %v7375_v19 }
 0x878   :  { %3640 = vmatmul.mubr.bf16.vlgmr.msra.gmra.mrb[100].mxu0 %v3523_v17  ;;  %3681 = vmatmul.mubr.bf16.vlgmr.msra.gmra.mrb[100].mxu1 %v3523_v17 }
 0x879   :  { %3719 = vmatpush1.bf16.msra.mxu0 %v7094_v31  ;;  %3760 = vmatpush1.bf16.msra.mxu1 %v8379_v29 }
 0x87a   :  { %3720 = vmatprep.subr.bf16.mxu0 %v8380_v15  ;;  %3761 = vmatprep.subr.bf16.mxu1 %v8381_v24 }
 0x87b   :  { %3750 = vmatprep.mubr.bf16.mxu0 %v8067_v47  ;;  %3791 = vmatprep.mubr.bf16.mxu1 %v8067_v47 }
 0x87d   :  { %3721 = vmatpush1.bf16.msra.mxu0 %v8382_v37  ;;  %3762 = vmatpush1.bf16.msra.mxu1 %v8383_v48 }
 0x87e   :  { %3722 = vmatprep.subr.bf16.mxu0 %v8384_v53  ;;  %3763 = vmatprep.subr.bf16.mxu1 %v8385_v59 }
 0x881   :  { %3723 = vmatpush1.bf16.msra.mxu0 %v8386_v43  ;;  %3764 = vmatpush1.bf16.msra.mxu1 %v8387_v10 }
 0x882   :  { %3724 = vmatprep.subr.bf16.mxu0 %v8388_v1  ;;  %3765 = vmatprep.subr.bf16.mxu1 %v8389_v6 }
 0x885   :  { %3725 = vmatpush1.bf16.msra.mxu0 %v8390_v35  ;;  %3766 = vmatpush1.bf16.msra.mxu1 %v8391_v38 }
 0x886   :  { %3726 = vmatprep.subr.bf16.mxu0 %v8392_v28  ;;  %3767 = vmatprep.subr.bf16.mxu1 %v8393_v30 }
 0x889   :  { %3727 = vmatpush1.bf16.msra.mxu0 %v8394_v34  ;;  %3768 = vmatpush1.bf16.msra.mxu1 %v8395_v27 }
 0x88a   :  { %3728 = vmatprep.subr.bf16.mxu0 %v8396_v13  ;;  %3769 = vmatprep.subr.bf16.mxu1 %v8397_v2 }
 0x88d   :  { %3729 = vmatpush1.bf16.msra.mxu0 %v8398_v49  ;;  %3770 = vmatpush1.bf16.msra.mxu1 %v8399_v26 }
 0x88e   :  { %3730 = vmatprep.subr.bf16.mxu0 %v7162_v56  ;;  %3771 = vmatprep.subr.bf16.mxu1 %v7165_v3 }
 0x891   :  { %3731 = vmatpush1.bf16.msra.mxu0 %v8400_v54  ;;  %3772 = vmatpush1.bf16.msra.mxu1 %v8401_v40 }
 0x892   :  { %3732 = vmatprep.subr.bf16.mxu0 %v8402_v41  ;;  %3773 = vmatprep.subr.bf16.mxu1 %v8403_v51 }
 0x895   :  { %3733 = vmatpush1.bf16.msra.mxu0 %v7301_v12  ;;  %3774 = vmatpush1.bf16.msra.mxu1 %v7304_v11 }
 0x896   :  { %3845 = vmatprep.subr.bf16.mxu0 %v7307_v44  ;;  %3886 = vmatprep.subr.bf16.mxu1 %v7310_v42 }
 0x898   :  { %3751 = vmatmul.mubr.bf16.vlgmr.msra.gmra.mrb[104].mxu0 %v3523_v17  ;;  %3792 = vmatmul.mubr.bf16.vlgmr.msra.gmra.mrb[104].mxu1 %v3523_v17  ;;  %v7378_v17 = vld [vmem:[#allocation11 + $0xa8] ss:$16 sps:$4 sm:$0xff]  }
 0x899   :  { %3846 = vmatpush1.bf16.msra.mxu0 %v7313_v63  ;;  %3887 = vmatpush1.bf16.msra.mxu1 %v7316_v60  ;;  %8425 = vst [vmem:[#allocation77_spill] sm:$0xff] %v7378_v17 }
 0x89a   :  { %3847 = vmatprep.subr.bf16.mxu0 %v7319_v36  ;;  %3888 = vmatprep.subr.bf16.mxu1 %v7322_v16 }
 0x89b   :  { %3877 = vmatprep.mubr.bf16.mxu0 %v8067_v47  ;;  %3918 = vmatprep.mubr.bf16.mxu1 %v8067_v47 }
 0x89d   :  { %3848 = vmatpush1.bf16.msra.mxu0 %v7327_v39  ;;  %3889 = vmatpush1.bf16.msra.mxu1 %v7330_v9 }
 0x89e   :  { %3849 = vmatprep.subr.bf16.mxu0 %v7333_v7  ;;  %3890 = vmatprep.subr.bf16.mxu1 %v7336_v25 }
 0x8a1   :  { %3850 = vmatpush1.bf16.msra.mxu0 %v7339_v50  ;;  %3891 = vmatpush1.bf16.msra.mxu1 %v7342_v46 }
 0x8a2   :  { %3851 = vmatprep.subr.bf16.mxu0 %v7345_v55  ;;  %3892 = vmatprep.subr.bf16.mxu1 %v7348_v58 }
 0x8a5   :  { %3852 = vmatpush1.bf16.msra.mxu0 %v7351_v32  ;;  %3893 = vmatpush1.bf16.msra.mxu1 %v7354_v0 }
 0x8a6   :  { %3853 = vmatprep.subr.bf16.mxu0 %v7357_v21  ;;  %3894 = vmatprep.subr.bf16.mxu1 %v7360_v22 }
 0x8a9   :  { %3854 = vmatpush1.bf16.msra.mxu0 %v7363_v23  ;;  %3895 = vmatpush1.bf16.msra.mxu1 %v7366_v61  ;;  %v7381_v23 = vld [vmem:[#allocation11 + $0xc4] ss:$16 sps:$4 sm:$0xff]   ;;  %v7384_v61 = vld [vmem:[#allocation11 + $0xcc] ss:$16 sps:$4 sm:$0xff]  }
 0x8aa   :  { %3855 = vmatprep.subr.bf16.mxu0 %v7369_v20  ;;  %3896 = vmatprep.subr.bf16.mxu1 %v7372_v4  ;;  %8426 = vst [vmem:[#allocation78_spill] sm:$0xff] %v7381_v23  ;;  %8427 = vst [vmem:[#allocation83_spill] sm:$0xff] %v7384_v61  ;;  %v7387_v20 = vld [vmem:[#allocation11 + $0xc0] ss:$16 sps:$4 sm:$0xff]   ;;  %v7390_v4 = vld [vmem:[#allocation11 + $0xc8] ss:$16 sps:$4 sm:$0xff]  }
 0x8ab   :  { %8428 = vst [vmem:[#allocation84_spill] sm:$0xff] %v7387_v20  ;;  %8429 = vst [vmem:[#allocation53_spill] sm:$0xff] %v7390_v4 }
 0x8ad   :  { %3856 = vmatpush1.bf16.msra.mxu0 %v7375_v19  ;;  %3897 = vmatpush1.bf16.msra.mxu1 %v7378_v17  ;;  %v7393_v19 = vld [vmem:[#allocation11 + $0xe4] ss:$16 sps:$4 sm:$0xff]   ;;  %v7396_v17 = vld [vmem:[#allocation11 + $0xec] ss:$16 sps:$4 sm:$0xff]  }
 0x8ae   :  { %3857 = vmatprep.subr.bf16.mxu0 %v7381_v23  ;;  %3898 = vmatprep.subr.bf16.mxu1 %v7384_v61  ;;  %8430 = vst [vmem:[#allocation54_spill] sm:$0xff] %v7393_v19  ;;  %8431 = vst [vmem:[#allocation55_spill] sm:$0xff] %v7396_v17  ;;  %v7399_v23 = vld [vmem:[#allocation11 + $0xe0] ss:$16 sps:$4 sm:$0xff]   ;;  %v7402_v61 = vld [vmem:[#allocation11 + $0xe8] ss:$16 sps:$4 sm:$0xff]  }
 0x8af   :  { %8432 = vst [vmem:[#allocation56_spill] sm:$0xff] %v7399_v23  ;;  %8433 = vst [vmem:[#allocation23_spill] sm:$0xff] %v7402_v61 }
 0x8b1   :  { %3858 = vmatpush1.bf16.msra.mxu0 %v7387_v20  ;;  %3899 = vmatpush1.bf16.msra.mxu1 %v7390_v4  ;;  %v7405_v20 = vld [vmem:[#allocation9 + $0x4] ss:$16 sps:$4 sm:$0xff]   ;;  %v7408_v4 = vld [vmem:[#allocation9 + $0xc] ss:$16 sps:$4 sm:$0xff]  }
 0x8b2   :  { %3859 = vmatprep.subr.bf16.mxu0 %v7393_v19  ;;  %3900 = vmatprep.subr.bf16.mxu1 %v7396_v17  ;;  %8434 = vst [vmem:[#allocation24_spill] sm:$0xff] %v7405_v20  ;;  %8435 = vst [vmem:[#allocation65_spill] sm:$0xff] %v7408_v4 }
 0x8b5   :  { %3860 = vmatpush1.bf16.msra.mxu0 %v7399_v23  ;;  %3901 = vmatpush1.bf16.msra.mxu1 %v7402_v61 }
 0x8b6   :  { %3927 = vmatprep.subr.bf16.mxu0 %v7405_v20  ;;  %3968 = vmatprep.subr.bf16.mxu1 %v7408_v4 }
 0x925   :  { %v3559_v19 = vpop.f32.mrb[96].mxu0  ;;  %v3600_v22 = vpop.f32.mrb[96].mxu1 }
 0x926   :  { %v3561_v21 = vpop.f32.mrb[97].mxu0  ;;  %v3602_v17 = vpop.f32.mrb[97].mxu1 }
 0x927   :  { %v3563_v0 = vpop.f32.mrb[98].mxu0  ;;  %v3604_v32 = vpop.f32.mrb[98].mxu1 }
 0x928   :  { %v3564_v58 = vpop.f32.mrb[99].mxu0  ;;  %v3605_v23 = vpop.f32.mrb[99].mxu1 }
 0x94b   :  { %v3641_v55 = vpop.f32.mrb[100].mxu0  ;;  %v3682_v46 = vpop.f32.mrb[100].mxu1 }
 0x94c   :  { %v3642_v50 = vadd.f32 %v3641_v55, %v3559_v19  ;;  %v3683_v61 = vadd.f32 %v3682_v46, %v3600_v22  ;;  %v3643_v25 = vpop.f32.mrb[101].mxu0  ;;  %v3684_v7 = vpop.f32.mrb[101].mxu1 }
 0x94d   :  { %v3644_v9 = vadd.f32 %v3643_v25, %v3561_v21  ;;  %v3685_v20 = vadd.f32 %v3684_v7, %v3602_v17  ;;  %v3645_v39 = vpop.f32.mrb[102].mxu0  ;;  %v3686_v16 = vpop.f32.mrb[102].mxu1 }
 0x94e   :  { %v3689_v4 = vadd.f32 %v3642_v50, %v6467_v57  ;;  %v3646_v36 = vpop.f32.mrb[103].mxu0  ;;  %v3687_v60 = vpop.f32.mrb[103].mxu1  ;;  %v3691_v58 = vadd.f32 %v3683_v61, %v6477_v18 }
 0x94f   :  { %v3690_v63 = vadd.f32 %v3644_v9, %v6471_v8  ;;  %v3692_v46 = vadd.f32 %v3685_v20, %v6481_v33 }
 0x950   :  { %v4656_v0 = vmul.f32 -1.442695, %v3689_v4  ;;  %v4658_v55 = vmul.f32 -1.442695, %v3691_v58 }
 0x951   :  { %v4657_v32 = vmul.f32 -1.442695, %v3690_v63 }
 0x952   :  { %5050 = vpow2.f32 %v4656_v0 }
 0x953   :  { %5052 = vpow2.f32 %v4657_v32 }
 0x954   :  { %5054 = vtanh.f32 %v3692_v46 }
 0x955   :  { %5056 = vpow2.f32 %v4658_v55 }
 0x95c   :  { %v5051_v22 = vpop.eup %5050 }
 0x95d   :  { %v3702_v25 = vadd.f32 1.0, %v5051_v22  ;;  %v5053_v39 = vpop.eup %5052 }
 0x95e   :  { %v3703_v16 = vadd.f32 1.0, %v5053_v39  ;;  %v5055_v60 = vpop.eup %5054 }
 0x95f   :  { %5058 = vrcp.f32 %v3702_v25  ;;  %v5057_v36 = vpop.eup %5056 }
 0x960   :  { %5060 = vrcp.f32 %v3703_v16  ;;  %v3704_v50 = vadd.f32 1.0, %v5057_v36  ;;  %v8436_v16 = vld [vmem:[#allocation87_spill] sm:$0xff] }
 0x962   :  { %5062 = vrcp.f32 %v3704_v50  ;;  %v7424_v50 = vld [vmem:[#allocation9] ss:$16 sps:$4 sm:$0xff]  }
 0x969   :  { %v5059_v9 = vpop.eup %5058 }
 0x96a   :  { %v3713_v7 = vmul.f32 %v5059_v9, %v5055_v60  ;;  %v5061_v63 = vpop.eup %5060 }
 0x96b   :  { %v3752_v21 = vpop.f32.mrb[104].mxu0  ;;  %v3793_v23 = vpop.f32.mrb[104].mxu1  ;;  %v3712_v61 = vmul.f32 %v5061_v63, %v7225_v14  ;;  %v8437_v14 = vld [vmem:[#allocation88_spill] sm:$0xff] }
 0x96c   :  { %v3754_v20 = vpop.f32.mrb[105].mxu0  ;;  %v3795_v4 = vpop.f32.mrb[105].mxu1  ;;  %v8438_v60 = vcombine.low %v8436_v16, %v8437_v14  ;;  %v7456_v16 = vld [vmem:[#allocation9 + $0x64] ss:$16 sps:$4 sm:$0xff]   ;;  %v7459_v14 = vld [vmem:[#allocation9 + $0x6c] ss:$16 sps:$4 sm:$0xff]  }
 0x96d   :  { %v3804_v19 = vcombine.low %v3752_v21, %v3754_v20  ;;  %v3805_v17 = vcombine.low %v3793_v23, %v3795_v4  ;;  %v3756_v0 = vpop.f32.mrb[106].mxu0  ;;  %v3797_v32 = vpop.f32.mrb[106].mxu1  ;;  %v7416_v58 = vadd.f32 %v3713_v7, %v3712_v61  ;;  %v7427_v61 = vld [vmem:[#allocation9 + $0x8] ss:$16 sps:$4 sm:$0xff]   ;;  %v7430_v4 = vld [vmem:[#allocation9 + $0x24] ss:$16 sps:$4 sm:$0xff]  }
 0x96e   :  { %v3757_v46 = vpop.f32.mrb[107].mxu0  ;;  %v3798_v55 = vpop.f32.mrb[107].mxu1  ;;  %v7438_v32 = vld [vmem:[#allocation9 + $0x20] ss:$16 sps:$4 sm:$0xff]   ;;  %8439 = vst [vmem:[#allocation66_spill] sm:$0xff] %v7459_v14 }
 0x96f   :  { %v3812_v22 = vrot.slane %v3804_v19, %v5981_v5  ;;  %v3819_v25 = vrot.slane %v3805_v17, %v5981_v5  ;;  %5064 = vtanh.f32 %v7416_v58  ;;  %v5063_v63 = vpop.eup %5062  ;;  %v7433_v19 = vld [vmem:[#allocation9 + $0x2c] ss:$16 sps:$4 sm:$0xff]   ;;  %v7441_v46 = vld [vmem:[#allocation9 + $0x28] ss:$16 sps:$4 sm:$0xff]   ;;  %v7444_v55 = vld [vmem:[#allocation9 + $0x44] ss:$16 sps:$4 sm:$0xff]  }
 0x971   :  { %v3820_v39 = vcombine.low %v3812_v22, %v3819_v25  ;;  %v7447_v22 = vld [vmem:[#allocation9 + $0x4c] ss:$16 sps:$4 sm:$0xff]   ;;  %v7450_v25 = vld [vmem:[#allocation9 + $0x40] ss:$16 sps:$4 sm:$0xff]  }
 0x973   :  { %v3822_v36 = vadd.f32 %v3820_v39, %v8438_v60  ;;  %v7453_v39 = vld [vmem:[#allocation9 + $0x48] ss:$16 sps:$4 sm:$0xff]   ;;  %v7462_v60 = vld [vmem:[#allocation9 + $0x60] ss:$16 sps:$4 sm:$0xff]  }
 0x974   :  { %8440 = vst [vmem:[#allocation67_spill] sm:$0xff] %v7462_v60 }
 0x975   :  { %v4659_v9 = vmul.f32 -1.442695, %v3822_v36  ;;  %v3830_v0 = vrot.slane %v3822_v36, 6  ;;  %v7465_v36 = vld [vmem:[#allocation9 + $0x68] ss:$16 sps:$4 sm:$0xff]  }
 0x976   :  { %8441 = vst [vmem:[#allocation68_spill] sm:$0xff] %v7465_v36 }
 0x977   :  { %5066 = vpow2.f32 %v4659_v9  ;;  %v7468_v9 = vld [vmem:[#allocation9 + $0x84] ss:$16 sps:$4 sm:$0xff]  }
 0x978   :  { %8442 = vst [vmem:[#allocation69_spill] sm:$0xff] %v7468_v9 }
 0x979   :  { %v5065_v21 = vpop.eup %5064 }
 0x97a   :  { %v3716_v7 = vmul.f32 %v5065_v21, %v5063_v63  ;;  %v7471_v63 = vld [vmem:[#allocation9 + $0x8c] ss:$16 sps:$4 sm:$0xff]  }
 0x97b   :  { %8443 = vst [vmem:[#allocation70_spill] sm:$0xff] %v7471_v63 }
 0x97c   :  { %v3844_v23 = vpack.c.bf16 %v3716_v7, %v3716_v7 }
 0x97e   :  { %3878 = vmatmul.mubr.bf16.vlgmr.msra.gmra.mrb[108].mxu0 %v3844_v23  ;;  %3919 = vmatmul.mubr.bf16.vlgmr.msra.gmra.mrb[108].mxu1 %v3844_v23 }
 0x97f   :  { %3928 = vmatpush1.bf16.msra.mxu0 %v7424_v50  ;;  %3969 = vmatpush1.bf16.msra.mxu1 %v7427_v61 }
 0x980   :  { %3929 = vmatprep.subr.bf16.mxu0 %v7430_v4  ;;  %3970 = vmatprep.subr.bf16.mxu1 %v7433_v19 }
 0x981   :  { %v5067_v20 = vpop.eup %5066  ;;  %3959 = vmatprep.mubr.bf16.mxu0 %v8067_v47  ;;  %4000 = vmatprep.mubr.bf16.mxu1 %v8067_v47 }
 0x982   :  { %v3826_v17 = vadd.f32 1.0, %v5067_v20  ;;  %v7474_v20 = vld [vmem:[#allocation9 + $0x80] ss:$16 sps:$4 sm:$0xff]  }
 0x983   :  { %3930 = vmatpush1.bf16.msra.mxu0 %v7438_v32  ;;  %3971 = vmatpush1.bf16.msra.mxu1 %v7441_v46  ;;  %8444 = vst [vmem:[#allocation74_spill] sm:$0xff] %v7474_v20 }
 0x984   :  { %5068 = vrcp.f32 %v3826_v17  ;;  %3931 = vmatprep.subr.bf16.mxu0 %v7444_v55  ;;  %3972 = vmatprep.subr.bf16.mxu1 %v7447_v22  ;;  %v7477_v17 = vld [vmem:[#allocation9 + $0x88] ss:$16 sps:$4 sm:$0xff]  }
 0x985   :  { %5070 = vtanh.f32 %v3830_v0 }
 0x987   :  { %3932 = vmatpush1.bf16.msra.mxu0 %v7450_v25  ;;  %3973 = vmatpush1.bf16.msra.mxu1 %v7453_v39 }
 0x988   :  { %3933 = vmatprep.subr.bf16.mxu0 %v7456_v16  ;;  %3974 = vmatprep.subr.bf16.mxu1 %v7459_v14  ;;  %v7489_v14 = vld [vmem:[#allocation9 + $0xa0] ss:$16 sps:$4 sm:$0xff]  }
 0x98b   :  { %3934 = vmatpush1.bf16.msra.mxu0 %v7462_v60  ;;  %3975 = vmatpush1.bf16.msra.mxu1 %v7465_v36  ;;  %v7480_v36 = vld [vmem:[#allocation9 + $0xa4] ss:$16 sps:$4 sm:$0xff]  }
 0x98c   :  { %3935 = vmatprep.subr.bf16.mxu0 %v7468_v9  ;;  %3976 = vmatprep.subr.bf16.mxu1 %v7471_v63  ;;  %8445 = vst [vmem:[#allocation75_spill] sm:$0xff] %v7480_v36  ;;  %v7483_v9 = vld [vmem:[#allocation9 + $0xac] ss:$16 sps:$4 sm:$0xff]  }
 0x98e   :  { %v5069_v21 = vpop.eup %5068 }
 0x98f   :  { %v3834_v7 = vrot.slane %v5069_v21, 2  ;;  %v5071_v23 = vpop.eup %5070  ;;  %3936 = vmatpush1.bf16.msra.mxu0 %v7474_v20  ;;  %3977 = vmatpush1.bf16.msra.mxu1 %v7477_v17  ;;  %v7492_v20 = vld [vmem:[#allocation9 + $0xa8] ss:$16 sps:$4 sm:$0xff]  }
 0x990   :  { %v3837_v0 = vmul.f32 %v5071_v23, %v5069_v21  ;;  %3937 = vmatprep.subr.bf16.mxu0 %v7480_v36  ;;  %3978 = vmatprep.subr.bf16.mxu1 %v7483_v9  ;;  %8446 = vst [vmem:[#allocation71_spill] sm:$0xff] %v7492_v20  ;;  %v7495_v23 = vld [vmem:[#allocation9 + $0xc4] ss:$16 sps:$4 sm:$0xff]   ;;  %v7498_v36 = vld [vmem:[#allocation9 + $0xcc] ss:$16 sps:$4 sm:$0xff]  }
 0x991   :  { %v3836_v63 = vmul.f32 %v3834_v7, %v7256_v45  ;;  %8447 = vst [vmem:[#allocation72_spill] sm:$0xff] %v7495_v23  ;;  %8448 = vst [vmem:[#allocation33_spill] sm:$0xff] %v7498_v36  ;;  %v7502_v45 = vld [vmem:[#allocation9 + $0xc0] ss:$16 sps:$4 sm:$0xff]   ;;  %v7508_v7 = vld [vmem:[#allocation9 + $0xe4] ss:$16 sps:$4 sm:$0xff]  }
 0x992   :  { %8449 = vst [vmem:[#allocation34_spill] sm:$0xff] %v7502_v45  ;;  %8451 = vst [vmem:[#allocation36_spill] sm:$0xff] %v7508_v7 }
 0x993   :  { %v7487_v60 = vadd.f32 %v3837_v0, %v3836_v63  ;;  %3938 = vmatpush1.bf16.msra.mxu0 %v7489_v14  ;;  %3979 = vmatpush1.bf16.msra.mxu1 %v7492_v20  ;;  %v7505_v63 = vld [vmem:[#allocation9 + $0xc8] ss:$16 sps:$4 sm:$0xff]   ;;  %v7511_v0 = vld [vmem:[#allocation9 + $0xec] ss:$16 sps:$4 sm:$0xff]  }
 0x994   :  { %3939 = vmatprep.subr.bf16.mxu0 %v7495_v23  ;;  %3980 = vmatprep.subr.bf16.mxu1 %v7498_v36  ;;  %8450 = vst [vmem:[#allocation35_spill] sm:$0xff] %v7505_v63  ;;  %v7514_v23 = vld [vmem:[#allocation9 + $0xe0] ss:$16 sps:$4 sm:$0xff]   ;;  %v7517_v36 = vld [vmem:[#allocation9 + $0xe8] ss:$16 sps:$4 sm:$0xff]  }
 0x995   :  { %5072 = vtanh.f32 %v7487_v60 }
 0x997   :  { %3940 = vmatpush1.bf16.msra.mxu0 %v7502_v45  ;;  %3981 = vmatpush1.bf16.msra.mxu1 %v7505_v63  ;;  %v3840_v63 = vrot.slane %v5069_v21, 4 }
 0x998   :  { %3941 = vmatprep.subr.bf16.mxu0 %v7508_v7  ;;  %3982 = vmatprep.subr.bf16.mxu1 %v7511_v0 }
 0x99b   :  { %3942 = vmatpush1.bf16.msra.mxu0 %v7514_v23  ;;  %3983 = vmatpush1.bf16.msra.mxu1 %v7517_v36 }
 0x99c   :  { %4038 = vmatprep.subr.bf16.mxu0 %v8378_v62  ;;  %4079 = vmatprep.subr.bf16.mxu1 %v7087_v52  ;;  %v8452_v52 = vld [vmem:[#allocation60_spill] sm:$0xff] }
 0x99d   :  { %v8456_v62 = vld [vmem:[#allocation64_spill] sm:$0xff] }
 0x99f   :  { %v5073_v45 = vpop.eup %5072 }
 0x9a0   :  { %v3842_v20 = vmul.f32 %v5073_v45, %v3840_v63 }
 0x9a2   :  { %v3843_v7 = vpack.c.bf16 %v3842_v20, %v3842_v20 }
 0x9a4   :  { %3960 = vmatmul.mubr.bf16.vlgmr.msra.gmra.mrb[112].mxu0 %v3843_v7  ;;  %4001 = vmatmul.mubr.bf16.vlgmr.msra.gmra.mrb[112].mxu1 %v3843_v7 }
 0x9a5   :  { %4039 = vmatpush1.bf16.msra.mxu0 %v7094_v31  ;;  %4080 = vmatpush1.bf16.msra.mxu1 %v8379_v29  ;;  %v8453_v31 = vld [vmem:[#allocation61_spill] sm:$0xff]  ;;  %v8457_v29 = vld [vmem:[#allocation39_spill] sm:$0xff] }
 0x9a6   :  { %4040 = vmatprep.subr.bf16.mxu0 %v8380_v15  ;;  %4081 = vmatprep.subr.bf16.mxu1 %v8381_v24  ;;  %v8458_v15 = vld [vmem:[#allocation40_spill] sm:$0xff] }
 0x9a7   :  { %4070 = vmatprep.mubr.bf16.mxu0 %v8067_v47  ;;  %4111 = vmatprep.mubr.bf16.mxu1 %v8067_v47  ;;  %v8459_v24 = vld [vmem:[#allocation76_spill] sm:$0xff] }
 0x9a9   :  { %4041 = vmatpush1.bf16.msra.mxu0 %v8382_v37  ;;  %4082 = vmatpush1.bf16.msra.mxu1 %v8383_v48  ;;  %v8460_v37 = vld [vmem:[#allocation79_spill] sm:$0xff]  ;;  %v8461_v48 = vld [vmem:[#allocation80_spill] sm:$0xff] }
 0x9aa   :  { %4042 = vmatprep.subr.bf16.mxu0 %v8384_v53  ;;  %4083 = vmatprep.subr.bf16.mxu1 %v8385_v59  ;;  %v8462_v53 = vld [vmem:[#allocation81_spill] sm:$0xff]  ;;  %v8463_v59 = vld [vmem:[#allocation82_spill] sm:$0xff] }
 0x9ad   :  { %4043 = vmatpush1.bf16.msra.mxu0 %v8386_v43  ;;  %4084 = vmatpush1.bf16.msra.mxu1 %v8387_v10  ;;  %v8464_v43 = vld [vmem:[#allocation85_spill] sm:$0xff]  ;;  %v8465_v10 = vld [vmem:[#allocation86_spill] sm:$0xff] }
 0x9ae   :  { %4044 = vmatprep.subr.bf16.mxu0 %v8388_v1  ;;  %4085 = vmatprep.subr.bf16.mxu1 %v8389_v6  ;;  %v8466_v1 = vld [vmem:[#allocation27_spill] sm:$0xff]  ;;  %v8467_v6 = vld [vmem:[#allocation28_spill] sm:$0xff] }
 0x9b1   :  { %4045 = vmatpush1.bf16.msra.mxu0 %v8390_v35  ;;  %4086 = vmatpush1.bf16.msra.mxu1 %v8391_v38  ;;  %v8468_v35 = vld [vmem:[#allocation29_spill] sm:$0xff]  ;;  %v8469_v38 = vld [vmem:[#allocation30_spill] sm:$0xff] }
 0x9b2   :  { %4046 = vmatprep.subr.bf16.mxu0 %v8392_v28  ;;  %4087 = vmatprep.subr.bf16.mxu1 %v8393_v30  ;;  %v8470_v28 = vld [vmem:[#allocation31_spill] sm:$0xff]  ;;  %v8471_v30 = vld [vmem:[#allocation32_spill] sm:$0xff] }
 0x9b5   :  { %4047 = vmatpush1.bf16.msra.mxu0 %v8394_v34  ;;  %4088 = vmatpush1.bf16.msra.mxu1 %v8395_v27  ;;  %v8472_v34 = vld [vmem:[#allocation73_spill] sm:$0xff] }
 0x9b6   :  { %4048 = vmatprep.subr.bf16.mxu0 %v8396_v13  ;;  %4089 = vmatprep.subr.bf16.mxu1 %v8397_v2  ;;  %v8473_v27 = vld [vmem:[#allocation77_spill] sm:$0xff]  ;;  %v8474_v13 = vld [vmem:[#allocation78_spill] sm:$0xff]  ;;  %v8475_v2 = vld [vmem:[#allocation83_spill] sm:$0xff] }
 0x9b9   :  { %4049 = vmatpush1.bf16.msra.mxu0 %v8398_v49  ;;  %4090 = vmatpush1.bf16.msra.mxu1 %v8399_v26  ;;  %v8476_v49 = vld [vmem:[#allocation84_spill] sm:$0xff]  ;;  %v8477_v26 = vld [vmem:[#allocation53_spill] sm:$0xff] }
 0x9ba   :  { %4050 = vmatprep.subr.bf16.mxu0 %v7162_v56  ;;  %4091 = vmatprep.subr.bf16.mxu1 %v7165_v3  ;;  %v8454_v56 = vld [vmem:[#allocation62_spill] sm:$0xff]  ;;  %v8455_v3 = vld [vmem:[#allocation63_spill] sm:$0xff] }
 0x9bd   :  { %4051 = vmatpush1.bf16.msra.mxu0 %v8400_v54  ;;  %4092 = vmatpush1.bf16.msra.mxu1 %v8401_v40  ;;  %v8478_v54 = vld [vmem:[#allocation54_spill] sm:$0xff]  ;;  %v8479_v40 = vld [vmem:[#allocation55_spill] sm:$0xff] }
 0x9be   :  { %4052 = vmatprep.subr.bf16.mxu0 %v8402_v41  ;;  %4093 = vmatprep.subr.bf16.mxu1 %v8403_v51  ;;  %v8480_v41 = vld [vmem:[#allocation56_spill] sm:$0xff]  ;;  %v8481_v51 = vld [vmem:[#allocation23_spill] sm:$0xff] }
 0x9c1   :  { %4053 = vmatpush1.bf16.msra.mxu0 %v7301_v12  ;;  %4094 = vmatpush1.bf16.msra.mxu1 %v7304_v11  ;;  %v8482_v12 = vld [vmem:[#allocation24_spill] sm:$0xff]  ;;  %v8483_v11 = vld [vmem:[#allocation65_spill] sm:$0xff] }
 0x9c2   :  { %4165 = vmatprep.subr.bf16.mxu0 %v7307_v44  ;;  %4206 = vmatprep.subr.bf16.mxu1 %v7310_v42 }
 0x9c4   :  { %4071 = vmatmul.mubr.bf16.vlgmr.msra.gmra.mrb[116].mxu0 %v3843_v7  ;;  %4112 = vmatmul.mubr.bf16.vlgmr.msra.gmra.mrb[116].mxu1 %v3843_v7 }
 0x9c5   :  { %4166 = vmatpush1.bf16.msra.mxu0 %v8452_v52  ;;  %4207 = vmatpush1.bf16.msra.mxu1 %v8453_v31 }
 0x9c6   :  { %4167 = vmatprep.subr.bf16.mxu0 %v8454_v56  ;;  %4208 = vmatprep.subr.bf16.mxu1 %v8455_v3 }
 0x9c7   :  { %4197 = vmatprep.mubr.bf16.mxu0 %v8067_v47  ;;  %4238 = vmatprep.mubr.bf16.mxu1 %v8067_v47 }
 0x9c9   :  { %4168 = vmatpush1.bf16.msra.mxu0 %v8456_v62  ;;  %4209 = vmatpush1.bf16.msra.mxu1 %v8457_v29 }
 0x9ca   :  { %4169 = vmatprep.subr.bf16.mxu0 %v8458_v15  ;;  %4210 = vmatprep.subr.bf16.mxu1 %v8459_v24 }
 0x9cd   :  { %4170 = vmatpush1.bf16.msra.mxu0 %v8460_v37  ;;  %4211 = vmatpush1.bf16.msra.mxu1 %v8461_v48 }
 0x9ce   :  { %4171 = vmatprep.subr.bf16.mxu0 %v8462_v53  ;;  %4212 = vmatprep.subr.bf16.mxu1 %v8463_v59 }
 0x9d1   :  { %4172 = vmatpush1.bf16.msra.mxu0 %v8464_v43  ;;  %4213 = vmatpush1.bf16.msra.mxu1 %v8465_v10 }
 0x9d2   :  { %4173 = vmatprep.subr.bf16.mxu0 %v8466_v1  ;;  %4214 = vmatprep.subr.bf16.mxu1 %v8467_v6 }
 0x9d5   :  { %4174 = vmatpush1.bf16.msra.mxu0 %v8468_v35  ;;  %4215 = vmatpush1.bf16.msra.mxu1 %v8469_v38 }
 0x9d6   :  { %4175 = vmatprep.subr.bf16.mxu0 %v8470_v28  ;;  %4216 = vmatprep.subr.bf16.mxu1 %v8471_v30 }
 0x9d9   :  { %4176 = vmatpush1.bf16.msra.mxu0 %v8472_v34  ;;  %4217 = vmatpush1.bf16.msra.mxu1 %v8473_v27 }
 0x9da   :  { %4177 = vmatprep.subr.bf16.mxu0 %v8474_v13  ;;  %4218 = vmatprep.subr.bf16.mxu1 %v8475_v2 }
 0x9dd   :  { %4178 = vmatpush1.bf16.msra.mxu0 %v8476_v49  ;;  %4219 = vmatpush1.bf16.msra.mxu1 %v8477_v26 }
 0x9de   :  { %4179 = vmatprep.subr.bf16.mxu0 %v8478_v54  ;;  %4220 = vmatprep.subr.bf16.mxu1 %v8479_v40 }
 0x9e1   :  { %4180 = vmatpush1.bf16.msra.mxu0 %v8480_v41  ;;  %4221 = vmatpush1.bf16.msra.mxu1 %v8481_v51 }
 0x9e2   :  { %4247 = vmatprep.subr.bf16.mxu0 %v8482_v12  ;;  %4288 = vmatprep.subr.bf16.mxu1 %v8483_v11 }
 0xa51   :  { %v3879_v44 = vpop.f32.mrb[108].mxu0  ;;  %v3920_v42 = vpop.f32.mrb[108].mxu1 }
 0xa52   :  { %v3881_v21 = vpop.f32.mrb[109].mxu0  ;;  %v3922_v20 = vpop.f32.mrb[109].mxu1 }
 0xa53   :  { %v3883_v45 = vpop.f32.mrb[110].mxu0  ;;  %v3924_v63 = vpop.f32.mrb[110].mxu1 }
 0xa54   :  { %v3884_v7 = vpop.f32.mrb[111].mxu0  ;;  %v3925_v52 = vpop.f32.mrb[111].mxu1 }
 0xa77   :  { %v3961_v31 = vpop.f32.mrb[112].mxu0  ;;  %v4002_v56 = vpop.f32.mrb[112].mxu1 }
 0xa78   :  { %v3962_v3 = vadd.f32 %v3961_v31, %v3879_v44  ;;  %v4003_v62 = vadd.f32 %v4002_v56, %v3920_v42  ;;  %v3963_v29 = vpop.f32.mrb[113].mxu0  ;;  %v4004_v15 = vpop.f32.mrb[113].mxu1 }
 0xa79   :  { %v3964_v24 = vadd.f32 %v3963_v29, %v3881_v21  ;;  %v4005_v37 = vadd.f32 %v4004_v15, %v3922_v20  ;;  %v3965_v48 = vpop.f32.mrb[114].mxu0  ;;  %v4006_v53 = vpop.f32.mrb[114].mxu1  ;;  %v8484_v15 = vld [vmem:[#allocation89_spill] sm:$0xff] }
 0xa7a   :  { %v4009_v59 = vadd.f32 %v3962_v3, %v6467_v57  ;;  %v3966_v43 = vpop.f32.mrb[115].mxu0  ;;  %v4007_v10 = vpop.f32.mrb[115].mxu1  ;;  %v4011_v38 = vadd.f32 %v4003_v62, %v6477_v18 }
 0xa7b   :  { %v4010_v1 = vadd.f32 %v3964_v24, %v6471_v8  ;;  %v4012_v28 = vadd.f32 %v4005_v37, %v6481_v33 }
 0xa7c   :  { %v4660_v6 = vmul.f32 -1.442695, %v4009_v59  ;;  %v4662_v30 = vmul.f32 -1.442695, %v4011_v38  ;;  %v8494_v38 = vld [vmem:[#allocation71_spill] sm:$0xff] }
 0xa7d   :  { %v4661_v35 = vmul.f32 -1.442695, %v4010_v1 }
 0xa7e   :  { %5074 = vpow2.f32 %v4660_v6 }
 0xa7f   :  { %5076 = vpow2.f32 %v4661_v35 }
 0xa80   :  { %5078 = vtanh.f32 %v4012_v28  ;;  %v8495_v28 = vld [vmem:[#allocation72_spill] sm:$0xff] }
 0xa81   :  { %5080 = vpow2.f32 %v4662_v30  ;;  %v8496_v30 = vld [vmem:[#allocation33_spill] sm:$0xff] }
 0xa88   :  { %v5075_v34 = vpop.eup %5074 }
 0xa89   :  { %v4022_v27 = vadd.f32 1.0, %v5075_v34  ;;  %v5077_v13 = vpop.eup %5076  ;;  %v8497_v34 = vld [vmem:[#allocation34_spill] sm:$0xff] }
 0xa8a   :  { %v4023_v2 = vadd.f32 1.0, %v5077_v13  ;;  %v5079_v49 = vpop.eup %5078 }
 0xa8b   :  { %5082 = vrcp.f32 %v4022_v27  ;;  %v5081_v26 = vpop.eup %5080  ;;  %v8499_v27 = vld [vmem:[#allocation36_spill] sm:$0xff] }
 0xa8c   :  { %5084 = vrcp.f32 %v4023_v2  ;;  %v4024_v51 = vadd.f32 1.0, %v5081_v26  ;;  %v4914_v2 = vld [vmem:[#allocation12] sm:$0xff]   ;;  %v4915_v26 = vld [vmem:[#allocation12 + $0x8] sm:$0xff]  }
 0xa8e   :  { %5086 = vrcp.f32 %v4024_v51 }
 0xa95   :  { %v5083_v54 = vpop.eup %5082 }
 0xa96   :  { %v4033_v40 = vmul.f32 %v5083_v54, %v5079_v49  ;;  %v5085_v41 = vpop.eup %5084  ;;  %v5488_v49 = vmov 0.0   ;;  %v4916_v54 = vld [vmem:[#allocation12 + $0x10] sm:$0xff]  }
 0xa97   :  { %v4072_v12 = vpop.f32.mrb[116].mxu0  ;;  %v4113_v11 = vpop.f32.mrb[116].mxu1  ;;  %v4032_v44 = vmul.f32 %v5085_v41, %v7416_v58  ;;  %v8485_v58 = vld [vmem:[#allocation90_spill] sm:$0xff] }
 0xa98   :  { %v4074_v42 = vpop.f32.mrb[117].mxu0  ;;  %v4115_v21 = vpop.f32.mrb[117].mxu1  ;;  %v8486_v24 = vcombine.low %v8484_v15, %v8485_v58  ;;  %v4921_v41 = vld [vmem:[#allocation12 + $0x38] sm:$0xff]  }
 0xa99   :  { %v4124_v20 = vcombine.low %v4072_v12, %v4074_v42  ;;  %v4125_v45 = vcombine.low %v4113_v11, %v4115_v21  ;;  %v4076_v63 = vpop.f32.mrb[118].mxu0  ;;  %v4117_v7 = vpop.f32.mrb[118].mxu1  ;;  %v7595_v52 = vadd.f32 %v4033_v40, %v4032_v44  ;;  %v4920_v40 = vld [vmem:[#allocation12 + $0x30] sm:$0xff]  }
 0xa9a   :  { %v4077_v31 = vpop.f32.mrb[119].mxu0  ;;  %v4118_v56 = vpop.f32.mrb[119].mxu1 }
 0xa9b   :  { %v4132_v3 = vrot.slane %v4124_v20, %v5981_v5  ;;  %v4139_v62 = vrot.slane %v4125_v45, %v5981_v5  ;;  %5088 = vtanh.f32 %v7595_v52  ;;  %v5087_v53 = vpop.eup %5086 }
 0xa9d   :  { %v4140_v29 = vcombine.low %v4132_v3, %v4139_v62 }
 0xa9f   :  { %v4142_v37 = vadd.f32 %v4140_v29, %v8486_v24 }
 0xaa1   :  { %v4663_v48 = vmul.f32 -1.442695, %v4142_v37  ;;  %v4150_v6 = vrot.slane %v4142_v37, 6 }
 0xaa3   :  { %5090 = vpow2.f32 %v4663_v48 }
 0xaa5   :  { %v5089_v59 = vpop.eup %5088 }
 0xaa6   :  { %v4036_v43 = vmul.f32 %v5089_v59, %v5087_v53 }
 0xaa8   :  { %v4164_v10 = vpack.c.bf16 %v4036_v43, %v4036_v43 }
 0xaaa   :  { %4198 = vmatmul.mubr.bf16.vlgmr.msra.gmra.mrb[120].mxu0 %v4164_v10  ;;  %4239 = vmatmul.mubr.bf16.vlgmr.msra.gmra.mrb[120].mxu1 %v4164_v10 }
 0xaab   :  { %4248 = vmatpush1.bf16.msra.mxu0 %v7424_v50  ;;  %4289 = vmatpush1.bf16.msra.mxu1 %v7427_v61  ;;  %v8487_v50 = vld [vmem:[#allocation66_spill] sm:$0xff]  ;;  %v8488_v61 = vld [vmem:[#allocation67_spill] sm:$0xff] }
 0xaac   :  { %4249 = vmatprep.subr.bf16.mxu0 %v7430_v4  ;;  %4290 = vmatprep.subr.bf16.mxu1 %v7433_v19  ;;  %v8490_v4 = vld [vmem:[#allocation69_spill] sm:$0xff]  ;;  %v8491_v19 = vld [vmem:[#allocation70_spill] sm:$0xff] }
 0xaad   :  { %v5091_v5 = vpop.eup %5090  ;;  %4279 = vmatprep.mubr.bf16.mxu0 %v8067_v47  ;;  %4320 = vmatprep.mubr.bf16.mxu1 %v8067_v47  ;;  %v8489_v47 = vld [vmem:[#allocation68_spill] sm:$0xff] }
 0xaae   :  { %v4146_v1 = vadd.f32 1.0, %v5091_v5 }
 0xaaf   :  { %4250 = vmatpush1.bf16.msra.mxu0 %v7438_v32  ;;  %4291 = vmatpush1.bf16.msra.mxu1 %v7441_v46 }
 0xab0   :  { %5092 = vrcp.f32 %v4146_v1  ;;  %4251 = vmatprep.subr.bf16.mxu0 %v7444_v55  ;;  %4292 = vmatprep.subr.bf16.mxu1 %v7447_v22  ;;  %v8492_v22 = vld [vmem:[#allocation74_spill] sm:$0xff] }
 0xab1   :  { %5094 = vtanh.f32 %v4150_v6 }
 0xab3   :  { %4252 = vmatpush1.bf16.msra.mxu0 %v7450_v25  ;;  %4293 = vmatpush1.bf16.msra.mxu1 %v7453_v39  ;;  %v8493_v39 = vld [vmem:[#allocation75_spill] sm:$0xff] }
 0xab4   :  { %4253 = vmatprep.subr.bf16.mxu0 %v7456_v16  ;;  %4294 = vmatprep.subr.bf16.mxu1 %v8487_v50 }
 0xab7   :  { %4254 = vmatpush1.bf16.msra.mxu0 %v8488_v61  ;;  %4295 = vmatpush1.bf16.msra.mxu1 %v8489_v47 }
 0xab8   :  { %4255 = vmatprep.subr.bf16.mxu0 %v8490_v4  ;;  %4296 = vmatprep.subr.bf16.mxu1 %v8491_v19 }
 0xaba   :  { %v5093_v32 = vpop.eup %5092 }
 0xabb   :  { %v4154_v46 = vrot.slane %v5093_v32, 2  ;;  %v5095_v55 = vpop.eup %5094  ;;  %4256 = vmatpush1.bf16.msra.mxu0 %v8492_v22  ;;  %4297 = vmatpush1.bf16.msra.mxu1 %v7477_v17  ;;  %v8498_v17 = vld [vmem:[#allocation35_spill] sm:$0xff] }
 0xabc   :  { %v4157_v25 = vmul.f32 %v5095_v55, %v5093_v32  ;;  %4257 = vmatprep.subr.bf16.mxu0 %v8493_v39  ;;  %4298 = vmatprep.subr.bf16.mxu1 %v7483_v9 }
 0xabd   :  { %v4156_v16 = vmul.f32 %v4154_v46, %v7487_v60 }
 0xabf   :  { %v4158_v35 = vadd.f32 %v4157_v25, %v4156_v16  ;;  %4258 = vmatpush1.bf16.msra.mxu0 %v7489_v14  ;;  %4299 = vmatpush1.bf16.msra.mxu1 %v8494_v38  ;;  %v4160_v14 = vrot.slane %v5093_v32, 4 }
 0xac0   :  { %4259 = vmatprep.subr.bf16.mxu0 %v8495_v28  ;;  %4300 = vmatprep.subr.bf16.mxu1 %v8496_v30  ;;  %v4667_v28 = vld [vmem:[%s7665_s8] ss:$0 sm:$0xff]  ;;  %s5490_s8 = smov [#allocation14]  }
 0xac1   :  { %5096 = vtanh.f32 %v4158_v35  ;;  %v8500_v35 = vlaneseq  ;;  %s4495_s22 = sshll.u32 %s5490_s8, 4  ;;  %s4496_s22 = int_to_ptr.vmem [resolvable:$true] %s4495_s22 }
 0xac2   :  { %s5442_s23 = scalar_lea.vmem %s4496_s22, 32  ;;  %p5447_p7 = scmp.lt.s32.totalorder %s4496_s22, %s4496_s22 }
 0xac3   :  { %4260 = vmatpush1.bf16.msra.mxu0 %v8497_v34  ;;  %4301 = vmatpush1.bf16.msra.mxu1 %v8498_v17  ;;  %v4470_v38 = vand.u32 127, %v8500_v35  ;;  %p5443_p6 = scmp.ne.s32.totalorder %s4496_s22, %s5442_s23  ;;  %p5448_p8 = scmp.lt.s32.totalorder %s5442_s23, %s5442_s23 }
 0xac4   :  { %4261 = vmatprep.subr.bf16.mxu0 %v8499_v27  ;;  %4302 = vmatprep.subr.bf16.mxu1 %v7511_v0  ;;  %v4919_v0 = vld [vmem:[#allocation12 + $0x28] sm:$0xff]  }
 0xac5   :  { %vm4471_vm1 = vcmp.lt.s32.totalorder %v4470_v38, 2  ;;  %p5449_p9 = por %p5448_p8, %p5447_p7 }
 0xac7   :  { %4262 = vmatpush1.bf16.msra.mxu0 %v7514_v23  ;;  %4303 = vmatpush1.bf16.msra.mxu1 %v7517_v36  ;;  %v4917_v23 = vld [vmem:[#allocation12 + $0x18] sm:$0xff]   ;;  %v4918_v36 = vld [vmem:[#allocation12 + $0x20] sm:$0xff]   ;;  %p5450_p10 = pnand %p5449_p9, %p5443_p6 }
 0xac8   :  { %4685 = vmatprep.subr.bf16.mxu0 %v5488_v49 }
 0xacb   :  { %v5097_v60 = vpop.eup %5096 }
 0xacc   :  { %v4162_v9 = vmul.f32 %v5097_v60, %v4160_v14 }
 0xace   :  { %v4163_v13 = vpack.c.bf16 %v4162_v9, %v4162_v9 }
 0xad0   :  { %4280 = vmatmul.mubr.bf16.vlgmr.msra.gmra.mrb[124].mxu0 %v4163_v13  ;;  %4321 = vmatmul.mubr.bf16.vlgmr.msra.gmra.mrb[124].mxu1 %v4163_v13 }
 0xad1   :  { %4686 = vmatpush3.bf16.msra.mxu0 %v4914_v2  ;;  %4701 = vmatprep.mubr.msk.bf16.mxu0 %vm5489_vm0, %v5488_v49 }
 0xad2   :  { %4687 = vmatprep.subr.bf16.mxu0 %v5488_v49 }
 0xad5   :  { %4688 = vmatpush3.bf16.msra.mxu0 %v4915_v26 }
 0xad6   :  { %4689 = vmatprep.subr.bf16.mxu0 %v5488_v49 }
 0xad9   :  { %4690 = vmatpush3.bf16.msra.mxu0 %v4916_v54 }
 0xada   :  { %4691 = vmatprep.subr.bf16.mxu0 %v5488_v49 }
 0xadd   :  { %4692 = vmatpush3.bf16.msra.mxu0 %v4917_v23 }
 0xade   :  { %4693 = vmatprep.subr.bf16.mxu0 %v5488_v49 }
 0xae1   :  { %4694 = vmatpush3.bf16.msra.mxu0 %v4918_v36 }
 0xae2   :  { %4695 = vmatprep.subr.bf16.mxu0 %v5488_v49 }
 0xae5   :  { %4696 = vmatpush3.bf16.msra.mxu0 %v4919_v0 }
 0xae6   :  { %4697 = vmatprep.subr.bf16.mxu0 %v5488_v49 }
 0xae9   :  { %4698 = vmatpush3.bf16.msra.mxu0 %v4920_v40 }
 0xaea   :  { %4699 = vmatprep.subr.bf16.mxu0 %v5488_v49 }
 0xaed   :  { %4700 = vmatpush3.bf16.msra.mxu0 %v4921_v41 }
 0xb7d   :  { %v4199_v51 = vpop.f32.mrb[120].mxu0  ;;  %v4240_v12 = vpop.f32.mrb[120].mxu1 }
 0xb7e   :  { %v4201_v11 = vpop.f32.mrb[121].mxu0  ;;  %v4242_v44 = vpop.f32.mrb[121].mxu1 }
 0xb7f   :  { %v4203_v42 = vpop.f32.mrb[122].mxu0  ;;  %v4244_v21 = vpop.f32.mrb[122].mxu1 }
 0xb80   :  { %v4204_v20 = vpop.f32.mrb[123].mxu0  ;;  %v4245_v45 = vpop.f32.mrb[123].mxu1 }
 0xba3   :  { %v4281_v63 = vpop.f32.mrb[124].mxu0  ;;  %v4322_v7 = vpop.f32.mrb[124].mxu1 }
 0xba4   :  { %v4282_v31 = vadd.f32 %v4281_v63, %v4199_v51  ;;  %v4323_v56 = vadd.f32 %v4322_v7, %v4240_v12  ;;  %v4283_v3 = vpop.f32.mrb[125].mxu0  ;;  %v4324_v62 = vpop.f32.mrb[125].mxu1 }
 0xba5   :  { %v4284_v29 = vadd.f32 %v4283_v3, %v4201_v11  ;;  %v4325_v15 = vadd.f32 %v4324_v62, %v4242_v44  ;;  %v4285_v58 = vpop.f32.mrb[126].mxu0  ;;  %v4326_v24 = vpop.f32.mrb[126].mxu1 }
 0xba6   :  { %v4329_v37 = vadd.f32 %v4282_v31, %v6467_v57  ;;  %v4286_v48 = vpop.f32.mrb[127].mxu0  ;;  %v4327_v53 = vpop.f32.mrb[127].mxu1  ;;  %v4331_v5 = vadd.f32 %v4323_v56, %v6477_v18 }
 0xba7   :  { %v4330_v59 = vadd.f32 %v4284_v29, %v6471_v8  ;;  %v4332_v1 = vadd.f32 %v4325_v15, %v6481_v33 }
 0xba8   :  { %v4664_v43 = vmul.f32 -1.442695, %v4329_v37  ;;  %v4666_v6 = vmul.f32 -1.442695, %v4331_v5 }
 0xba9   :  { %v4665_v10 = vmul.f32 -1.442695, %v4330_v59 }
 0xbaa   :  { %5098 = vpow2.f32 %v4664_v43 }
 0xbab   :  { %5100 = vpow2.f32 %v4665_v10 }
 0xbac   :  { %5102 = vtanh.f32 %v4332_v1 }
 0xbad   :  { %5104 = vpow2.f32 %v4666_v6 }
 0xbb4   :  { %v5099_v50 = vpop.eup %5098 }
 0xbb5   :  { %v4342_v61 = vadd.f32 1.0, %v5099_v50  ;;  %v5101_v47 = vpop.eup %5100 }
 0xbb6   :  { %v4343_v57 = vadd.f32 1.0, %v5101_v47  ;;  %v5103_v4 = vpop.eup %5102 }
 0xbb7   :  { %5106 = vrcp.f32 %v4342_v61  ;;  %v5105_v19 = vpop.eup %5104 }
 0xbb8   :  { %5108 = vrcp.f32 %v4343_v57  ;;  %v4344_v55 = vadd.f32 1.0, %v5105_v19 }
 0xbba   :  { %5110 = vrcp.f32 %v4344_v55 }
 0xbc1   :  { %v5107_v8 = vpop.eup %5106 }
 0xbc2   :  { %v4353_v32 = vmul.f32 %v5107_v8, %v5103_v4  ;;  %v5109_v46 = vpop.eup %5108 }
 0xbc3   :  { %v4352_v22 = vmul.f32 %v5109_v46, %v7595_v52 }
 0xbc4   :  { %v5111_v33 = vpop.eup %5110 }
 0xbc5   :  { %v4354_v18 = vadd.f32 %v4353_v32, %v4352_v22 }
 0xbc7   :  { %5112 = vtanh.f32 %v4354_v18 }
 0xbd1   :  { %v5113_v25 = vpop.eup %5112 }
 0xbd2   :  { %v4356_v39 = vmul.f32 %v5113_v25, %v5111_v33 }
 0xbd4   :  { %v4357_v16 = vpack.c.bf16 %v4356_v39, %v4356_v39 }
 0xbd6   :  { %4702 = vmatmul.mubr.bf16.vlgmr.msra.gmra.mrb[128].mxu0 %v4357_v16 }
 0xca9   :  { %v4463_v30 = vpop.f32.mrb[128].mxu0 }
 0xcaa   :  { %v4464_v34 = vadd.f32 %v4667_v28, %v4463_v30  ;;  %v4703_v17 = vpop.f32.mrb[129].mxu0 }
 0xcab   :  { %v4466_v52 = vpop.f32.mrb[130].mxu0 }
 0xcac   :  { %v4704_v27 = vpop.f32.mrb[131].mxu0  ;;  %v4472_v14 = vsel %vm4471_vm1, %v4464_v34, -1e+30 }
 0xcad   :  { %v4474_v60 = vsel %vm4473_vm2, %v4472_v14, -inf }
 0xcae   :  { %4475 = vmax.xlane.f32.xlu0 %v4474_v60 }
 0xd3b   :  { %v4476_v9 = vpop.xlane.xlu0 %4475 }
 0xd3c   :  { %v4477_v13 = vsub.f32 %v4472_v14, %v4476_v9 }
 0xd3e   :  { %v4478_v2 = vmul.f32 1.442695, %v4477_v13 }
 0xd40   :  { %5114 = vpow2.f32 %v4478_v2 }
 0xd4a   :  { %v5115_v49 = vpop.eup %5114 }
 0xd4b   :  { %v4480_v26 = vsel %vm4471_vm1, %v5115_v49, 0.0 }
 0xd4c   :  { %v4481_v54 = vsel %vm4473_vm2, %v4480_v26, 0.0 }
 0xd4d   :  { %4482 = vadd.xlane.f32.xlu0 %v4481_v54 }
 0xdda   :  { %v4483_v23 = vpop.xlane.xlu0 %4482 }
 0xddb   :  { %5116 = vlog2.f32 %v4483_v23 }
 0xde5   :  { %v5117_v36 = vpop.eup %5116 }
 0xde6   :  { %v4485_v0 = vmul.f32 0.6931472, %v5117_v36 }
 0xde8   :  { %v4486_v40 = vadd.f32 %v4485_v0, %v4476_v9 }
 0xdea   :  { %v4487_v41 = vsub.f32 %v4472_v14, %v4486_v40 }
 0xdec   :  { %4488 = vst [vmem:[#allocation14] sm:$0x3] %v4487_v41 }
 0xded   :  { %5453 = shalt.err (!%p5450_p10)
}
 0xdee   :  { %s5454_s24 = scalar_lea.hbm %s7666_s9, 32 }
 0xdef   :  { %p5455_p11 = scmp.ne.s32.totalorder %s7666_s9, %s5454_s24  ;;  %p5458_p12 = scmp.lt.u32.totalorder %s5454_s24, %s7666_s9 }
 0xdf1   :  { %p5460_p13 = pnand %p5458_p12, %p5455_p11 }
 0xdf3   :  { %5463 = shalt.err (!%p5460_p13)
}
 0xdf4   :  { %4498 = dma.vmem_to_hbm [thread:$0]  %s4496_s22, 32, %s7666_s9, [#allocation5]  }
 0xdf5   :  { %5472 = dma.done.wait [#allocation5], 32  }
 0xdf6   :  { %5473 = vsyncadd [#allocation5], 4294967264 }
 0xdf7   :  { %4502 = vsyncpa [#allocation4], 1 }
 0xdf8   :  { %4503 = vsyncpa [#allocation7], 1 }
 0xdf9   :  { %4504 = vsyncpa [#allocation10], 1 }
 0xdfa   :  { %4505 = vsyncpa [#allocation13], 1 }
 0xdfb   :  { %4506 = vsyncpa [#allocation5], 1 }

</bundles_post_ra>
